<compile_context>
chip_gen: v7x
topology: tpu7x:2x2x1
jax: 0.10.0
libtpu: 0.0.40
codegen_flags: <defaults>
</compile_context>

<pallas_src>
import functools

import numpy as np
import jax
import jax.numpy as jnp
from jax import lax
from jax.experimental import pallas as pl
from jax.experimental.pallas import tpu as pltpu

# ---- config (matches the torch module at small, deterministic sizes) ----
SEQ = 8        # incoming sentence length (x.size(0) in the torch forward)
S   = 16       # config.sentence_max_size
D   = 128      # config.word_embedding_dimension
O   = 8        # config.cnn_output_size

BT  = 64       # sentences per grid step (keep >=2-4 grid steps so v7x's 2 TCs share work)
NF  = 16       # packed filter-tap columns (3 + 4 + 5 = 12 real, 4 zero pad)
CP  = 8        # padded per-filter lanes (3 real filters: widths 3, 4, 5)
OP  = 128      # padded output lanes (first O are real)

# tap index j -> packed columns it feeds (filter3: cols 0-2, filter4: 3-6, filter5: 7-11)
_TAP_COLS = {0: (0, 3, 7), 1: (1, 4, 8), 2: (2, 5, 9), 3: (6, 10), 4: (11,)}


def _cnn_kernel(x_ref, w_ref, p_ref, o_ref, *, bt):
    """One grid step = `bt` sentences.

    x_ref : (bt*SEQ, D) bf16  real sentence rows only (padding never materialized)
    w_ref : (D, NF)     bf16  packed transposed conv filters (12 real columns)
    p_ref : (32, 128)   f32   rows 0-7: linear weight; row 8: linear bias;
                              row 9 lanes 0-2: conv biases; rows 10-14 lanes 0-15:
                              per-tap column masks; rows 16-31 lanes 0-7: segment-sum
    o_ref : (bt, 128)   f32   lane-padded output (first O lanes real)
    """
    nr = bt * SEQ

    # 1) every (position, filter-tap) dot product in one MXU matmul (f32 accum)
    p = jnp.dot(x_ref[...], w_ref[...], preferred_element_type=jnp.float32)  # (nr, NF)

    # 2) tap alignment in registers: T[r, c] = P[r + tap(c), c].  Taps that run past
    #    a sentence's real rows (into the implicit zero padding) are masked to exactly
    #    0; this also kills the roll wrap-around rows.
    pos = lax.broadcasted_iota(jnp.int32, (nr, 1), 0) % SEQ      # row within sentence
    cmask = p_ref[10:15, 0:NF]                                   # (5, NF) 0/1 tap->col masks
    t = p * cmask[0:1, :]                                        # tap j = 0
    for j in range(1, 5):
        shifted = pltpu.roll(p, shift=nr - j, axis=0)            # row r -> P[r + j]
        keep = jnp.where(pos < (SEQ - j), cmask[j:j + 1, :], 0.0)
        t = t + shifted * keep

    # 3) per-filter sums (segment-sum over packed columns) + bias + ReLU
    sel = p_ref[16:32, 0:CP]                                     # (NF, CP) 0/1 matrix
    cb = p_ref[9:10, 0:CP]                                       # (1, CP) conv biases
    conv = jnp.dot(t, sel, preferred_element_type=jnp.float32) + cb
    conv = jnp.maximum(conv, 0.0)                                # (nr, CP)

    # 4) per-sentence max over the SEQ real positions, then fold in the conv positions
    #    that sit entirely in padding (their value is exactly relu(bias)).
    m = jnp.max(conv.reshape(bt, SEQ, CP), axis=1)               # (bt, CP)
    m = jnp.maximum(m, jnp.maximum(cb, 0.0))

    # 5) final linear, lane-dense store
    wl = p_ref[0:CP, :]                                          # (CP, OP)
    bl = p_ref[8:9, :]                                           # (1, OP)
    o_ref[...] = (jnp.dot(m, wl, preferred_element_type=jnp.float32) + bl
                  ).astype(o_ref.dtype)


def cnn_forward_batched(xs, w3, w4, w5, cb, wl_t, bl, *, bt=BT):
    """Row b of the result == torch CNN.forward(xs[b]).  xs: (B, SEQ, D)."""
    B, seq, d = xs.shape
    assert d == D and seq == SEQ and bt % 8 == 0
    # Every real position is a valid conv start and fully-padded positions exist
    # for all three widths (needed by the in-kernel padding handling).
    assert SEQ + 5 - 1 <= S

    # pad the batch to a multiple of the tile (all-zero sentences, dropped below)
    bp = ((B + bt - 1) // bt) * bt
    if bp != B:
        xs = jnp.concatenate([xs, jnp.zeros((bp - B, SEQ, D), xs.dtype)], axis=0)

    # unpadded bf16 x slab; the S-SEQ zero rows of the torch forward are never
    # materialized (their dot products are exactly 0, handled in-kernel)
    xp = xs.reshape(bp * SEQ, D).astype(jnp.bfloat16)

    # packed filters: columns 0-2 = w3 taps, 3-6 = w4, 7-11 = w5, 12-15 = 0
    w_cat = jnp.concatenate(
        [w3, w4, w5, jnp.zeros((NF - 12, D), jnp.float32)], axis=0
    ).T.astype(jnp.bfloat16)                                      # (D, NF)

    # fused small parameters: one lane-dense (32, 128) f32 slab
    sel = np.zeros((NF, CP), np.float32)
    sel[0:3, 0] = 1.0
    sel[3:7, 1] = 1.0
    sel[7:12, 2] = 1.0
    cmask = np.zeros((5, NF), np.float32)
    for j, cols in _TAP_COLS.items():
        cmask[j, list(cols)] = 1.0
    params = jnp.zeros((32, 128), jnp.float32)
    params = params.at[0:3, :O].set(wl_t)           # linear weight rows (torch weight.T)
    params = params.at[8, :O].set(bl)               # linear bias
    params = params.at[9, 0:3].set(cb)              # conv biases [b3, b4, b5]
    params = params.at[10:15, 0:NF].set(jnp.asarray(cmask))
    params = params.at[16:32, 0:CP].set(jnp.asarray(sel))

    nr = bt * SEQ
    out = pl.pallas_call(
        functools.partial(_cnn_kernel, bt=bt),
        out_shape=jax.ShapeDtypeStruct((bp, OP), jnp.float32),
        grid=(bp // bt,),
        in_specs=[
            pl.BlockSpec((nr, D), lambda i: (i, 0)),
            pl.BlockSpec((D, NF), lambda i: (0, 0)),
            pl.BlockSpec((32, 128), lambda i: (0, 0)),
        ],
        out_specs=pl.BlockSpec((bt, OP), lambda i: (i, 0)),
        compiler_params=pltpu.CompilerParams(
            dimension_semantics=("parallel",)),
    )(xp, w_cat, params)

    return out[:B, :O]


def reference_forward_single(x, w3, w4, w5, cb, wl_t, bl):
    """Pure-JAX reference mirroring the torch module for one sentence."""
    xp = jnp.concatenate([x, jnp.zeros((S - x.shape[0], D), x.dtype)], axis=0)

    def one(w, k, b):
        L = S - k + 1
        conv = jnp.stack([jnp.sum(xp[i:i + k, :] * w) for i in range(L)]) + b
        return jnp.max(jax.nn.relu(conv))

    m = jnp.array([one(w3, 3, cb[0]), one(w4, 4, cb[1]), one(w5, 5, cb[2])])
    return m @ wl_t + bl                                         # (O,)


if __name__ == "__main__":
    key = jax.random.PRNGKey(0)
    k_x, k3, k4, k5, kcb, kwl, kbl = jax.random.split(key, 7)

    B = 256                                                      # 4 grid steps at BT=64
    xs = jax.random.normal(k_x, (B, SEQ, D), jnp.float32)
    w3 = jax.random.normal(k3, (3, D), jnp.float32) * 0.1        # conv1.weight (1,1,3,D) squeezed
    w4 = jax.random.normal(k4, (4, D), jnp.float32) * 0.1        # conv2.weight
    w5 = jax.random.normal(k5, (5, D), jnp.float32) * 0.1        # conv3.weight
    cb = jax.random.normal(kcb, (3,), jnp.float32) * 0.1         # [conv1.bias, conv2.bias, conv3.bias]
    wl_t = jax.random.normal(kwl, (3, O), jnp.float32) * 0.1     # linear1.weight.T (torch: (O,3))
    bl = jax.random.normal(kbl, (O,), jnp.float32) * 0.1         # linear1.bias

    out = cnn_forward_batched(xs, w3, w4, w5, cb, wl_t, bl)
    jax.block_until_ready(out)

    ref = jax.vmap(
        lambda x: reference_forward_single(x, w3, w4, w5, cb, wl_t, bl))(xs)

    assert out.shape == (B, O)
    max_err = jnp.max(jnp.abs(out - ref))
    # bf16 input cast -> slightly relaxed tolerance vs the all-f32 reference
    assert jnp.allclose(out, ref, atol=3e-2, rtol=3e-2), (max_err, out[:2], ref[:2])

    print("KERNEL_OK")
</pallas_src>

<mosaic_0001>
module attributes {stable_mosaic.version = 11 : i64} {
  func.func @_cnn_kernel(%arg0: i32, %arg1: memref<512x128xbf16, #tpu.memory_space<vmem>>, %arg2: memref<128x16xbf16, #tpu.memory_space<vmem>>, %arg3: memref<32x128xf32, #tpu.memory_space<vmem>>, %arg4: memref<64x128xf32, #tpu.memory_space<vmem>>) attributes {dimension_semantics = [#tpu.dimension_semantics<parallel>], iteration_bounds = array<i64: 4>, scalar_prefetch = 0 : i64, scratch_operands = 0 : i64, tpu.core_type = #tpu.core_type<tc>, window_params = [{transform_indices = @transform_0, window_bounds = array<i64: 512, 128>}, {pipeline_mode = #tpu.pipeline_mode<synchronous>, transform_indices = @transform_1, window_bounds = array<i64: 128, 16>}, {pipeline_mode = #tpu.pipeline_mode<synchronous>, transform_indices = @transform_2, window_bounds = array<i64: 32, 128>}, {transform_indices = @transform_3, window_bounds = array<i64: 64, 128>}]} {
    %c0 = arith.constant 0 : index
    %c0_0 = arith.constant 0 : index
    %0 = vector.load %arg1[%c0, %c0_0] : memref<512x128xbf16, #tpu.memory_space<vmem>>, vector<512x128xbf16>
    %c0_1 = arith.constant 0 : index
    %c0_2 = arith.constant 0 : index
    %1 = vector.load %arg2[%c0_1, %c0_2] : memref<128x16xbf16, #tpu.memory_space<vmem>>, vector<128x16xbf16>
    %cst = arith.constant dense<0.000000e+00> : vector<512x16xf32>
    %2 = tpu.matmul %0, %1, %cst {dimension_numbers = #tpu.dot_dimension_numbers<[1], [0], [0], [1], [0, 0, 1, 1], [], []>} : vector<512x128xbf16>, vector<128x16xbf16>, vector<512x16xf32> -> vector<512x16xf32>
    %3 = tpu.iota {dimensions = array<i32: 0>} : vector<512x1xi32>
    %c8_i32 = arith.constant 8 : i32
    %c0_i32 = arith.constant 0 : i32
    %4 = arith.cmpi eq, %c8_i32, %c0_i32 : i32
    %c1_i32 = arith.constant 1 : i32
    %5 = arith.select %4, %c1_i32, %c8_i32 : i32
    %6 = vector.broadcast %5 : i32 to vector<512x1xi32>
    %7 = arith.remsi %3, %6 : vector<512x1xi32>
    %c0_i32_3 = arith.constant 0 : i32
    %8 = vector.broadcast %c0_i32_3 : i32 to vector<512x1xi32>
    %9 = arith.cmpi ne, %7, %8 : vector<512x1xi32>
    %c0_i32_4 = arith.constant 0 : i32
    %10 = vector.broadcast %c0_i32_4 : i32 to vector<512x1xi32>
    %11 = arith.cmpi slt, %7, %10 : vector<512x1xi32>
    %c0_i32_5 = arith.constant 0 : i32
    %12 = arith.cmpi slt, %5, %c0_i32_5 : i32
    %13 = vector.broadcast %12 : i1 to vector<512x1xi1>
    %14 = vector.broadcast %13 : vector<512x1xi1> to vector<512x1xi1>
    %15 = arith.xori %11, %14 : vector<512x1xi1>
    %16 = arith.andi %15, %9 : vector<512x1xi1>
    %17 = vector.broadcast %5 : i32 to vector<512x1xi32>
    %18 = arith.addi %7, %17 : vector<512x1xi32>
    %19 = arith.select %16, %18, %7 : vector<512x1xi1>, vector<512x1xi32>
    %c10 = arith.constant 10 : index
    %c0_6 = arith.constant 0 : index
    %20 = vector.load %arg3[%c10, %c0_6] : memref<32x128xf32, #tpu.memory_space<vmem>>, vector<5x16xf32>
    %21 = vector.extract_strided_slice %20 {offsets = [0, 0], sizes = [1, 16], strides = [1, 1]} : vector<5x16xf32> to vector<1x16xf32>
    %22 = vector.broadcast %21 : vector<1x16xf32> to vector<512x16xf32>
    %23 = arith.mulf %2, %22 : vector<512x16xf32>
    %c511_i32 = arith.constant 511 : i32
    %24 = tpu.dynamic_rotate %2 by %c511_i32 dim 0 : vector<512x16xf32>, i32 -> vector<512x16xf32>
    %c7_i32 = arith.constant 7 : i32
    %25 = vector.broadcast %c7_i32 : i32 to vector<512x1xi32>
    %26 = arith.cmpi slt, %19, %25 : vector<512x1xi32>
    %27 = vector.extract_strided_slice %20 {offsets = [1, 0], sizes = [1, 16], strides = [1, 1]} : vector<5x16xf32> to vector<1x16xf32>
    %cst_7 = arith.constant 0.000000e+00 : f32
    %28 = vector.shape_cast %26 : vector<512x1xi1> to vector<512x1xi1>
    %29 = vector.broadcast %28 : vector<512x1xi1> to vector<512x16xi1>
    %30 = vector.shape_cast %27 : vector<1x16xf32> to vector<1x16xf32>
    %31 = vector.broadcast %30 : vector<1x16xf32> to vector<512x16xf32>
    %32 = vector.broadcast %cst_7 : f32 to vector<512x16xf32>
    %33 = arith.select %29, %31, %32 : vector<512x16xi1>, vector<512x16xf32>
    %34 = arith.mulf %24, %33 : vector<512x16xf32>
    %35 = arith.addf %23, %34 : vector<512x16xf32>
    %c510_i32 = arith.constant 510 : i32
    %36 = tpu.dynamic_rotate %2 by %c510_i32 dim 0 : vector<512x16xf32>, i32 -> vector<512x16xf32>
    %c6_i32 = arith.constant 6 : i32
    %37 = vector.broadcast %c6_i32 : i32 to vector<512x1xi32>
    %38 = arith.cmpi slt, %19, %37 : vector<512x1xi32>
    %39 = vector.extract_strided_slice %20 {offsets = [2, 0], sizes = [1, 16], strides = [1, 1]} : vector<5x16xf32> to vector<1x16xf32>
    %cst_8 = arith.constant 0.000000e+00 : f32
    %40 = vector.shape_cast %38 : vector<512x1xi1> to vector<512x1xi1>
    %41 = vector.broadcast %40 : vector<512x1xi1> to vector<512x16xi1>
    %42 = vector.shape_cast %39 : vector<1x16xf32> to vector<1x16xf32>
    %43 = vector.broadcast %42 : vector<1x16xf32> to vector<512x16xf32>
    %44 = vector.broadcast %cst_8 : f32 to vector<512x16xf32>
    %45 = arith.select %41, %43, %44 : vector<512x16xi1>, vector<512x16xf32>
    %46 = arith.mulf %36, %45 : vector<512x16xf32>
    %47 = arith.addf %35, %46 : vector<512x16xf32>
    %c509_i32 = arith.constant 509 : i32
    %48 = tpu.dynamic_rotate %2 by %c509_i32 dim 0 : vector<512x16xf32>, i32 -> vector<512x16xf32>
    %c5_i32 = arith.constant 5 : i32
    %49 = vector.broadcast %c5_i32 : i32 to vector<512x1xi32>
    %50 = arith.cmpi slt, %19, %49 : vector<512x1xi32>
    %51 = vector.extract_strided_slice %20 {offsets = [3, 0], sizes = [1, 16], strides = [1, 1]} : vector<5x16xf32> to vector<1x16xf32>
    %cst_9 = arith.constant 0.000000e+00 : f32
    %52 = vector.shape_cast %50 : vector<512x1xi1> to vector<512x1xi1>
    %53 = vector.broadcast %52 : vector<512x1xi1> to vector<512x16xi1>
    %54 = vector.shape_cast %51 : vector<1x16xf32> to vector<1x16xf32>
    %55 = vector.broadcast %54 : vector<1x16xf32> to vector<512x16xf32>
    %56 = vector.broadcast %cst_9 : f32 to vector<512x16xf32>
    %57 = arith.select %53, %55, %56 : vector<512x16xi1>, vector<512x16xf32>
    %58 = arith.mulf %48, %57 : vector<512x16xf32>
    %59 = arith.addf %47, %58 : vector<512x16xf32>
    %c508_i32 = arith.constant 508 : i32
    %60 = tpu.dynamic_rotate %2 by %c508_i32 dim 0 : vector<512x16xf32>, i32 -> vector<512x16xf32>
    %c4_i32 = arith.constant 4 : i32
    %61 = vector.broadcast %c4_i32 : i32 to vector<512x1xi32>
    %62 = arith.cmpi slt, %19, %61 : vector<512x1xi32>
    %63 = vector.extract_strided_slice %20 {offsets = [4, 0], sizes = [1, 16], strides = [1, 1]} : vector<5x16xf32> to vector<1x16xf32>
    %cst_10 = arith.constant 0.000000e+00 : f32
    %64 = vector.shape_cast %62 : vector<512x1xi1> to vector<512x1xi1>
    %65 = vector.broadcast %64 : vector<512x1xi1> to vector<512x16xi1>
    %66 = vector.shape_cast %63 : vector<1x16xf32> to vector<1x16xf32>
    %67 = vector.broadcast %66 : vector<1x16xf32> to vector<512x16xf32>
    %68 = vector.broadcast %cst_10 : f32 to vector<512x16xf32>
    %69 = arith.select %65, %67, %68 : vector<512x16xi1>, vector<512x16xf32>
    %70 = arith.mulf %60, %69 : vector<512x16xf32>
    %71 = arith.addf %59, %70 : vector<512x16xf32>
    %c16 = arith.constant 16 : index
    %c0_11 = arith.constant 0 : index
    %72 = vector.load %arg3[%c16, %c0_11] : memref<32x128xf32, #tpu.memory_space<vmem>>, vector<16x8xf32>
    %c9 = arith.constant 9 : index
    %c0_12 = arith.constant 0 : index
    %73 = vector.load %arg3[%c9, %c0_12] : memref<32x128xf32, #tpu.memory_space<vmem>>, vector<1x8xf32>
    %cst_13 = arith.constant dense<0.000000e+00> : vector<512x8xf32>
    %74 = tpu.matmul %71, %72, %cst_13 {dimension_numbers = #tpu.dot_dimension_numbers<[1], [0], [0], [1], [0, 0, 1, 1], [], []>} : vector<512x16xf32>, vector<16x8xf32>, vector<512x8xf32> -> vector<512x8xf32>
    %75 = vector.broadcast %73 : vector<1x8xf32> to vector<512x8xf32>
    %76 = arith.addf %74, %75 : vector<512x8xf32>
    %cst_14 = arith.constant 0.000000e+00 : f32
    %77 = vector.broadcast %cst_14 : f32 to vector<512x8xf32>
    %78 = arith.maximumf %76, %77 : vector<512x8xf32>
    %79 = vector.shape_cast %78 : vector<512x8xf32> to vector<64x8x8xf32>
    %cst_15 = arith.constant dense<0xFF800000> : vector<64x8xf32>
    %80 = vector.multi_reduction <maximumf>, %79, %cst_15 [1] : vector<64x8x8xf32> to vector<64x8xf32>
    %cst_16 = arith.constant 0.000000e+00 : f32
    %81 = vector.broadcast %cst_16 : f32 to vector<1x8xf32>
    %82 = arith.maximumf %73, %81 : vector<1x8xf32>
    %83 = vector.broadcast %82 : vector<1x8xf32> to vector<64x8xf32>
    %84 = arith.maximumf %80, %83 : vector<64x8xf32>
    %c0_17 = arith.constant 0 : index
    %c0_18 = arith.constant 0 : index
    %85 = vector.load %arg3[%c0_17, %c0_18] : memref<32x128xf32, #tpu.memory_space<vmem>>, vector<8x128xf32>
    %c8 = arith.constant 8 : index
    %c0_19 = arith.constant 0 : index
    %86 = vector.load %arg3[%c8, %c0_19] : memref<32x128xf32, #tpu.memory_space<vmem>>, vector<1x128xf32>
    %cst_20 = arith.constant dense<0.000000e+00> : vector<64x128xf32>
    %87 = tpu.matmul %84, %85, %cst_20 {dimension_numbers = #tpu.dot_dimension_numbers<[1], [0], [0], [1], [0, 0, 1, 1], [], []>} : vector<64x8xf32>, vector<8x128xf32>, vector<64x128xf32> -> vector<64x128xf32>
    %88 = vector.broadcast %86 : vector<1x128xf32> to vector<64x128xf32>
    %89 = arith.addf %87, %88 : vector<64x128xf32>
    %c0_21 = arith.constant 0 : index
    %c0_22 = arith.constant 0 : index
    %90 = vector.load %arg4[%c0_21, %c0_22] : memref<64x128xf32, #tpu.memory_space<vmem>>, vector<64x128xf32>
    tpu.vector_store %arg4[%c0_21, %c0_22], %89 {strides = array<i32>} : memref<64x128xf32, #tpu.memory_space<vmem>>, vector<64x128xf32>,
    return
  }
  func.func @transform_0(%arg0: i32) -> (i32, i32) {
    %c0_i32 = arith.constant 0 : i32
    %c0_i32_0 = arith.constant 0 : i32
    return %arg0, %c0_i32 : i32, i32
  }
  func.func @transform_1(%arg0: i32) -> (i32, i32) {
    %c0_i32 = arith.constant 0 : i32
    %c0_i32_0 = arith.constant 0 : i32
    %c0_i32_1 = arith.constant 0 : i32
    return %c0_i32, %c0_i32_0 : i32, i32
  }
  func.func @transform_2(%arg0: i32) -> (i32, i32) {
    %c0_i32 = arith.constant 0 : i32
    %c0_i32_0 = arith.constant 0 : i32
    %c0_i32_1 = arith.constant 0 : i32
    return %c0_i32, %c0_i32_0 : i32, i32
  }
  func.func @transform_3(%arg0: i32) -> (i32, i32) {
    %c0_i32 = arith.constant 0 : i32
    %c0_i32_0 = arith.constant 0 : i32
    return %arg0, %c0_i32 : i32, i32
  }
}

</mosaic_0001>

<bundles_post_ra>
// kernel: tpu_custom_call.1
= control target key start
LH: loop header
LB: loop body
LE: loop exit
PB: predicated region body
PF: predicated region fallthrough
CT: control target
= control target key end

     0   :  { %8 = vsyncpa [#allocation3], 0  ;;  %s10036_s0 = inlined_call_operand.hbm [shape: bf16[2048,128], index: 0, kind: input, shape index: {}]   ;;  %s10037_s1 = inlined_call_operand.vmem [shape: bf16[128,16], index: 1, kind: input, shape index: {}]   ;;  %s10038_s2 = inlined_call_operand.vmem [shape: f32[32,128], index: 2, kind: input, shape index: {}]   ;;  %s10039_s3 = inlined_call_operand.hbm [shape: f32[256,128], index: 3, kind: output, shape index: {}]  }
   0x1   :  { %10 = vsyncpa [#allocation3 + $0x1], 0 }
   0x2   :  { %11 = vsyncpa [#allocation4], 0 }
   0x3   :  { %13 = vsyncpa [#allocation4 + $0x1], 0  ;;  %s5999_s12 = smov 0   ;;  %s6001_s13 = smov 0  }
   0x4   :  { %s6003_s14 = smov 0   ;;  %s6005_s15 = smov 0  }
   0x5 LB: > { %s6020_s16 = sadd.s32 4294967295, %s5971_s15   ;;  %s5343_s17 = sadd.s32 4294967294, %s5971_s15   ;;  %s5971_s15 = sphi %s6005_s15, %s10768_s15   ;;  %s5967_s14 = sphi %s6003_s14, %s10767_s14   ;;  %s5963_s13 = sphi %s6001_s13, %s10766_s13   ;;  %s5959_s12 = sphi %s5999_s12, %s10765_s12  }
   0x6   : > { %s6024_s18 = sadd.s32 1, %s5971_s15   ;;  %s26_s19 = sadd.s32 1, %s5967_s14 }
   0x7   : > { %s23_s20 = ssub.s32 %s5971_s15, %s6024_s18  ;;  %p33_p0 = scmp.ne.s32.totalorder %s5967_s14, %s5963_s13 }
   0x8   : > { %p24_p1 = scmp.eq.s32.totalorder %s23_s20, 0  ;;  %p34_p2 = scmp.eq.s32.totalorder %s5971_s15, 0 }
   0x9   : > { %p39_p3 = scmp.ne.s32.totalorder %s5963_s13, %s5959_s12  ;;  %p40_p4 = scmp.eq.s32.totalorder %s6020_s16, 0 }
   0xa   : > { %s6036_s21 = scalar_select %p24_p1, %s5967_s14, %s26_s19  }
   0xb   : > { %p6038_p5 = por %p34_p2, %p33_p0  ;;  %p6042_p6 = por %p40_p4, %p39_p3 }
   0xc   : > { %p105_p7 = scmp.eq.s32.totalorder %s6020_s16, 3  ;;  %p111_p8 = scmp.eq.s32.totalorder %s5343_s17, 3 }
   0xd   : > { %p5797_p9 = scmp.lt.s32.totalorder %s5971_s15, 4  ;;  %s137_s26 = sand.u32 1, %s5967_s14  }
   0xe   : > { %p6048_p10 = por %p105_p7, %p33_p0  ;;  %p6052_p11 = por %p111_p8, %p39_p3 }
   0xf   : > { %s5470_s27 = sshll.u32 %s5971_s15, 12  ;;  %s5346_s28 = sshll.u32 %s137_s26, 8 }
  0x10   : > { %s10139_s24 = scalar_select %p6048_p10, 1, 0 }
  0x11   : > { %s10140_s25 = scalar_select %p6052_p11, 1, 0 }
  0x12   : > { %s6061_s4 = scalar_lea.hbm %s10036_s0, %s5470_s27  ;;  %s141_s5 = scalar_lea.vmem [#allocation2], %s5346_s28 }
  0x13   : > { %s148_s6 = sshll.u32 %s141_s5, 4  ;;  %p6065_p12 = pnand %p5797_p9, %p6038_p5  ;;  %s6069_s6 = int_to_ptr.vmem [resolvable:$true] %s148_s6 }
  0x14   : > { %s6071_s8 = scalar_lea.sflag [#allocation3], %s137_s26  ;;  %s5875_s9 = scalar_lea.hbm %s6061_s4, 4096 }
  0x15   : > { %p5876_p13 = scmp.ne.s32.totalorder %s6061_s4, %s5875_s9  ;;  %p5877_p0 = pneg %p6065_p12 }
  0x16   : > { %s5880_s17 = scalar_lea.hbm %s10036_s0, 16384  ;;  %p5881_p3 = scmp.lt.u32.totalorder %s6061_s4, %s10036_s0 }
  0x17   : > { %p5878_p1 = pnand %p5877_p0, %p5876_p13  ;;  %p5882_p4 = scmp.lt.u32.totalorder %s5880_s17, %s5875_s9 }
  0x18   : > { %p5884_p7 = scmp.lt.u32.totalorder %s5875_s9, %s6061_s4 }
  0x19   : > { %p5879_p2 = pneg %p5878_p1  ;;  %p5883_p5 = por %p5882_p4, %p5881_p3 }
  0x1b   : > { %p5885_p8 = por %p5884_p7, %p5883_p5 }
  0x1d   : > { %p5886_p9 = pnand %p5885_p8, %p5879_p2 }
  0x1f   : > { %5889 = shalt.err (!%p5886_p9)
}
  0x20   : > { %s5890_s22 = scalar_lea.vmem %s6069_s6, 4096  ;;  %s5973_s26 = smov [#allocation2]  }
  0x21   : > { %p5891_p13 = scmp.ne.s32.totalorder %s6069_s6, %s5890_s22  ;;  %s5895_s27 = sshll.u32 %s5973_s26, 4  ;;  %s5896_s27 = int_to_ptr.vmem [resolvable:$false] %s5895_s27 }
  0x22   : > { %s5897_s28 = scalar_lea.vmem %s5896_s27, 8192  ;;  %p5898_p10 = scmp.lt.s32.totalorder %s6069_s6, %s5896_s27 }
  0x23   : > { %p5893_p1 = pnand %p5891_p13, %p5877_p0  ;;  %p5899_p3 = scmp.lt.s32.totalorder %s5897_s28, %s5890_s22 }
  0x25   : > { %p5894_p11 = pneg %p5893_p1  ;;  %p5900_p4 = por %p5899_p3, %p5898_p10 }
  0x27   : > { %p5901_p5 = pnand %p5900_p4, %p5894_p11 }
  0x29   : > { %5904 = shalt.err (!%p5901_p5)
}
  0x2a   : > { %s5974_s29 = smov 64   ;;  %s5975_s30 = smov 4  }
  0x2b   : > { %5792 = dma.hbm_to_vmem [thread:$0]  (!%p6065_p12), %s6061_s4, 4096, %s6069_s6, %s6071_s8, %s5974_s29, %s5974_s29, %s5975_s30  }
  0x2c   : > { %p5349_p0 = scmp.ge.s32.totalorder %s5971_s15, 1  ;;  %p156_p2 = scmp.lt.s32.totalorder %s5971_s15, 5 }
  0x2e   : > { %p157_p7 = pnand %p5349_p0, %p156_p2 }
  0x30   : > { %160 = sbr.rel (%p157_p7) target bundleno = 1183 (0x49f), region = 32 }
  0x37   : > { %s6102_s5 = sand.u32 1, %s5963_s13  }
  0x38   : > { %s5350_s9 = sshll.u32 %s6102_s5, 8  ;;  %s163_s10 = scalar_lea.sflag [#allocation3], %s6102_s5 }
  0x39   : > { %s6106_s11 = scalar_lea.vmem [#allocation2], %s5350_s9 }
  0x3a   : > { %5950 = dma.done.wait (%p6042_p6), %s163_s10, 4096  }
  0x3b   : > { %5952 = vsyncadd (%p6042_p6), %s163_s10, 4294963200  ;;  %v5835_v0 = vld [vmem:[%s10037_s1] sm:$0xff]   ;;  %v5836_v1 = vld [vmem:[%s10037_s1 + $0x8] sm:$0xff]   ;;  %v801_v43 = vlaneseq  ;;  %s5351_s26 = sshll.u32 %s6102_s5, 6  ;;  %s5471_s9 = sshll.u32 %s6020_s16, 10 }
  0x3c   : > { %5587 = vmatprep.subr.bf16.mxu0 %v5835_v0  ;;  %v5837_v2 = vld [vmem:[%s10037_s1 + $0x10] sm:$0xff]   ;;  %v5838_v3 = vld [vmem:[%s10037_s1 + $0x18] sm:$0xff]   ;;  %v5843_v4 = vld [vmem:[%s6106_s11] sm:$0xff]   ;;  %s188_s29 = scalar_lea.vmem [#allocation5], %s5351_s26  ;;  %s9993_s6 = scalar_lea.hbm %s10039_s3, %s5471_s9 }
  0x3d   : > { %5588 = vmatpush3.bf16.msra.mxu0 %v5835_v0  ;;  %5603 = vmatprep.mubr.bf16.mxu0 %v5843_v4  ;;  %v5839_v5 = vld [vmem:[%s10037_s1 + $0x20] sm:$0xff]   ;;  %v5840_v6 = vld [vmem:[%s10037_s1 + $0x28] sm:$0xff]   ;;  %v5841_v7 = vld [vmem:[%s10037_s1 + $0x30] sm:$0xff]   ;;  %v6174_v44 = vshrl.u32 %v801_v43, 7  ;;  %s5270_s30 = sshll.u32 %s188_s29, 4  ;;  %s5257_s7 = scalar_lea.sflag [#allocation4], %s6102_s5  ;;  %s9988_s30 = int_to_ptr.vmem [resolvable:$true] %s5270_s30 }
  0x3e   : > { %5589 = vmatprep.subr.bf16.mxu0 %v5836_v1  ;;  %v5842_v8 = vld [vmem:[%s10037_s1 + $0x38] sm:$0xff]   ;;  %v5844_v9 = vld [vmem:[%s6106_s11 + $0x8] sm:$0xff]   ;;  %v5845_v10 = vld [vmem:[%s6106_s11 + $0x10] sm:$0xff]   ;;  %s5905_s8 = scalar_lea.vmem %s9988_s30, 1024  ;;  %p10763_p10 = scmp.ne.s32.totalorder %s10139_s24, 0 }
  0x3f   : > { %v5846_v11 = vld [vmem:[%s6106_s11 + $0x18] sm:$0xff]   ;;  %v5847_v12 = vld [vmem:[%s6106_s11 + $0x20] sm:$0xff]   ;;  %v5848_v13 = vld [vmem:[%s6106_s11 + $0x28] sm:$0xff]   ;;  %v804_v45 = vadd.s32 16, %v6174_v44  ;;  %v803_v46 = vadd.s32 8, %v6174_v44  ;;  %v805_v47 = vadd.s32 24, %v6174_v44  ;;  %p5906_p6 = scmp.ne.s32.totalorder %s9988_s30, %s5905_s8 }
  0x40   : > { %v5849_v14 = vld [vmem:[%s6106_s11 + $0x30] sm:$0xff]   ;;  %v5850_v15 = vld [vmem:[%s6106_s11 + $0x38] sm:$0xff]   ;;  %v5851_v16 = vld [vmem:[%s6106_s11 + $0x40] sm:$0xff]   ;;  %v2026_v48 = vsub.s32 1, %v6174_v44  ;;  %v808_v49 = vadd.s32 48, %v6174_v44  ;;  %v806_v52 = vadd.s32 32, %v6174_v44 }
  0x41   : > { %5590 = vmatpush3.bf16.msra.mxu0 %v5836_v1  ;;  %v5852_v17 = vld [vmem:[%s6106_s11 + $0x48] sm:$0xff]   ;;  %v5853_v18 = vld [vmem:[%s6106_s11 + $0x50] sm:$0xff]   ;;  %v5854_v19 = vld [vmem:[%s6106_s11 + $0x58] sm:$0xff]   ;;  %v6181_v50 = vand.u32 7, %v804_v45  ;;  %v6183_v51 = vand.u32 7, %v803_v46  ;;  %v6187_v53 = vsub.s32 0, %v6174_v44  ;;  %p5907_p11 = pnand %p5906_p6, %p10763_p10 }
  0x42   : > { %5591 = vmatprep.subr.bf16.mxu0 %v5837_v2  ;;  %v5855_v20 = vld [vmem:[%s6106_s11 + $0x60] sm:$0xff]   ;;  %v5856_v21 = vld [vmem:[%s6106_s11 + $0x68] sm:$0xff]   ;;  %v5857_v22 = vld [vmem:[%s6106_s11 + $0x70] sm:$0xff]   ;;  %v870_v54 = vand.u32 7, %v6174_v44  ;;  %v2543_v55 = vsub.s32 2, %v6174_v44  ;;  %v6194_v57 = vand.u32 7, %v805_v47 }
  0x43   : > { %v5858_v23 = vld [vmem:[%s6106_s11 + $0x78] sm:$0xff]   ;;  %v5859_v24 = vld [vmem:[%s6106_s11 + $0x80] sm:$0xff]   ;;  %v5860_v25 = vld [vmem:[%s6106_s11 + $0x88] sm:$0xff]   ;;  %10142 = vst [vmem:[#allocation8_spill] sm:$0xff] %v6187_v53  ;;  %v807_v58 = vadd.s32 40, %v6174_v44  ;;  %v6199_v60 = vand.u32 7, %v808_v49  ;;  %p5908_p12 = pneg %p5907_p11 }
  0x44   : > { %v5861_v26 = vld [vmem:[%s6106_s11 + $0x90] sm:$0xff]   ;;  %v5862_v27 = vld [vmem:[%s6106_s11 + $0x98] sm:$0xff]   ;;  %v5863_v28 = vld [vmem:[%s6106_s11 + $0xa0] sm:$0xff]   ;;  %vm1834_vm0 = vcmp.lt.s32.totalorder %v6181_v50, 7  ;;  %vm1833_vm1 = vcmp.lt.s32.totalorder %v6183_v51, 7  ;;  %v6203_v61 = vand.u32 7, %v806_v52 }
  0x45   : > { %5592 = vmatpush3.bf16.msra.mxu0 %v5837_v2  ;;  %v5864_v29 = vld [vmem:[%s6106_s11 + $0xa8] sm:$0xff]   ;;  %v5865_v30 = vld [vmem:[%s6106_s11 + $0xb0] sm:$0xff]   ;;  %v5866_v31 = vld [vmem:[%s6106_s11 + $0xb8] sm:$0xff]   ;;  %v809_v62 = vadd.s32 56, %v6174_v44  ;;  %vm1832_vm2 = vcmp.lt.s32.totalorder %v870_v54, 7  ;;  %v3060_v1 = vsub.s32 3, %v6174_v44 }
  0x46   : > { %5593 = vmatprep.subr.bf16.mxu0 %v5838_v3  ;;  %v5867_v32 = vld [vmem:[%s6106_s11 + $0xc0] sm:$0xff]   ;;  %v5868_v33 = vld [vmem:[%s6106_s11 + $0xc8] sm:$0xff]   ;;  %v5869_v34 = vld [vmem:[%s6106_s11 + $0xd0] sm:$0xff]   ;;  %vm1835_vm3 = vcmp.lt.s32.totalorder %v6194_v57, 7  ;;  %v6213_v2 = vand.u32 7, %v807_v58  ;;  %vm2349_vm4 = vcmp.lt.s32.totalorder %v870_v54, 6 }
  0x47   : > { %v3771_v35 = vld [vmem:[%s10038_s2 + $0x10] sm:$0xff]  ;;  %v3772_v36 = vld [vmem:[%s10038_s2 + $0x18] sm:$0xff]  ;;  %v5871_v39 = vld [vmem:[%s6106_s11 + $0xe0] sm:$0xff]   ;;  %vm1838_vm5 = vcmp.lt.s32.totalorder %v6199_v60, 7  ;;  %vm1836_vm6 = vcmp.lt.s32.totalorder %v6203_v61, 7  ;;  %vm2866_vm8 = vcmp.lt.s32.totalorder %v870_v54, 5 }
  0x48   : > { %v5781_v37 = vpack.c.bf16 %v3772_v36, %v3771_v35  ;;  %v5870_v38 = vld [vmem:[%s6106_s11 + $0xd8] sm:$0xff]   ;;  %v5872_v40 = vld [vmem:[%s6106_s11 + $0xe8] sm:$0xff]   ;;  %v5873_v41 = vld [vmem:[%s6106_s11 + $0xf0] sm:$0xff]   ;;  %vm1837_vm7 = vcmp.lt.s32.totalorder %v6213_v2, 7  ;;  %vm3383_vm9 = vcmp.lt.s32.totalorder %v870_v54, 4  ;;  %vm2350_vm10 = vcmp.lt.s32.totalorder %v6183_v51, 6 }
  0x49   : > { %5594 = vmatpush3.bf16.msra.mxu0 %v5838_v3  ;;  %v5874_v42 = vld [vmem:[%s6106_s11 + $0xf8] sm:$0xff]   ;;  %v1634_v56 = vld [vmem:[%s10038_s2 + $0xa] sm:$0x1f]  ;;  %v3577_v3 = vsub.s32 4, %v6174_v44  ;;  %vm2867_vm12 = vcmp.lt.s32.totalorder %v6183_v51, 5  ;;  %vm2351_vm13 = vcmp.lt.s32.totalorder %v6181_v50, 6 }
  0x4a   : > { %5595 = vmatprep.subr.bf16.mxu0 %v5839_v5  ;;  %5782 = vmatprep.subr.bf16.mxu1 %v5781_v37  ;;  %v6197_v59 = vrot.slane %v1634_v56, %v2026_v48  ;;  %v6207_v63 = vrot.slane %v1634_v56, %v6187_v53  ;;  %v6209_v0 = vrot.slane %v1634_v56, %v2543_v55  ;;  %vm3384_vm14 = vcmp.lt.s32.totalorder %v6183_v51, 4  ;;  %s5976_s16 = smov [#allocation5]  }
  0x4b   : > { %5784 = vmatpush3.bf16.msra.mxu1 %v5781_v37  ;;  %vm2868_vm15 = vcmp.lt.s32.totalorder %v6181_v50, 5  ;;  %v815_v35 = vadd.s32 104, %v6174_v44  ;;  %v820_v55 = vadd.s32 144, %v6174_v44  ;;  %v818_v58 = vadd.s32 128, %v6174_v44  ;;  %s5909_s11 = sshll.u32 %s5976_s16, 4  ;;  %s5910_s11 = int_to_ptr.vmem [resolvable:$false] %s5909_s11 }
  0x4c   : > { %10143 = vst [vmem:[#allocation9_spill] sm:$0xff] %v6197_v59  ;;  %10144 = vst [vmem:[#allocation10_spill] sm:$0xff] %v6209_v0  ;;  %v6217_v4 = vsel %vm1834_vm0, %v6197_v59, 0.0  ;;  %vm3385_vm0 = vcmp.lt.s32.totalorder %v6181_v50, 4  ;;  %v817_v50 = vadd.s32 120, %v6174_v44  ;;  %s5911_s17 = scalar_lea.vmem %s5910_s11, 2048  ;;  %p5912_p8 = scmp.lt.s32.totalorder %s9988_s30, %s5910_s11 }
  0x4d   : > { %5596 = vmatpush3.bf16.msra.mxu0 %v5839_v5  ;;  %v6220_v5 = vsel %vm1833_vm1, %v6197_v59, 0.0  ;;  %p5913_p9 = scmp.lt.s32.totalorder %s5911_s17, %s5905_s8 }
  0x4e   : > { %5597 = vmatprep.subr.bf16.mxu0 %v5840_v6 }
  0x4f   : > { %p5914_p13 = por %p5913_p9, %p5912_p8 }
  0x51   : > { %5598 = vmatpush3.bf16.msra.mxu0 %v5840_v6  ;;  %v812_v6 = vadd.s32 80, %v6174_v44  ;;  %p5915_p1 = pnand %p5914_p13, %p5908_p12 }
  0x52   : > { %5599 = vmatprep.subr.bf16.mxu0 %v5841_v7 }
  0x55   : > { %5600 = vmatpush3.bf16.msra.mxu0 %v5841_v7  ;;  %v6225_v7 = vand.u32 7, %v809_v62 }
  0x56   : > { %5601 = vmatprep.subr.bf16.mxu0 %v5842_v8 }
  0x57   : > { %vm1839_vm11 = vcmp.lt.s32.totalorder %v6225_v7, 7 }
  0x59   : > { %5602 = vmatpush3.bf16.msra.mxu0 %v5842_v8  ;;  %v810_v8 = vadd.s32 64, %v6174_v44 }
  0x5c   : > { %5604 = vmatmul.mubr.bf16.vlgmr.msra.gmra.mrb[0].mxu0 %v5844_v9  ;;  %v811_v9 = vadd.s32 72, %v6174_v44 }
  0x5d   : > { %5607 = vmatprep.mubr.bf16.mxu0 %v5845_v10  ;;  %v6230_v10 = vsel %vm1835_vm3, %v6197_v59, 0.0 }
  0x64   : > { %5608 = vmatmul.mubr.bf16.gmra.mrb[4].mxu0 %v5846_v11  ;;  %v6234_v11 = vsel %vm1832_vm2, %v6197_v59, 0.0 }
  0x65   : > { %5611 = vmatprep.mubr.bf16.mxu0 %v5847_v12  ;;  %v6237_v12 = vsel %vm2349_vm4, %v6209_v0, 0.0  ;;  %vm2352_vm4 = vcmp.lt.s32.totalorder %v6194_v57, 6 }
  0x6c   : > { %5612 = vmatmul.mubr.bf16.gmra.mrb[8].mxu0 %v5848_v13  ;;  %v6239_v13 = vrot.slane %v1634_v56, %v3060_v1 }
  0x6d   : > { %5615 = vmatprep.mubr.bf16.mxu0 %v5849_v14  ;;  %v6242_v14 = vsel %vm1838_vm5, %v6197_v59, 0.0  ;;  %vm2869_vm5 = vcmp.lt.s32.totalorder %v6194_v57, 5 }
  0x6e   : > { %10145 = vst [vmem:[#allocation11_spill] sm:$0xff] %v6239_v13 }
  0x74   : > { %5616 = vmatmul.mubr.bf16.gmra.mrb[12].mxu0 %v5850_v15  ;;  %v6245_v15 = vrot.slane %v1634_v56, %v3577_v3 }
  0x75   : > { %5619 = vmatprep.mubr.bf16.mxu0 %v5851_v16  ;;  %v6248_v16 = vsel %vm1836_vm6, %v6197_v59, 0.0  ;;  %vm3386_vm6 = vcmp.lt.s32.totalorder %v6194_v57, 4  ;;  %v6374_v57 = vand.u32 7, %v817_v50 }
  0x76   : > { %10146 = vst [vmem:[#allocation12_spill] sm:$0xff] %v6245_v15  ;;  %v6335_v43 = vsel %vm3386_vm6, %v6245_v15, 0.0  ;;  %vm3390_vm6 = vcmp.lt.s32.totalorder %v6225_v7, 4 }
  0x7c   : > { %5620 = vmatmul.mubr.bf16.gmra.mrb[16].mxu0 %v5852_v17  ;;  %v6250_v17 = vand.u32 7, %v812_v6 }
  0x7d   : > { %5623 = vmatprep.mubr.bf16.mxu0 %v5853_v18  ;;  %v6255_v18 = vand.u32 7, %v810_v8  ;;  %v6402_v8 = vand.u32 7, %v820_v55 }
  0x7e   : > { %vm1842_vm1 = vcmp.lt.s32.totalorder %v6250_v17, 7 }
  0x7f   : > { %vm1840_vm2 = vcmp.lt.s32.totalorder %v6255_v18, 7 }
  0x80   : > { %v6307_v36 = vsel %vm1840_vm2, %v6197_v59, 0.0 }
  0x84   : > { %5624 = vmatmul.mubr.bf16.gmra.mrb[20].mxu0 %v5854_v19  ;;  %v6257_v19 = vand.u32 7, %v811_v9  ;;  %v6406_v9 = vand.u32 7, %v818_v58 }
  0x85   : > { %5627 = vmatprep.mubr.bf16.mxu0 %v5855_v20  ;;  %v6260_v20 = vsel %vm1837_vm7, %v6197_v59, 0.0  ;;  %vm2353_vm7 = vcmp.lt.s32.totalorder %v6203_v61, 6 }
  0x86   : > { %vm1841_vm3 = vcmp.lt.s32.totalorder %v6257_v19, 7  ;;  %v6338_v45 = vsel %vm2353_vm7, %v6209_v0, 0.0  ;;  %vm2357_vm7 = vcmp.lt.s32.totalorder %v6255_v18, 6 }
  0x87   : > { %v6310_v37 = vsel %vm1841_vm3, %v6197_v59, 0.0  ;;  %vm3389_vm3 = vcmp.lt.s32.totalorder %v6199_v60, 4 }
  0x8c   : > { %5628 = vmatmul.mubr.bf16.gmra.mrb[24].mxu0 %v5856_v21  ;;  %v6263_v21 = vsel %vm2866_vm8, %v6239_v13, 0.0  ;;  %vm2870_vm8 = vcmp.lt.s32.totalorder %v6203_v61, 5 }
  0x8d   : > { %5631 = vmatprep.mubr.bf16.mxu0 %v5857_v22  ;;  %v813_v22 = vadd.s32 88, %v6174_v44  ;;  %v6341_v46 = vsel %vm2870_vm8, %v6239_v13, 0.0  ;;  %vm2874_vm8 = vcmp.lt.s32.totalorder %v6255_v18, 5 }
  0x94   : > { %5632 = vmatmul.mubr.bf16.gmra.mrb[28].mxu0 %v5858_v23  ;;  %v6268_v23 = vsel %vm3383_vm9, %v6245_v15, 0.0  ;;  %vm3387_vm9 = vcmp.lt.s32.totalorder %v6203_v61, 4  ;;  %v819_v61 = vadd.s32 136, %v6174_v44 }
  0x95   : > { %5635 = vmatprep.mubr.bf16.mxu0 %v5859_v24  ;;  %v6274_v24 = vsel %vm1839_vm11, %v6197_v59, 0.0  ;;  %vm2354_vm11 = vcmp.lt.s32.totalorder %v6213_v2, 6  ;;  %v6347_v48 = vsel %vm3387_vm9, %v6245_v15, 0.0  ;;  %vm3391_vm9 = vcmp.lt.s32.totalorder %v6255_v18, 4 }
  0x96   : > { %v6350_v49 = vsel %vm2354_vm11, %v6209_v0, 0.0  ;;  %vm1847_vm11 = vcmp.lt.s32.totalorder %v6374_v57, 7  ;;  %v821_v18 = vadd.s32 152, %v6174_v44 }
  0x97   : > { %10147 = vst [vmem:[#allocation13_spill] sm:$0xff] %v6350_v49  ;;  %v6426_v50 = vsel %vm1847_vm11, %v6197_v59, 0.0 }
  0x98   : > { %10159 = vst [vmem:[#allocation25_spill] sm:$0xff] %v6426_v50  ;;  %v823_v50 = vadd.s32 168, %v6174_v44 }
  0x9c   : > { %5636 = vmatmul.mubr.bf16.gmra.mrb[32].mxu0 %v5860_v25  ;;  %v6278_v25 = vsel %vm2350_vm10, %v6209_v0, 0.0 }
  0x9d   : > { %5639 = vmatprep.mubr.bf16.mxu0 %v5861_v26  ;;  %v6281_v26 = vsel %vm2867_vm12, %v6239_v13, 0.0  ;;  %vm2871_vm12 = vcmp.lt.s32.totalorder %v6213_v2, 5 }
  0x9e   : > { %v6354_v51 = vsel %vm2871_vm12, %v6239_v13, 0.0  ;;  %vm2359_vm12 = vcmp.lt.s32.totalorder %v6250_v17, 6 }
  0x9f   : > { %10148 = vst [vmem:[#allocation14_spill] sm:$0xff] %v6354_v51 }
  0xa4   : > { %5640 = vmatmul.mubr.bf16.gmra.mrb[36].mxu0 %v5862_v27  ;;  %v6286_v27 = vsel %vm2351_vm13, %v6209_v0, 0.0  ;;  %vm2355_vm13 = vcmp.lt.s32.totalorder %v6199_v60, 6 }
  0xa5   : > { %5643 = vmatprep.mubr.bf16.mxu0 %v5863_v28  ;;  %v6290_v28 = vsel %vm3384_vm14, %v6245_v15, 0.0  ;;  %vm3388_vm14 = vcmp.lt.s32.totalorder %v6213_v2, 4  ;;  %v6360_v54 = vsel %vm2355_vm13, %v6209_v0, 0.0  ;;  %v6388_v2 = vsel %vm3389_vm3, %v6245_v15, 0.0 }
  0xa6   : > { %v6357_v52 = vsel %vm3388_vm14, %v6245_v15, 0.0  ;;  %10150 = vst [vmem:[#allocation16_spill] sm:$0xff] %v6360_v54  ;;  %10152 = vst [vmem:[#allocation18_spill] sm:$0xff] %v6388_v2  ;;  %vm2875_vm13 = vcmp.lt.s32.totalorder %v6257_v19, 5  ;;  %vm3392_vm14 = vcmp.lt.s32.totalorder %v6257_v19, 4 }
  0xa7   : > { %10149 = vst [vmem:[#allocation15_spill] sm:$0xff] %v6357_v52  ;;  %v6438_v58 = vsel %vm2875_vm13, %v6239_v13, 0.0 }
  0xa8   : > { %10162 = vst [vmem:[#allocation28_spill] sm:$0xff] %v6438_v58  ;;  %v822_v58 = vadd.s32 160, %v6174_v44 }
  0xac   : > { %5644 = vmatmul.mubr.bf16.gmra.mrb[40].mxu0 %v5864_v29  ;;  %v6293_v29 = vsel %vm2868_vm15, %v6239_v13, 0.0  ;;  %vm2872_vm15 = vcmp.lt.s32.totalorder %v6199_v60, 5 }
  0xad   : > { %5647 = vmatprep.mubr.bf16.mxu0 %v5865_v30  ;;  %v6296_v30 = vsel %vm3385_vm0, %v6245_v15, 0.0  ;;  %v6372_v56 = vsel %vm2872_vm15, %v6239_v13, 0.0  ;;  %vm2876_vm15 = vcmp.lt.s32.totalorder %v6250_v17, 5 }
  0xae   : > { %10151 = vst [vmem:[#allocation17_spill] sm:$0xff] %v6372_v56 }
  0xb4   : > { %5648 = vmatmul.mubr.bf16.gmra.mrb[44].mxu0 %v5866_v31  ;;  %v6298_v31 = vand.u32 7, %v813_v22  ;;  %v6408_v22 = vand.u32 7, %v819_v61  ;;  %v6444_v61 = vsel %vm2876_vm15, %v6239_v13, 0.0 }
  0xb5   : > { %5651 = vmatprep.mubr.bf16.mxu0 %v5867_v32  ;;  %v6301_v32 = vsel %vm1842_vm1, %v6197_v59, 0.0  ;;  %10164 = vst [vmem:[#allocation30_spill] sm:$0xff] %v6444_v61 }
  0xb6   : > { %vm1843_vm10 = vcmp.lt.s32.totalorder %v6298_v31, 7  ;;  %vm1849_vm3 = vcmp.lt.s32.totalorder %v6408_v22, 7 }
  0xb7   : > { %v6344_v47 = vsel %vm1843_vm10, %v6197_v59, 0.0  ;;  %vm2358_vm10 = vcmp.lt.s32.totalorder %v6257_v19, 6  ;;  %v6433_v19 = vsel %vm2359_vm12, %v6209_v0, 0.0  ;;  %v6462_v61 = vsel %vm1849_vm3, %v6197_v59, 0.0 }
  0xb8   : > { %v6430_v55 = vsel %vm2358_vm10, %v6209_v0, 0.0  ;;  %10161 = vst [vmem:[#allocation27_spill] sm:$0xff] %v6433_v19  ;;  %10168 = vst [vmem:[#allocation34_spill] sm:$0xff] %v6462_v61  ;;  %v6480_v61 = vand.u32 7, %v823_v50 }
  0xb9   : > { %10160 = vst [vmem:[#allocation26_spill] sm:$0xff] %v6430_v55  ;;  %v6450_v55 = vand.u32 7, %v821_v18 }
  0xbb   : > { %vm1851_vm10 = vcmp.lt.s32.totalorder %v6450_v55, 7 }
  0xbc   : > { %5652 = vmatmul.mubr.bf16.gmra.mrb[48].mxu0 %v5868_v33  ;;  %v816_v33 = vadd.s32 112, %v6174_v44 }
  0xbd   : > { %5655 = vmatprep.mubr.bf16.mxu0 %v5869_v34  ;;  %v814_v34 = vadd.s32 96, %v6174_v44 }
  0xc4   : > { %5656 = vmatmul.mubr.bf16.gmra.mrb[52].mxu0 %v5870_v38  ;;  %v6313_v38 = vsel %vm2352_vm4, %v6209_v0, 0.0  ;;  %vm2356_vm4 = vcmp.lt.s32.totalorder %v6225_v7, 6 }
  0xc5   : > { %5659 = vmatprep.mubr.bf16.mxu0 %v5871_v39  ;;  %v6324_v39 = vand.u32 7, %v816_v33  ;;  %v6391_v3 = vsel %vm2356_vm4, %v6209_v0, 0.0  ;;  %v6412_v33 = vsel %vm2357_vm7, %v6209_v0, 0.0  ;;  %vm2360_vm4 = vcmp.lt.s32.totalorder %v6298_v31, 6 }
  0xc6   : > { %10153 = vst [vmem:[#allocation19_spill] sm:$0xff] %v6391_v3  ;;  %10156 = vst [vmem:[#allocation22_spill] sm:$0xff] %v6412_v33  ;;  %v6467_v18 = vsel %vm2360_vm4, %v6209_v0, 0.0  ;;  %vm2364_vm4 = vcmp.lt.s32.totalorder %v6374_v57, 6 }
  0xc7   : > { %vm1846_vm0 = vcmp.lt.s32.totalorder %v6324_v39, 7  ;;  %10169 = vst [vmem:[#allocation35_spill] sm:$0xff] %v6467_v18  ;;  %vm2363_vm13 = vcmp.lt.s32.totalorder %v6324_v39, 6  ;;  %vm2880_vm15 = vcmp.lt.s32.totalorder %v6324_v39, 5  ;;  %vm3397_vm3 = vcmp.lt.s32.totalorder %v6324_v39, 4 }
  0xc8   : > { %v6379_v62 = vsel %vm1846_vm0, %v6197_v59, 0.0  ;;  %vm3393_vm0 = vcmp.lt.s32.totalorder %v6250_v17, 4  ;;  %v6441_v17 = vsel %vm3392_vm14, %v6245_v15, 0.0 }
  0xc9   : > { %10163 = vst [vmem:[#allocation29_spill] sm:$0xff] %v6441_v17  ;;  %v6447_v53 = vsel %vm3393_vm0, %v6245_v15, 0.0 }
  0xca   : > { %10165 = vst [vmem:[#allocation31_spill] sm:$0xff] %v6447_v53 }
  0xcc   : > { %5660 = vmatmul.mubr.bf16.gmra.mrb[56].mxu0 %v5872_v40  ;;  %v6326_v40 = vand.u32 7, %v814_v34  ;;  %v6418_v34 = vsel %vm2874_vm8, %v6239_v13, 0.0 }
  0xcd   : > { %5663 = vmatprep.mubr.bf16.mxu0 %v5873_v41  ;;  %v6328_v41 = vand.u32 7, %v815_v35  ;;  %10157 = vst [vmem:[#allocation23_spill] sm:$0xff] %v6418_v34  ;;  %v6421_v35 = vsel %vm3391_vm9, %v6245_v15, 0.0 }
  0xce   : > { %vm1844_vm1 = vcmp.lt.s32.totalorder %v6326_v40, 7  ;;  %10158 = vst [vmem:[#allocation24_spill] sm:$0xff] %v6421_v35  ;;  %v824_v35 = vadd.s32 176, %v6174_v44  ;;  %vm2361_vm7 = vcmp.lt.s32.totalorder %v6326_v40, 6  ;;  %vm2878_vm8 = vcmp.lt.s32.totalorder %v6326_v40, 5 }
  0xcf   : > { %vm1845_vm2 = vcmp.lt.s32.totalorder %v6328_v41, 7  ;;  %v6382_v60 = vsel %vm1844_vm1, %v6197_v59, 0.0  ;;  %vm1850_vm1 = vcmp.lt.s32.totalorder %v6402_v8, 7  ;;  %vm3395_vm9 = vcmp.lt.s32.totalorder %v6326_v40, 4 }
  0xd0   : > { %v6385_v1 = vsel %vm1845_vm2, %v6197_v59, 0.0  ;;  %vm1848_vm2 = vcmp.lt.s32.totalorder %v6406_v9, 7  ;;  %v6453_v19 = vsel %vm1850_vm1, %v6197_v59, 0.0  ;;  %vm2362_vm11 = vcmp.lt.s32.totalorder %v6328_v41, 6 }
  0xd1   : > { %10166 = vst [vmem:[#allocation32_spill] sm:$0xff] %v6453_v19  ;;  %v6459_v17 = vsel %vm1848_vm2, %v6197_v59, 0.0  ;;  %vm2879_vm12 = vcmp.lt.s32.totalorder %v6328_v41, 5  ;;  %v6476_v53 = vand.u32 7, %v824_v35  ;;  %vm3396_vm14 = vcmp.lt.s32.totalorder %v6328_v41, 4 }
  0xd2   : > { %10167 = vst [vmem:[#allocation33_spill] sm:$0xff] %v6459_v17  ;;  %v6490_v17 = vsel %vm2361_vm7, %v6209_v0, 0.0  ;;  %v6493_v19 = vsel %vm2878_vm8, %v6239_v13, 0.0  ;;  %v6496_v35 = vsel %vm3395_vm9, %v6245_v15, 0.0  ;;  %v6499_v50 = vsel %vm2362_vm11, %v6209_v0, 0.0 }
  0xd3   : > { %10172 = vst [vmem:[#allocation38_spill] sm:$0xff] %v6490_v17  ;;  %10173 = vst [vmem:[#allocation39_spill] sm:$0xff] %v6493_v19  ;;  %v6502_v41 = vsel %vm2363_vm13, %v6209_v0, 0.0  ;;  %v6511_v17 = vsel %vm2879_vm12, %v6239_v13, 0.0  ;;  %v6514_v19 = vsel %vm3396_vm14, %v6245_v15, 0.0  ;;  %vm1854_vm0 = vcmp.lt.s32.totalorder %v6476_v53, 7 }
  0xd4   : > { %5664 = vmatmul.mubr.bf16.gmra.mrb[60].mxu0 %v5874_v42  ;;  %v6332_v42 = vsel %vm2869_vm5, %v6239_v13, 0.0  ;;  %vm2873_vm5 = vcmp.lt.s32.totalorder %v6225_v7, 5  ;;  %v6397_v7 = vsel %vm3390_vm6, %v6245_v15, 0.0  ;;  %vm3394_vm6 = vcmp.lt.s32.totalorder %v6298_v31, 4  ;;  %10174 = vst [vmem:[#allocation40_spill] sm:$0xff] %v6496_v35  ;;  %10175 = vst [vmem:[#allocation41_spill] sm:$0xff] %v6499_v50 }
  0xd5   : > { %v6394_v6 = vsel %vm2873_vm5, %v6239_v13, 0.0  ;;  %10155 = vst [vmem:[#allocation21_spill] sm:$0xff] %v6397_v7  ;;  %vm2877_vm5 = vcmp.lt.s32.totalorder %v6298_v31, 5  ;;  %v6478_v31 = vand.u32 7, %v822_v58  ;;  %v6487_v40 = vsel %vm3394_vm6, %v6245_v15, 0.0  ;;  %10176 = vst [vmem:[#allocation42_spill] sm:$0xff] %v6502_v41 }
  0xd6   : > { %10154 = vst [vmem:[#allocation20_spill] sm:$0xff] %v6394_v6  ;;  %v6484_v18 = vsel %vm2877_vm5, %v6239_v13, 0.0  ;;  %10171 = vst [vmem:[#allocation37_spill] sm:$0xff] %v6487_v40  ;;  %v825_v58 = vadd.s32 184, %v6174_v44  ;;  %v6508_v40 = vsel %vm1851_vm10, %v6197_v59, 0.0  ;;  %vm1853_vm2 = vcmp.lt.s32.totalorder %v6480_v61, 7 }
  0xd7   : > { %10170 = vst [vmem:[#allocation36_spill] sm:$0xff] %v6484_v18  ;;  %10177 = vst [vmem:[#allocation43_spill] sm:$0xff] %v6508_v40  ;;  %vm1852_vm1 = vcmp.lt.s32.totalorder %v6478_v31, 7  ;;  %vm2881_vm5 = vcmp.lt.s32.totalorder %v6374_v57, 5  ;;  %vm3398_vm6 = vcmp.lt.s32.totalorder %v6374_v57, 4  ;;  %v828_v41 = vadd.s32 208, %v6174_v44 }
  0xd8   : > { %10178 = vst [vmem:[#allocation44_spill] sm:$0xff] %v6511_v17  ;;  %10179 = vst [vmem:[#allocation45_spill] sm:$0xff] %v6514_v19  ;;  %v6526_v19 = vsel %vm2880_vm15, %v6239_v13, 0.0  ;;  %v6528_v17 = vand.u32 7, %v825_v58  ;;  %v826_v50 = vadd.s32 192, %v6174_v44  ;;  %v827_v35 = vadd.s32 200, %v6174_v44 }
  0xd9   : > { %10180 = vst [vmem:[#allocation46_spill] sm:$0xff] %v6526_v19  ;;  %v6533_v40 = vsel %vm1854_vm0, %v6197_v59, 0.0  ;;  %v6536_v39 = vsel %vm1852_vm1, %v6197_v59, 0.0  ;;  %v6539_v18 = vsel %vm1853_vm2, %v6197_v59, 0.0  ;;  %v6542_v57 = vsel %vm3397_vm3, %v6245_v15, 0.0 }
  0xda   : > { %10181 = vst [vmem:[#allocation47_spill] sm:$0xff] %v6533_v40  ;;  %10182 = vst [vmem:[#allocation48_spill] sm:$0xff] %v6536_v39  ;;  %v6545_v19 = vsel %vm2364_vm4, %v6209_v0, 0.0  ;;  %v6548_v58 = vsel %vm2881_vm5, %v6239_v13, 0.0  ;;  %v6551_v34 = vsel %vm3398_vm6, %v6245_v15, 0.0  ;;  %vm2365_vm7 = vcmp.lt.s32.totalorder %v6406_v9, 6 }
  0xdb   : > { %10183 = vst [vmem:[#allocation49_spill] sm:$0xff] %v6539_v18  ;;  %10184 = vst [vmem:[#allocation50_spill] sm:$0xff] %v6542_v57  ;;  %vm2882_vm8 = vcmp.lt.s32.totalorder %v6406_v9, 5  ;;  %vm3399_vm9 = vcmp.lt.s32.totalorder %v6406_v9, 4  ;;  %v6556_v39 = vand.u32 7, %v828_v41  ;;  %vm2366_vm10 = vcmp.lt.s32.totalorder %v6408_v22, 6 }
  0xdc   : > { %10185 = vst [vmem:[#allocation51_spill] sm:$0xff] %v6545_v19  ;;  %10186 = vst [vmem:[#allocation52_spill] sm:$0xff] %v6548_v58  ;;  %vm1855_vm11 = vcmp.lt.s32.totalorder %v6528_v17, 7  ;;  %v6560_v57 = vand.u32 7, %v826_v50  ;;  %v6562_v19 = vand.u32 7, %v827_v35  ;;  %vm2367_vm12 = vcmp.lt.s32.totalorder %v6402_v8, 6 }
  0xdd   : > { %10187 = vst [vmem:[#allocation53_spill] sm:$0xff] %v6551_v34  ;;  %10188 = vst [vmem:[#allocation54_spill] sm:$0xff] %v6556_v39  ;;  %v6566_v34 = vsel %vm2365_vm7, %v6209_v0, 0.0  ;;  %vm2883_vm13 = vcmp.lt.s32.totalorder %v6408_v22, 5  ;;  %vm3400_vm14 = vcmp.lt.s32.totalorder %v6408_v22, 4  ;;  %v829_v9 = vadd.s32 216, %v6174_v44 }
  0xde   : > { %10189 = vst [vmem:[#allocation55_spill] sm:$0xff] %v6562_v19  ;;  %10190 = vst [vmem:[#allocation56_spill] sm:$0xff] %v6566_v34  ;;  %v6572_v41 = vsel %vm2882_vm8, %v6239_v13, 0.0  ;;  %v6575_v58 = vsel %vm3399_vm9, %v6245_v15, 0.0  ;;  %vm2884_vm15 = vcmp.lt.s32.totalorder %v6402_v8, 5  ;;  %vm3401_vm0 = vcmp.lt.s32.totalorder %v6402_v8, 4 }
  0xdf   : > { %10191 = vst [vmem:[#allocation57_spill] sm:$0xff] %v6572_v41  ;;  %10192 = vst [vmem:[#allocation58_spill] sm:$0xff] %v6575_v58  ;;  %v6580_v35 = vsel %vm1855_vm11, %v6197_v59, 0.0  ;;  %vm1858_vm1 = vcmp.lt.s32.totalorder %v6556_v39, 7  ;;  %v6584_v50 = vsel %vm2366_vm10, %v6209_v0, 0.0  ;;  %v6587_v22 = vsel %vm2367_vm12, %v6209_v0, 0.0 }
  0xe0   : > { %10193 = vst [vmem:[#allocation59_spill] sm:$0xff] %v6580_v35  ;;  %10194 = vst [vmem:[#allocation60_spill] sm:$0xff] %v6584_v50  ;;  %vm1856_vm2 = vcmp.lt.s32.totalorder %v6560_v57, 7  ;;  %vm1857_vm3 = vcmp.lt.s32.totalorder %v6562_v19, 7  ;;  %v6592_v58 = vsel %vm2883_vm13, %v6239_v13, 0.0  ;;  %v6595_v8 = vsel %vm3400_vm14, %v6245_v15, 0.0 }
  0xe1   : > { %10195 = vst [vmem:[#allocation61_spill] sm:$0xff] %v6587_v22  ;;  %10196 = vst [vmem:[#allocation62_spill] sm:$0xff] %v6592_v58  ;;  %v6598_v35 = vsel %vm2884_vm15, %v6239_v13, 0.0  ;;  %v6601_v39 = vsel %vm3401_vm0, %v6245_v15, 0.0  ;;  %vm2368_vm4 = vcmp.lt.s32.totalorder %v6450_v55, 6  ;;  %v6604_v50 = vand.u32 7, %v829_v9 }
  0xe2   : > { %10197 = vst [vmem:[#allocation63_spill] sm:$0xff] %v6595_v8  ;;  %10198 = vst [vmem:[#allocation64_spill] sm:$0xff] %v6598_v35  ;;  %v6607_v22 = vsel %vm1858_vm1, %v6197_v59, 0.0  ;;  %v832_v41 = vadd.s32 240, %v6174_v44  ;;  %v830_v58 = vadd.s32 224, %v6174_v44  ;;  %v831_v34 = vadd.s32 232, %v6174_v44 }
  0xe3   : > { %10199 = vst [vmem:[#allocation65_spill] sm:$0xff] %v6601_v39  ;;  %10200 = vst [vmem:[#allocation66_spill] sm:$0xff] %v6604_v50  ;;  %v6613_v8 = vsel %vm1856_vm2, %v6197_v59, 0.0  ;;  %v6616_v35 = vsel %vm1857_vm3, %v6197_v59, 0.0  ;;  %vm2885_vm5 = vcmp.lt.s32.totalorder %v6450_v55, 5  ;;  %vm3402_vm6 = vcmp.lt.s32.totalorder %v6450_v55, 4 }
  0xe4   : > { %10201 = vst [vmem:[#allocation67_spill] sm:$0xff] %v6607_v22  ;;  %10202 = vst [vmem:[#allocation68_spill] sm:$0xff] %v6613_v8  ;;  %v6621_v9 = vsel %vm2368_vm4, %v6209_v0, 0.0  ;;  %vm2369_vm7 = vcmp.lt.s32.totalorder %v6478_v31, 6  ;;  %vm2886_vm8 = vcmp.lt.s32.totalorder %v6478_v31, 5  ;;  %vm3403_vm9 = vcmp.lt.s32.totalorder %v6478_v31, 4 }
  0xe5   : > { %10203 = vst [vmem:[#allocation69_spill] sm:$0xff] %v6616_v35  ;;  %10204 = vst [vmem:[#allocation70_spill] sm:$0xff] %v6621_v9  ;;  %vm1859_vm10 = vcmp.lt.s32.totalorder %v6604_v50, 7  ;;  %vm2370_vm11 = vcmp.lt.s32.totalorder %v6480_v61, 6  ;;  %vm2887_vm12 = vcmp.lt.s32.totalorder %v6480_v61, 5  ;;  %vm2371_vm13 = vcmp.lt.s32.totalorder %v6476_v53, 6 }
  0xe6   : > { %v6630_v39 = vand.u32 7, %v832_v41  ;;  %v6632_v55 = vand.u32 7, %v830_v58  ;;  %v6634_v35 = vand.u32 7, %v831_v34  ;;  %vm3404_vm14 = vcmp.lt.s32.totalorder %v6480_v61, 4 }
  0xe7   : > { %v6638_v9 = vsel %vm2885_vm5, %v6239_v13, 0.0  ;;  %v6641_v31 = vsel %vm3402_vm6, %v6245_v15, 0.0  ;;  %v6644_v50 = vsel %vm2369_vm7, %v6209_v0, 0.0  ;;  %v6647_v8 = vsel %vm2886_vm8, %v6239_v13, 0.0 }
  0xe8   : > { %10205 = vst [vmem:[#allocation71_spill] sm:$0xff] %v6630_v39  ;;  %10206 = vst [vmem:[#allocation72_spill] sm:$0xff] %v6632_v55  ;;  %v6650_v41 = vsel %vm1859_vm10, %v6197_v59, 0.0  ;;  %v6653_v34 = vsel %vm3403_vm9, %v6245_v15, 0.0  ;;  %v6656_v61 = vsel %vm2370_vm11, %v6209_v0, 0.0  ;;  %v6659_v58 = vsel %vm2371_vm13, %v6209_v0, 0.0 }
  0xe9   : > { %10207 = vst [vmem:[#allocation73_spill] sm:$0xff] %v6634_v35  ;;  %10208 = vst [vmem:[#allocation74_spill] sm:$0xff] %v6638_v9  ;;  %vm1767_vm15 = vcmp.lt.s32.totalorder %v6174_v44, 7  ;;  %vm2888_vm0 = vcmp.lt.s32.totalorder %v6476_v53, 5  ;;  %vm3405_vm1 = vcmp.lt.s32.totalorder %v6476_v53, 4  ;;  %vm2284_vm2 = vcmp.lt.s32.totalorder %v6174_v44, 6 }
  0xea   : > { %10209 = vst [vmem:[#allocation75_spill] sm:$0xff] %v6641_v31  ;;  %10210 = vst [vmem:[#allocation76_spill] sm:$0xff] %v6644_v50  ;;  %v6663_v31 = vsel %vm2887_vm12, %v6239_v13, 0.0  ;;  %v6666_v50 = vsel %vm3404_vm14, %v6245_v15, 0.0  ;;  %vm2801_vm3 = vcmp.lt.s32.totalorder %v6174_v44, 5  ;;  %vm1862_vm4 = vcmp.lt.s32.totalorder %v6630_v39, 7 }
  0xeb   : > { %10211 = vst [vmem:[#allocation77_spill] sm:$0xff] %v6647_v8  ;;  %10212 = vst [vmem:[#allocation78_spill] sm:$0xff] %v6650_v41  ;;  %vm1860_vm5 = vcmp.lt.s32.totalorder %v6632_v55, 7  ;;  %vm1861_vm6 = vcmp.lt.s32.totalorder %v6634_v35, 7  ;;  %vm2372_vm7 = vcmp.lt.s32.totalorder %v6528_v17, 6  ;;  %vm2889_vm8 = vcmp.lt.s32.totalorder %v6528_v17, 5 }
  0xec   : > { %10213 = vst [vmem:[#allocation79_spill] sm:$0xff] %v6653_v34  ;;  %10214 = vst [vmem:[#allocation80_spill] sm:$0xff] %v6656_v61  ;;  %vm3406_vm9 = vcmp.lt.s32.totalorder %v6528_v17, 4  ;;  %vm2373_vm10 = vcmp.lt.s32.totalorder %v6560_v57, 6  ;;  %vm2890_vm11 = vcmp.lt.s32.totalorder %v6560_v57, 5  ;;  %vm3407_vm12 = vcmp.lt.s32.totalorder %v6560_v57, 4 }
  0xed   : > { %10215 = vst [vmem:[#allocation81_spill] sm:$0xff] %v6659_v58  ;;  %10216 = vst [vmem:[#allocation82_spill] sm:$0xff] %v6663_v31  ;;  %v833_v58 = vadd.s32 248, %v6174_v44  ;;  %vm2374_vm13 = vcmp.lt.s32.totalorder %v6562_v19, 6  ;;  %v6687_v39 = vsel %vm1862_vm4, %v6197_v59, 0.0  ;;  %v6690_v35 = vsel %vm1860_vm5, %v6197_v59, 0.0 }
  0xee   : > { %10217 = vst [vmem:[#allocation83_spill] sm:$0xff] %v6666_v50  ;;  %v6681_v50 = vsel %vm2888_vm0, %v6239_v13, 0.0  ;;  %10219 = vst [vmem:[#allocation85_spill] sm:$0xff] %v6687_v39  ;;  %v6693_v17 = vsel %vm1861_vm6, %v6197_v59, 0.0  ;;  %v6698_v55 = vsel %vm3405_vm1, %v6245_v15, 0.0  ;;  %v6704_v57 = vsel %vm2889_vm8, %v6239_v13, 0.0 }
  0xef   : > { %10218 = vst [vmem:[#allocation84_spill] sm:$0xff] %v6681_v50  ;;  %10220 = vst [vmem:[#allocation86_spill] sm:$0xff] %v6690_v35  ;;  %v6701_v50 = vsel %vm2372_vm7, %v6209_v0, 0.0  ;;  %v6707_v19 = vsel %vm3406_vm9, %v6245_v15, 0.0  ;;  %v6710_v31 = vsel %vm2373_vm10, %v6209_v0, 0.0  ;;  %v6714_v59 = vand.u32 7, %v833_v58 }
  0xf0   : > { %10221 = vst [vmem:[#allocation87_spill] sm:$0xff] %v6693_v17  ;;  %10222 = vst [vmem:[#allocation88_spill] sm:$0xff] %v6698_v55  ;;  %v6717_v53 = vsel %vm2890_vm11, %v6239_v13, 0.0  ;;  %v6720_v55 = vsel %vm3407_vm12, %v6245_v15, 0.0  ;;  %vm3318_vm14 = vcmp.lt.s32.totalorder %v6174_v44, 4  ;;  %vm3778_vm0 = vcmask 130048  }
  0xf1   : > { %10223 = vst [vmem:[#allocation89_spill] sm:$0xff] %v6701_v50  ;;  %10224 = vst [vmem:[#allocation90_spill] sm:$0xff] %v6704_v57  ;;  %v6723_v50 = vsel %vm2374_vm13, %v6209_v0, 0.0 }
  0xf2   : > { %10225 = vst [vmem:[#allocation91_spill] sm:$0xff] %v6707_v19  ;;  %10226 = vst [vmem:[#allocation92_spill] sm:$0xff] %v6710_v31 }
  0xf3   : > { %10227 = vst [vmem:[#allocation93_spill] sm:$0xff] %v6714_v59  ;;  %10228 = vst [vmem:[#allocation94_spill] sm:$0xff] %v6717_v53 }
  0xf4   : > { %10229 = vst [vmem:[#allocation95_spill] sm:$0xff] %v6720_v55  ;;  %10230 = vst [vmem:[#allocation96_spill] sm:$0xff] %v6723_v50 }
 0x12f   : > { %v6712_v61 = vpop.f32.mrb[0].mxu0 }
 0x130   : > { %v6727_v57 = vmul.f32 %v6712_v61, %v6207_v63  ;;  %v1705_v19 = vrot.slane %v6712_v61, 1  ;;  %v2222_v31 = vrot.slane %v6712_v61, 2  ;;  %v6732_v17 = vpop.f32.mrb[1].mxu0  ;;  %v10233_v18 = vrot.slane %v6712_v61, 3 }
 0x131   : > { %10231 = vst [vmem:[#allocation97_spill] sm:$0xff] %v6732_v17  ;;  %v1639_v15 = vmul.f32 %v6207_v63, %v6732_v17  ;;  %v6739_v55 = vpop.f32.mrb[2].mxu0  ;;  %v10235_v33 = vrot.slane %v6732_v17, 2  ;;  %v10238_v3 = vrot.slane %v6732_v17, 3 }
 0x132   : > { %v6745_v58 = vmul.f32 %v6739_v55, %v6207_v63  ;;  %v1706_v39 = vrot.slane %v6739_v55, 1  ;;  %v6748_v13 = vpop.f32.mrb[3].mxu0  ;;  %v2223_v59 = vrot.slane %v6739_v55, 2  ;;  %v10232_v22 = vrot.slane %v6739_v55, 3 }
 0x133   : > { %v1640_v34 = vmul.f32 %v6207_v63, %v6748_v13  ;;  %v1704_v53 = vrot.slane %v6748_v13, 1  ;;  %v2221_v41 = vrot.slane %v6748_v13, 2 }
 0x134   : > { %v1828_v35 = vsel %vm1767_vm15, %v1705_v19, %v1706_v39  ;;  %v6765_v0 = vsel %vm2284_vm2, %v2222_v31, %v2223_v59  ;;  %v6774_v40 = vsel %vm2801_vm3, %v10233_v18, %v10232_v22 }
 0x135   : > { %v6761_v9 = vmul.f32 %v6217_v4, %v1828_v35  ;;  %v1829_v8 = vsel %vm1767_vm15, %v1704_v53, %v1705_v19  ;;  %v6780_v4 = vsel %vm2284_vm2, %v2221_v41, %v2222_v31  ;;  %v10234_v35 = vrot.slane %v6732_v17, 1 }
 0x136   : > { %v2347_v7 = vsel %vm2284_vm2, %v10235_v33, %v2221_v41  ;;  %v2093_v18 = vmul.f32 %v6220_v5, %v1829_v8  ;;  %v10237_v31 = vrot.slane %v6748_v13, 3 }
 0x137   : > { %v1830_v50 = vsel %vm1767_vm15, %v10234_v35, %v1704_v53  ;;  %v6791_v22 = vpop.f32.mrb[4].mxu0  ;;  %v2609_v6 = vmul.f32 %v6237_v12, %v2347_v7 }
 0x138   : > { %10236 = vst [vmem:[#allocation98_spill] sm:$0xff] %v6791_v22  ;;  %v2092_v19 = vmul.f32 %v6234_v11, %v1830_v50  ;;  %v2864_v53 = vsel %vm2801_vm3, %v10238_v3, %v10237_v31  ;;  %v6803_v35 = vmul.f32 %v6791_v22, %v6207_v63  ;;  %v1709_v33 = vrot.slane %v6791_v22, 1  ;;  %v6808_v11 = vpop.f32.mrb[5].mxu0 }
 0x139   : > { %v2226_v5 = vrot.slane %v6791_v22, 2  ;;  %v6811_v12 = vadd.f32 %v2093_v18, %v1640_v34  ;;  %v6816_v3 = vmul.f32 %v6207_v63, %v6808_v11  ;;  %v1707_v50 = vrot.slane %v6808_v11, 1  ;;  %v6819_v41 = vpop.f32.mrb[6].mxu0 }
 0x13a   : > { %10239 = vst [vmem:[#allocation99_spill] sm:$0xff] %v6803_v35  ;;  %10240 = vst [vmem:[#allocation100_spill] sm:$0xff] %v6819_v41  ;;  %v2224_v31 = vrot.slane %v6808_v11, 2  ;;  %v6826_v34 = vmul.f32 %v6819_v41, %v6207_v63  ;;  %v6828_v18 = vpop.f32.mrb[7].mxu0  ;;  %v1710_v56 = vrot.slane %v6819_v41, 1  ;;  %v2227_v54 = vrot.slane %v6819_v41, 2 }
 0x13b   : > { %v1827_v7 = vsel %vm1767_vm15, %v1706_v39, %v1707_v50  ;;  %v1708_v52 = vrot.slane %v6828_v18, 1  ;;  %v2156_v41 = vadd.f32 %v2092_v19, %v1639_v15 }
 0x13c   : > { %10241 = vst [vmem:[#allocation101_spill] sm:$0xff] %v6826_v34  ;;  %v6836_v51 = vmul.f32 %v6230_v10, %v1827_v7  ;;  %v6840_v2 = vsel %vm2284_vm2, %v2223_v59, %v2224_v31  ;;  %v1644_v34 = vmul.f32 %v6207_v63, %v6828_v18  ;;  %v1824_v39 = vsel %vm1767_vm15, %v1709_v33, %v1710_v56 }
 0x13d   : > { %v6849_v35 = vsel %vm2284_vm2, %v2226_v5, %v2227_v54  ;;  %v2225_v10 = vrot.slane %v6828_v18, 2  ;;  %v6854_v7 = vmul.f32 %v6242_v14, %v1824_v39  ;;  %v1825_v22 = vsel %vm1767_vm15, %v1708_v52, %v1709_v33 }
 0x13e   : > { %10242 = vst [vmem:[#allocation102_spill] sm:$0xff] %v6849_v35  ;;  %v1826_v49 = vsel %vm1767_vm15, %v1707_v50, %v1708_v52  ;;  %v2097_v15 = vmul.f32 %v6260_v20, %v1825_v22 }
 0x13f   : > { %10243 = vst [vmem:[#allocation103_spill] sm:$0xff] %v6854_v7  ;;  %v6864_v35 = vsel %vm2284_vm2, %v2225_v10, %v2226_v5  ;;  %v6868_v14 = vsel %vm2284_vm2, %v2224_v31, %v2225_v10  ;;  %v6870_v39 = vpop.f32.mrb[8].mxu0  ;;  %v6873_v8 = vmul.f32 %v6248_v16, %v1826_v49  ;;  %v2673_v7 = vadd.f32 %v2609_v6, %v2156_v41 }
 0x140   : > { %10244 = vst [vmem:[#allocation104_spill] sm:$0xff] %v6870_v39  ;;  %v6878_v19 = vmul.f32 %v6870_v39, %v6207_v63  ;;  %v1713_v52 = vrot.slane %v6870_v39, 1  ;;  %v6881_v33 = vpop.f32.mrb[9].mxu0  ;;  %v2230_v5 = vrot.slane %v6870_v39, 2  ;;  %v6892_v20 = vadd.f32 %v2097_v15, %v1644_v34 }
 0x141   : > { %v6888_v16 = vmul.f32 %v6207_v63, %v6881_v33  ;;  %v6890_v49 = vpop.f32.mrb[10].mxu0  ;;  %v1711_v22 = vrot.slane %v6881_v33, 1  ;;  %v2228_v10 = vrot.slane %v6881_v33, 2  ;;  %v3126_v31 = vmul.f32 %v6263_v21, %v2864_v53 }
 0x142   : > { %10245 = vst [vmem:[#allocation105_spill] sm:$0xff] %v6878_v19  ;;  %10247 = vst [vmem:[#allocation107_spill] sm:$0xff] %v6892_v20  ;;  %v6897_v19 = vpop.f32.mrb[11].mxu0  ;;  %v10248_v39 = vrot.slane %v6748_v13, 4  ;;  %v6916_v6 = vmul.f32 %v6890_v49, %v6207_v63  ;;  %v1714_v41 = vrot.slane %v6890_v49, 1 }
 0x143   : > { %10246 = vst [vmem:[#allocation106_spill] sm:$0xff] %v6888_v16  ;;  %v10249_v16 = vrot.slane %v6732_v17, 4  ;;  %v1823_v15 = vsel %vm1767_vm15, %v1710_v56, %v1711_v22  ;;  %v6911_v59 = vsel %vm2284_vm2, %v2227_v54, %v2228_v10  ;;  %v3190_v53 = vadd.f32 %v3126_v31, %v2673_v7 }
 0x144   : > { %v6919_v21 = vmul.f32 %v6274_v24, %v1823_v15  ;;  %v2610_v54 = vmul.f32 %v6278_v25, %v6780_v4  ;;  %v1820_v7 = vsel %vm1767_vm15, %v1713_v52, %v1714_v41  ;;  %v1648_v56 = vmul.f32 %v6207_v63, %v6897_v19 }
 0x145   : > { %v3381_v34 = vsel %vm3318_vm14, %v10249_v16, %v10248_v39  ;;  %v2231_v39 = vrot.slane %v6890_v49, 2  ;;  %v6947_v16 = vmul.f32 %v6301_v32, %v1820_v7  ;;  %v1712_v32 = vrot.slane %v6897_v19, 1 }
 0x146   : > { %v3643_v20 = vmul.f32 %v6268_v23, %v3381_v34  ;;  %v10250_v23 = vrot.slane %v6712_v61, 3  ;;  %v10251_v34 = vrot.slane %v6748_v13, 3  ;;  %v10070_v7 = vrot.slane %v6897_v19, 4 }
 0x147   : > { %v6941_v31 = vsel %vm2284_vm2, %v2230_v5, %v2231_v39  ;;  %v6944_v4 = vpop.f32.mrb[12].mxu0 }
 0x148   : > { %v2863_v24 = vsel %vm2801_vm3, %v10251_v34, %v10250_v23  ;;  %v3707_v15 = vadd.f32 %v3643_v20, %v3190_v53  ;;  %v2674_v20 = vadd.f32 %v2610_v54, %v6811_v12  ;;  %v10252_v53 = vrot.slane %v6712_v61, 4  ;;  %v6958_v50 = vpop.f32.mrb[13].mxu0 }
 0x149   : > { %v3127_v25 = vmul.f32 %v6281_v26, %v2863_v24  ;;  %v10253_v23 = vrot.slane %v6748_v13, 4  ;;  %v2229_v12 = vrot.slane %v6897_v19, 2  ;;  %v6965_v24 = vpop.f32.mrb[14].mxu0 }
 0x14a   : > { %5671 = vmatprep.mubr.msk.f32.mxu1 %vm3778_vm0, %v3707_v15  ;;  %v6972_v15 = vpop.f32.mrb[15].mxu0 }
 0x14b   : > { %v3380_v34 = vsel %vm3318_vm14, %v10253_v23, %v10252_v53  ;;  %v3191_v13 = vadd.f32 %v3127_v25, %v2674_v20  ;;  %v2158_v53 = vadd.f32 %v6761_v9, %v6727_v57  ;;  %v2611_v23 = vmul.f32 %v6286_v27, %v6765_v0 }
 0x14c   : > { %v3644_v26 = vmul.f32 %v6290_v28, %v3380_v34  ;;  %v1821_v28 = vsel %vm1767_vm15, %v1712_v32, %v1713_v52  ;;  %v1822_v34 = vsel %vm1767_vm15, %v1711_v22, %v1712_v32  ;;  %v6980_v54 = vsel %vm2284_vm2, %v2229_v12, %v2230_v5 }
 0x14d   : > { %v6984_v25 = vsel %vm2284_vm2, %v2228_v10, %v2229_v12  ;;  %v6987_v57 = vmul.f32 %v6307_v36, %v1822_v34  ;;  %v2101_v0 = vmul.f32 %v6310_v37, %v1821_v28  ;;  %v2675_v27 = vadd.f32 %v2611_v23, %v2158_v53 }
 0x14e   : > { %v3708_v9 = vadd.f32 %v3644_v26, %v3191_v13  ;;  %v3128_v52 = vmul.f32 %v6293_v29, %v6774_v40  ;;  %v10254_v22 = vrot.slane %v6739_v55, 4  ;;  %v10255_v20 = vrot.slane %v6712_v61, 4 }
 0x14f   : > { %v2159_v10 = vadd.f32 %v6836_v51, %v6745_v58  ;;  %v2612_v36 = vmul.f32 %v6313_v38, %v6840_v2  ;;  %v7003_v37 = vadd.f32 %v2101_v0, %v1648_v56  ;;  %v10256_v29 = vrot.slane %v6808_v11, 3  ;;  %v7020_v12 = vpop.f32.mrb[16].mxu0 }
 0x150   : > { %v3379_v5 = vsel %vm3318_vm14, %v10255_v20, %v10254_v22  ;;  %5672 = vmatmul.mubr.msk.f32.vlgmr.msra.gmra.mrb[0].mxu1 %vm3778_vm0, %v3708_v9  ;;  %v10257_v40 = vrot.slane %v6739_v55, 3  ;;  %v10258_v32 = vrot.slane %v6808_v11, 4  ;;  %v10259_v51 = vmov %v10254_v22  ;;  %v7029_v28 = vpop.f32.mrb[17].mxu0  ;;  %v10274_v55 = vld [vmem:[#allocation102_spill] sm:$0xff]  ;;  %v10277_v20 = vld [vmem:[#allocation100_spill] sm:$0xff] }
 0x151   : > { %v3645_v26 = vmul.f32 %v6296_v30, %v3379_v5  ;;  %v3192_v2 = vadd.f32 %v3128_v52, %v2675_v27  ;;  %v2676_v58 = vadd.f32 %v2612_v36, %v2159_v10  ;;  %v7024_v13 = vmul.f32 %v6944_v4, %v6207_v63  ;;  %v7036_v0 = vpop.f32.mrb[18].mxu0 }
 0x152   : > { %v2861_v61 = vsel %vm2801_vm3, %v10257_v40, %v10256_v29  ;;  %v3378_v38 = vsel %vm3318_vm14, %v10259_v51, %v10258_v32  ;;  %v1717_v53 = vrot.slane %v6944_v4, 1  ;;  %v2234_v23 = vrot.slane %v6944_v4, 2  ;;  %v7042_v5 = vpop.f32.mrb[19].mxu0 }
 0x153   : > { %v3129_v56 = vmul.f32 %v6332_v42, %v2861_v61  ;;  %v3646_v30 = vmul.f32 %v6335_v43, %v3378_v38  ;;  %v3709_v34 = vadd.f32 %v3645_v26, %v3192_v2  ;;  %v7034_v43 = vmul.f32 %v6207_v63, %v6958_v50 }
 0x154   : > { %v1715_v27 = vrot.slane %v6958_v50, 1  ;;  %v2232_v52 = vrot.slane %v6958_v50, 2  ;;  %v2160_v36 = vadd.f32 %v6873_v8, %v6816_v3  ;;  %v2613_v26 = vmul.f32 %v6338_v45, %v6868_v14 }
 0x155   : > { %v3193_v9 = vadd.f32 %v3129_v56, %v2676_v58  ;;  %5674 = vmatprep.mubr.msk.f32.mxu1 %vm3778_vm0, %v3709_v34  ;;  %v10260_v29 = vrot.slane %v6828_v18, 3  ;;  %v10261_v40 = vrot.slane %v6808_v11, 3  ;;  %v10262_v3 = vrot.slane %v6828_v18, 4 }
 0x156   : > { %v1819_v32 = vsel %vm1767_vm15, %v1714_v41, %v1715_v27  ;;  %v7063_v8 = vsel %vm2284_vm2, %v2231_v39, %v2232_v52  ;;  %v10263_v14 = vrot.slane %v6808_v11, 4  ;;  %v2677_v41 = vadd.f32 %v2613_v26, %v2160_v36  ;;  %v10273_v11 = vld [vmem:[#allocation15_spill] sm:$0xff] }
 0x157   : > { %v3710_v10 = vadd.f32 %v3646_v30, %v3193_v9  ;;  %v2860_v61 = vsel %vm2801_vm3, %v10261_v40, %v10260_v29  ;;  %v7074_v38 = vmul.f32 %v6344_v47, %v1819_v32  ;;  %v7079_v39 = vmul.f32 %v6965_v24, %v6207_v63  ;;  %v7089_v9 = vpop.f32.mrb[20].mxu0 }
 0x158   : > { %v3130_v45 = vmul.f32 %v6341_v46, %v2860_v61  ;;  %v3377_v51 = vsel %vm3318_vm14, %v10263_v14, %v10262_v3  ;;  %v1718_v46 = vrot.slane %v6965_v24, 1  ;;  %v2235_v58 = vrot.slane %v6965_v24, 2  ;;  %v7103_v40 = vpop.f32.mrb[21].mxu0 }
 0x159   : > { %5675 = vmatmul.mubr.msk.f32.gmra.mrb[2].mxu1 %vm3778_vm0, %v3710_v10  ;;  %v3647_v2 = vmul.f32 %v6347_v48, %v3377_v51  ;;  %v1652_v47 = vmul.f32 %v6207_v63, %v6972_v15  ;;  %v1716_v34 = vrot.slane %v6972_v15, 1  ;;  %v2233_v48 = vrot.slane %v6972_v15, 2  ;;  %v7112_v14 = vpop.f32.mrb[22].mxu0 }
 0x15a   : > { %v3194_v30 = vadd.f32 %v3130_v45, %v2677_v41  ;;  %v1816_v10 = vsel %vm1767_vm15, %v1717_v53, %v1718_v46  ;;  %v7099_v36 = vsel %vm2284_vm2, %v2234_v23, %v2235_v58  ;;  %v10278_v22 = vrot.slane %v10277_v20, 3 }
 0x15b   : > { %v7106_v32 = vmul.f32 %v6379_v62, %v1816_v10  ;;  %v1817_v45 = vsel %vm1767_vm15, %v1716_v34, %v1717_v53  ;;  %v1818_v3 = vsel %vm1767_vm15, %v1715_v27, %v1716_v34  ;;  %v7120_v56 = vsel %vm2284_vm2, %v2233_v48, %v2234_v23  ;;  %v10264_v53 = vld [vmem:[#allocation13_spill] sm:$0xff] }
 0x15c   : > { %v3711_v61 = vadd.f32 %v3647_v2, %v3194_v30  ;;  %v7115_v51 = vmul.f32 %v6382_v60, %v1818_v3  ;;  %v2105_v41 = vmul.f32 %v6385_v1, %v1817_v45  ;;  %v7124_v62 = vsel %vm2284_vm2, %v2232_v52, %v2233_v48  ;;  %v7126_v2 = vpop.f32.mrb[23].mxu0  ;;  %v10265_v30 = vld [vmem:[#allocation98_spill] sm:$0xff]  ;;  %v10270_v48 = vld [vmem:[#allocation99_spill] sm:$0xff] }
 0x15d   : > { %v2614_v27 = vmul.f32 %v10264_v53, %v6864_v35  ;;  %v10266_v60 = vrot.slane %v10265_v30, 3  ;;  %v10267_v34 = vmov %v10260_v29  ;;  %v10268_v23 = vrot.slane %v10265_v30, 4  ;;  %v10271_v45 = vld [vmem:[#allocation103_spill] sm:$0xff]  ;;  %v10272_v35 = vld [vmem:[#allocation14_spill] sm:$0xff]  ;;  %v10275_v29 = vld [vmem:[#allocation16_spill] sm:$0xff] }
 0x15e   : > { %5677 = vmatprep.mubr.msk.f32.mxu1 %vm3778_vm0, %v3711_v61  ;;  %v10269_v10 = vrot.slane %v6828_v18, 4  ;;  %v2162_v61 = vadd.f32 %v10271_v45, %v10270_v48  ;;  %v7145_v3 = vadd.f32 %v2105_v41, %v1652_v47  ;;  %v2615_v26 = vmul.f32 %v10275_v29, %v10274_v55  ;;  %v10283_v29 = vld [vmem:[#allocation17_spill] sm:$0xff]  ;;  %v10285_v45 = vld [vmem:[#allocation19_spill] sm:$0xff] }
 0x15f   : > { %v2859_v1 = vsel %vm2801_vm3, %v10267_v34, %v10266_v60  ;;  %v10276_v60 = vld [vmem:[#allocation107_spill] sm:$0xff]  ;;  %v10279_v18 = vrot.slane %v10265_v30, 3  ;;  %v10281_v47 = vrot.slane %v10265_v30, 4 }
 0x160   : > { %v3376_v52 = vsel %vm3318_vm14, %v10269_v10, %v10268_v23  ;;  %v3131_v53 = vmul.f32 %v10272_v35, %v2859_v1  ;;  %v2678_v34 = vadd.f32 %v2614_v27, %v10276_v60  ;;  %v10280_v10 = vrot.slane %v10277_v20, 4 }
 0x161   : > { %v3648_v42 = vmul.f32 %v10273_v11, %v3376_v52  ;;  %v2858_v23 = vsel %vm2801_vm3, %v10279_v18, %v10278_v22  ;;  %v10282_v11 = vld [vmem:[#allocation101_spill] sm:$0xff]  ;;  %v2679_v55 = vadd.f32 %v2615_v26, %v2162_v61  ;;  %v10284_v52 = vld [vmem:[#allocation18_spill] sm:$0xff]  ;;  %v2616_v35 = vmul.f32 %v10285_v45, %v6911_v59  ;;  %v7186_v59 = vpop.f32.mrb[24].mxu0 }
 0x162   : > { %v3375_v41 = vsel %vm3318_vm14, %v10281_v47, %v10280_v10  ;;  %v2163_v1 = vadd.f32 %v6919_v21, %v10282_v11  ;;  %v3132_v27 = vmul.f32 %v10283_v29, %v2858_v23  ;;  %v3195_v60 = vadd.f32 %v3131_v53, %v2678_v34  ;;  %v10290_v23 = vld [vmem:[#allocation20_spill] sm:$0xff]  ;;  %v7190_v29 = vpop.f32.mrb[25].mxu0 }
 0x163   : > { %v3649_v48 = vmul.f32 %v10284_v52, %v3375_v41  ;;  %v10286_v22 = vrot.slane %v6881_v33, 3  ;;  %v10287_v18 = vrot.slane %v10277_v20, 3  ;;  %v10288_v10 = vrot.slane %v6881_v33, 4  ;;  %v10291_v41 = vld [vmem:[#allocation21_spill] sm:$0xff] }
 0x164   : > { %v10289_v21 = vrot.slane %v10277_v20, 4  ;;  %v7184_v61 = vmul.f32 %v7020_v12, %v6207_v63  ;;  %v3196_v53 = vadd.f32 %v3132_v27, %v2679_v55  ;;  %v2680_v34 = vadd.f32 %v2616_v35, %v2163_v1 }
 0x165   : > { %v2857_v30 = vsel %vm2801_vm3, %v10287_v18, %v10286_v22  ;;  %v3712_v52 = vadd.f32 %v3648_v42, %v3195_v60  ;;  %v1721_v20 = vrot.slane %v7020_v12, 1  ;;  %v2238_v45 = vrot.slane %v7020_v12, 2  ;;  %v7195_v18 = vpop.f32.mrb[26].mxu0 }
 0x166   : > { %v3374_v26 = vsel %vm3318_vm14, %v10289_v21, %v10288_v10  ;;  %v3133_v47 = vmul.f32 %v10290_v23, %v2857_v30  ;;  %v3713_v10 = vadd.f32 %v3649_v48, %v3196_v53  ;;  %v7200_v1 = vmul.f32 %v6207_v63, %v7029_v28  ;;  %v7202_v27 = vpop.f32.mrb[27].mxu0  ;;  %v10303_v30 = vld [vmem:[#allocation32_spill] sm:$0xff] }
 0x167   : > { %v3650_v11 = vmul.f32 %v10291_v41, %v3374_v26  ;;  %5678 = vmatmul.mubr.msk.f32.gmra.mrb[4].mxu1 %vm3778_vm0, %v3712_v52  ;;  %v1719_v42 = vrot.slane %v7029_v28, 1  ;;  %v2236_v35 = vrot.slane %v7029_v28, 2  ;;  %v10292_v26 = vld [vmem:[#allocation106_spill] sm:$0xff]  ;;  %v10295_v41 = vmov %v10286_v22 }
 0x168   : > { %v3197_v21 = vadd.f32 %v3133_v47, %v2680_v34  ;;  %5680 = vmatprep.mubr.msk.f32.mxu1 %vm3778_vm0, %v3713_v10  ;;  %v2164_v53 = vadd.f32 %v6987_v57, %v10292_v26  ;;  %v10293_v34 = vld [vmem:[#allocation22_spill] sm:$0xff]  ;;  %v10294_v47 = vrot.slane %v6897_v19, 3  ;;  %v10297_v10 = vrot.slane %v6881_v33, 4  ;;  %v10298_v26 = vld [vmem:[#allocation25_spill] sm:$0xff] }
 0x169   : > { %v2617_v23 = vmul.f32 %v10293_v34, %v6984_v25  ;;  %v1815_v55 = vsel %vm1767_vm15, %v1718_v46, %v1719_v42  ;;  %v7228_v57 = vsel %vm2284_vm2, %v2235_v58, %v2236_v35  ;;  %v10299_v46 = vld [vmem:[#allocation24_spill] sm:$0xff]  ;;  %v7243_v22 = vmul.f32 %v7036_v0, %v6207_v63 }
 0x16a   : > { %v3714_v48 = vadd.f32 %v3650_v11, %v3197_v21  ;;  %v2856_v52 = vsel %vm2801_vm3, %v10295_v41, %v10294_v47  ;;  %v10296_v11 = vld [vmem:[#allocation23_spill] sm:$0xff]  ;;  %v3373_v21 = vsel %vm3318_vm14, %v10297_v10, %v10070_v7  ;;  %v7238_v34 = vmul.f32 %v10298_v26, %v1815_v55  ;;  %v7250_v10 = vpop.f32.mrb[28].mxu0 }
 0x16b   : > { %v3134_v25 = vmul.f32 %v10296_v11, %v2856_v52  ;;  %v2681_v47 = vadd.f32 %v2617_v23, %v2164_v53  ;;  %v3651_v41 = vmul.f32 %v10299_v46, %v3373_v21  ;;  %v10071_v58 = vrot.slane %v7036_v0, 1  ;;  %10300 = vst [vmem:[#allocation13_spill] sm:$0xff] %v7250_v10  ;;  %v7256_v26 = vpop.f32.mrb[29].mxu0 }
 0x16c   : > { %5681 = vmatmul.mubr.msk.f32.gmra.mrb[6].mxu1 %vm3778_vm0, %v3714_v48  ;;  %v10074_v52 = vrot.slane %v7036_v0, 2  ;;  %v1656_v53 = vmul.f32 %v6207_v63, %v7042_v5  ;;  %v1720_v23 = vrot.slane %v7042_v5, 1  ;;  %v2237_v21 = vrot.slane %v7042_v5, 2  ;;  %10301 = vst [vmem:[#allocation98_spill] sm:$0xff] %v7256_v26  ;;  %v7270_v11 = vpop.f32.mrb[30].mxu0 }
 0x16d   : > { %v3198_v55 = vadd.f32 %v3134_v25, %v2681_v47  ;;  %v1812_v48 = vsel %vm1767_vm15, %v1721_v20, %v10071_v58  ;;  %10302 = vst [vmem:[#allocation99_spill] sm:$0xff] %v7270_v11  ;;  %v7279_v17 = vpop.f32.mrb[31].mxu0  ;;  %v10306_v25 = vld [vmem:[#allocation34_spill] sm:$0xff] }
 0x16e   : > { %v7266_v46 = vsel %vm2284_vm2, %v2238_v45, %v10074_v52  ;;  %v7273_v60 = vmul.f32 %v10303_v30, %v1812_v48  ;;  %v1813_v7 = vsel %vm1767_vm15, %v1720_v23, %v1721_v20  ;;  %v1814_v58 = vsel %vm1767_vm15, %v1719_v42, %v1720_v23  ;;  %10304 = vst [vmem:[#allocation103_spill] sm:$0xff] %v7279_v17  ;;  %v10305_v52 = vld [vmem:[#allocation33_spill] sm:$0xff]  ;;  %v10307_v20 = vld [vmem:[#allocation26_spill] sm:$0xff]  ;;  %v10316_v17 = vld [vmem:[#allocation27_spill] sm:$0xff] }
 0x16f   : > { %v3715_v33 = vadd.f32 %v3651_v41, %v3198_v55  ;;  %v7282_v26 = vmul.f32 %v10305_v52, %v1814_v58  ;;  %v2109_v10 = vmul.f32 %v10306_v25, %v1813_v7  ;;  %v7287_v47 = vsel %vm2284_vm2, %v2237_v21, %v2238_v45  ;;  %v10308_v41 = vld [vmem:[#allocation104_spill] sm:$0xff]  ;;  %v10313_v23 = vld [vmem:[#allocation105_spill] sm:$0xff] }
 0x170   : > { %v7291_v30 = vsel %vm2284_vm2, %v2236_v35, %v2237_v21  ;;  %v2618_v42 = vmul.f32 %v10307_v20, %v6980_v54  ;;  %v10309_v55 = vrot.slane %v10308_v41, 3  ;;  %v10310_v58 = vrot.slane %v6897_v19, 3  ;;  %v10314_v54 = vld [vmem:[#allocation28_spill] sm:$0xff]  ;;  %v10315_v25 = vld [vmem:[#allocation29_spill] sm:$0xff] }
 0x171   : > { %5683 = vmatprep.mubr.msk.f32.mxu1 %vm3778_vm0, %v3715_v33  ;;  %v10311_v52 = vrot.slane %v10308_v41, 4  ;;  %v10312_v45 = vrot.slane %v6897_v19, 4  ;;  %v2166_v33 = vadd.f32 %v6947_v16, %v10313_v23  ;;  %v7310_v21 = vadd.f32 %v2109_v10, %v1656_v53 }
 0x172   : > { %v2855_v7 = vsel %vm2801_vm3, %v10310_v58, %v10309_v55  ;;  %v2619_v11 = vmul.f32 %v10316_v17, %v6941_v31  ;;  %v2682_v55 = vadd.f32 %v2618_v42, %v7003_v37  ;;  %v10317_v58 = vrot.slane %v6890_v49, 3  ;;  %v10321_v31 = vld [vmem:[#allocation30_spill] sm:$0xff]  ;;  %v10322_v42 = vld [vmem:[#allocation31_spill] sm:$0xff] }
 0x173   : > { %v3372_v35 = vsel %vm3318_vm14, %v10312_v45, %v10311_v52  ;;  %v3135_v48 = vmul.f32 %v10314_v54, %v2855_v7  ;;  %v10318_v19 = vrot.slane %v10308_v41, 3  ;;  %v10319_v16 = vrot.slane %v6890_v49, 4  ;;  %v7335_v54 = vpop.f32.mrb[32].mxu0 }
 0x174   : > { %v3652_v20 = vmul.f32 %v10315_v25, %v3372_v35  ;;  %v10320_v10 = vrot.slane %v10308_v41, 4  ;;  %v2167_v7 = vadd.f32 %v7074_v38, %v6916_v6  ;;  %v2683_v17 = vadd.f32 %v2619_v11, %v2166_v33  ;;  %v10323_v35 = vld [vmem:[#allocation35_spill] sm:$0xff]  ;;  %v7353_v33 = vpop.f32.mrb[33].mxu0 }
 0x175   : > { %v2854_v52 = vsel %vm2801_vm3, %v10318_v19, %v10317_v58  ;;  %v2620_v23 = vmul.f32 %v10323_v35, %v7063_v8  ;;  %v3199_v25 = vadd.f32 %v3135_v48, %v2682_v55  ;;  %v10324_v58 = vrot.slane %v6958_v50, 3 }
 0x176   : > { %v3371_v53 = vsel %vm3318_vm14, %v10320_v10, %v10319_v16  ;;  %v3136_v37 = vmul.f32 %v10321_v31, %v2854_v52  ;;  %v10325_v41 = vrot.slane %v6890_v49, 3  ;;  %v10326_v6 = vrot.slane %v6958_v50, 4  ;;  %v10328_v52 = vld [vmem:[#allocation36_spill] sm:$0xff]  ;;  %v10329_v10 = vld [vmem:[#allocation37_spill] sm:$0xff]  ;;  %v7357_v31 = vpop.f32.mrb[34].mxu0 }
 0x177   : > { %v3653_v45 = vmul.f32 %v10322_v42, %v3371_v53  ;;  %v10327_v38 = vmov %v10319_v16  ;;  %v7351_v8 = vmul.f32 %v7089_v9, %v6207_v63  ;;  %v2684_v55 = vadd.f32 %v2620_v23, %v2167_v7  ;;  %10330 = vst [vmem:[#allocation14_spill] sm:$0xff] %v7357_v31  ;;  %v10345_v23 = vld [vmem:[#allocation47_spill] sm:$0xff] }
 0x178   : > { %v2853_v19 = vsel %vm2801_vm3, %v10325_v41, %v10324_v58  ;;  %v3370_v11 = vsel %vm3318_vm14, %v10327_v38, %v10326_v6  ;;  %v3200_v48 = vadd.f32 %v3136_v37, %v2683_v17  ;;  %v3716_v42 = vadd.f32 %v3652_v20, %v3199_v25  ;;  %v7362_v41 = vpop.f32.mrb[35].mxu0 }
 0x179   : > { %v3137_v16 = vmul.f32 %v10328_v52, %v2853_v19  ;;  %v3654_v53 = vmul.f32 %v10329_v10, %v3370_v11  ;;  %v1725_v49 = vrot.slane %v7089_v9, 1  ;;  %v2242_v35 = vrot.slane %v7089_v9, 2  ;;  %10331 = vst [vmem:[#allocation15_spill] sm:$0xff] %v7362_v41  ;;  %v10332_v11 = vld [vmem:[#allocation38_spill] sm:$0xff] }
 0x17a   : > { %v3717_v6 = vadd.f32 %v3653_v45, %v3200_v48  ;;  %v7367_v7 = vmul.f32 %v6207_v63, %v7103_v40  ;;  %5684 = vmatmul.mubr.msk.f32.gmra.mrb[8].mxu1 %vm3778_vm0, %v3716_v42  ;;  %v1723_v20 = vrot.slane %v7103_v40, 1  ;;  %v2240_v37 = vrot.slane %v7103_v40, 2 }
 0x17b   : > { %v3201_v38 = vadd.f32 %v3137_v16, %v2684_v55  ;;  %v2168_v19 = vadd.f32 %v7115_v51, %v7034_v43  ;;  %v2621_v48 = vmul.f32 %v10332_v11, %v7124_v62  ;;  %v10333_v55 = vrot.slane %v6972_v15, 3  ;;  %v10337_v51 = vld [vmem:[#allocation39_spill] sm:$0xff] }
 0x17c   : > { %5686 = vmatprep.mubr.msk.f32.mxu1 %vm3778_vm0, %v3717_v6  ;;  %v10334_v52 = vmov %v10324_v58  ;;  %v10335_v10 = vrot.slane %v7036_v0, 1  ;;  %v10338_v6 = vrot.slane %v6972_v15, 4  ;;  %v7408_v25 = vmul.f32 %v7112_v14, %v6207_v63 }
 0x17d   : > { %v3718_v45 = vadd.f32 %v3654_v53, %v3201_v38  ;;  %v2852_v16 = vsel %vm2801_vm3, %v10334_v52, %v10333_v55  ;;  %v10336_v53 = vrot.slane %v7036_v0, 2  ;;  %v10339_v38 = vrot.slane %v6958_v50, 4  ;;  %v10340_v55 = vld [vmem:[#allocation43_spill] sm:$0xff] }
 0x17e   : > { %v1811_v42 = vsel %vm1767_vm15, %v10335_v10, %v1723_v20  ;;  %v3138_v62 = vmul.f32 %v10337_v51, %v2852_v16  ;;  %v2685_v17 = vadd.f32 %v2621_v48, %v2168_v19  ;;  %v10341_v10 = vld [vmem:[#allocation40_spill] sm:$0xff]  ;;  %v10081_v16 = vrot.slane %v7112_v14, 1 }
 0x17f   : > { %v7393_v43 = vsel %vm2284_vm2, %v10336_v53, %v2240_v37  ;;  %v3369_v11 = vsel %vm3318_vm14, %v10339_v38, %v10338_v6  ;;  %v7403_v52 = vmul.f32 %v10340_v55, %v1811_v42  ;;  %v7410_v53 = vpop.f32.mrb[36].mxu0  ;;  %5687 = vmatmul.mubr.msk.f32.gmra.mrb[10].mxu1 %vm3778_vm0, %v3718_v45  ;;  %v10084_v50 = vrot.slane %v7112_v14, 2 }
 0x180   : > { %v3655_v58 = vmul.f32 %v10341_v10, %v3369_v11  ;;  %10342 = vst [vmem:[#allocation102_spill] sm:$0xff] %v7410_v53  ;;  %v7417_v6 = vpop.f32.mrb[37].mxu0  ;;  %v3202_v19 = vadd.f32 %v3138_v62, %v2685_v17  ;;  %v1660_v48 = vmul.f32 %v6207_v63, %v7126_v2  ;;  %v1724_v38 = vrot.slane %v7126_v2, 1  ;;  %v10346_v53 = vld [vmem:[#allocation48_spill] sm:$0xff]  ;;  %v10380_v17 = vld [vmem:[#allocation58_spill] sm:$0xff] }
 0x181   : > { %10343 = vst [vmem:[#allocation16_spill] sm:$0xff] %v7417_v6  ;;  %v2241_v11 = vrot.slane %v7126_v2, 2  ;;  %v7423_v55 = vpop.f32.mrb[38].mxu0  ;;  %v1808_v45 = vsel %vm1767_vm15, %v1725_v49, %v10081_v16  ;;  %v7433_v10 = vsel %vm2284_vm2, %v2242_v35, %v10084_v50  ;;  %v10347_v50 = vld [vmem:[#allocation49_spill] sm:$0xff] }
 0x182   : > { %10344 = vst [vmem:[#allocation107_spill] sm:$0xff] %v7423_v55  ;;  %v7437_v42 = vpop.f32.mrb[39].mxu0  ;;  %v3719_v51 = vadd.f32 %v3655_v58, %v3202_v19  ;;  %v7440_v55 = vmul.f32 %v10345_v23, %v1808_v45  ;;  %v1809_v6 = vsel %vm1767_vm15, %v1724_v38, %v1725_v49  ;;  %v1810_v16 = vsel %vm1767_vm15, %v1723_v20, %v1724_v38  ;;  %v10348_v49 = vld [vmem:[#allocation41_spill] sm:$0xff]  ;;  %v10355_v45 = vld [vmem:[#allocation42_spill] sm:$0xff] }
 0x183   : > { %v7447_v41 = vmul.f32 %v10346_v53, %v1810_v16  ;;  %v2113_v31 = vmul.f32 %v10347_v50, %v1809_v6  ;;  %v7452_v62 = vsel %vm2284_vm2, %v2241_v11, %v2242_v35  ;;  %v7456_v58 = vsel %vm2284_vm2, %v2240_v37, %v2241_v11  ;;  %v10354_v38 = vld [vmem:[#allocation45_spill] sm:$0xff] }
 0x184   : > { %5689 = vmatprep.mubr.msk.f32.mxu1 %vm3778_vm0, %v3719_v51  ;;  %v2622_v23 = vmul.f32 %v10348_v49, %v7120_v56  ;;  %v10349_v20 = vrot.slane %v6944_v4, 3  ;;  %v10350_v53 = vrot.slane %v6972_v15, 3  ;;  %v10351_v50 = vrot.slane %v6944_v4, 4  ;;  %v10353_v56 = vld [vmem:[#allocation44_spill] sm:$0xff] }
 0x185   : > { %v10352_v35 = vrot.slane %v6972_v15, 4  ;;  %v2170_v51 = vadd.f32 %v7106_v32, %v7024_v13  ;;  %v7475_v6 = vadd.f32 %v2113_v31, %v1660_v48  ;;  %v2623_v49 = vmul.f32 %v10355_v45, %v7099_v36  ;;  %v7496_v36 = vpop.f32.mrb[40].mxu0 }
 0x186   : > { %v2851_v16 = vsel %vm2801_vm3, %v10350_v53, %v10349_v20  ;;  %v2686_v20 = vadd.f32 %v2622_v23, %v7145_v3  ;;  %v10356_v53 = vrot.slane %v6965_v24, 3  ;;  %v10357_v15 = vrot.slane %v6944_v4, 3  ;;  %v10360_v23 = vld [vmem:[#allocation46_spill] sm:$0xff]  ;;  %v7502_v45 = vpop.f32.mrb[41].mxu0 }
 0x187   : > { %v3368_v37 = vsel %vm3318_vm14, %v10352_v35, %v10351_v50  ;;  %v3139_v19 = vmul.f32 %v10353_v56, %v2851_v16  ;;  %v10358_v13 = vrot.slane %v6965_v24, 4  ;;  %v10359_v32 = vrot.slane %v6944_v4, 4  ;;  %v10361_v35 = vld [vmem:[#allocation50_spill] sm:$0xff]  ;;  %v10362_v56 = vld [vmem:[#allocation51_spill] sm:$0xff] }
 0x188   : > { %v3656_v11 = vmul.f32 %v10354_v38, %v3368_v37  ;;  %v2850_v50 = vsel %vm2801_vm3, %v10357_v15, %v10356_v53  ;;  %v2171_v48 = vadd.f32 %v7238_v34, %v7079_v39  ;;  %v2687_v3 = vadd.f32 %v2623_v49, %v2170_v51 }
 0x189   : > { %v3367_v31 = vsel %vm3318_vm14, %v10359_v32, %v10358_v13  ;;  %v3140_v16 = vmul.f32 %v10360_v23, %v2850_v50  ;;  %v2624_v38 = vmul.f32 %v10362_v56, %v7228_v57  ;;  %v3203_v53 = vadd.f32 %v3139_v19, %v2686_v20  ;;  %v7520_v50 = vpop.f32.mrb[42].mxu0 }
 0x18a   : > { %v3657_v37 = vmul.f32 %v10361_v35, %v3367_v31  ;;  %v10363_v4 = vrot.slane %v7029_v28, 3  ;;  %v10364_v15 = vrot.slane %v6965_v24, 3  ;;  %v10365_v34 = vrot.slane %v7029_v28, 4  ;;  %v10368_v31 = vld [vmem:[#allocation53_spill] sm:$0xff]  ;;  %v7524_v35 = vpop.f32.mrb[43].mxu0 }
 0x18b   : > { %v10366_v51 = vmov %v10358_v13  ;;  %v7518_v57 = vmul.f32 %v7186_v59, %v6207_v63  ;;  %v3204_v19 = vadd.f32 %v3140_v16, %v2687_v3  ;;  %v2688_v20 = vadd.f32 %v2624_v38, %v2171_v48  ;;  %v10367_v13 = vld [vmem:[#allocation52_spill] sm:$0xff]  ;;  %10369 = vst [vmem:[#allocation100_spill] sm:$0xff] %v7524_v35  ;;  %v10384_v38 = vld [vmem:[#allocation67_spill] sm:$0xff] }
 0x18c   : > { %v2849_v39 = vsel %vm2801_vm3, %v10364_v15, %v10363_v4  ;;  %v3366_v49 = vsel %vm3318_vm14, %v10366_v51, %v10365_v34  ;;  %v3720_v56 = vadd.f32 %v3656_v11, %v3203_v53  ;;  %v1729_v24 = vrot.slane %v7186_v59, 1 }
 0x18d   : > { %v3141_v32 = vmul.f32 %v10367_v13, %v2849_v39  ;;  %v3658_v23 = vmul.f32 %v10368_v31, %v3366_v49  ;;  %v2246_v4 = vrot.slane %v7186_v59, 2  ;;  %v3721_v34 = vadd.f32 %v3657_v37, %v3204_v19  ;;  %v10370_v39 = vld [vmem:[#allocation56_spill] sm:$0xff] }
 0x18e   : > { %v7532_v48 = vmul.f32 %v6207_v63, %v7190_v29  ;;  %5690 = vmatmul.mubr.msk.f32.gmra.mrb[12].mxu1 %vm3778_vm0, %v3720_v56  ;;  %v1727_v3 = vrot.slane %v7190_v29, 1  ;;  %v2244_v11 = vrot.slane %v7190_v29, 2  ;;  %v2172_v53 = vadd.f32 %v7282_v26, %v7200_v1  ;;  %v10375_v26 = vld [vmem:[#allocation57_spill] sm:$0xff] }
 0x18f   : > { %v3205_v51 = vadd.f32 %v3141_v32, %v2688_v20  ;;  %5692 = vmatprep.mubr.msk.f32.mxu1 %vm3778_vm0, %v3721_v34  ;;  %v2625_v49 = vmul.f32 %v10370_v39, %v7291_v30  ;;  %v10371_v19 = vrot.slane %v7042_v5, 3  ;;  %v10372_v20 = vrot.slane %v7029_v28, 3  ;;  %v7567_v39 = vpop.f32.mrb[44].mxu0 }
 0x190   : > { %v10373_v32 = vrot.slane %v7112_v14, 1  ;;  %v10376_v56 = vrot.slane %v7042_v5, 4  ;;  %v10377_v34 = vrot.slane %v7029_v28, 4  ;;  %10378 = vst [vmem:[#allocation101_spill] sm:$0xff] %v7567_v39  ;;  %v10087_v28 = vrot.slane %v7195_v18, 1  ;;  %v10386_v39 = vld [vmem:[#allocation69_spill] sm:$0xff] }
 0x191   : > { %v3722_v37 = vadd.f32 %v3658_v23, %v3205_v51  ;;  %v2848_v13 = vsel %vm2801_vm3, %v10372_v20, %v10371_v19  ;;  %v10374_v23 = vrot.slane %v7112_v14, 2  ;;  %v10379_v19 = vld [vmem:[#allocation59_spill] sm:$0xff] }
 0x192   : > { %v1807_v31 = vsel %vm1767_vm15, %v10373_v32, %v1727_v3  ;;  %v3142_v30 = vmul.f32 %v10375_v26, %v2848_v13  ;;  %v3365_v51 = vsel %vm3318_vm14, %v10377_v34, %v10376_v56  ;;  %v2689_v32 = vadd.f32 %v2625_v49, %v2172_v53  ;;  %v7577_v13 = vpop.f32.mrb[45].mxu0 }
 0x193   : > { %v7558_v1 = vsel %vm2284_vm2, %v10374_v23, %v2244_v11  ;;  %v7570_v20 = vmul.f32 %v10379_v19, %v1807_v31  ;;  %v3659_v15 = vmul.f32 %v10380_v17, %v3365_v51  ;;  %v7575_v23 = vmul.f32 %v7195_v18, %v6207_v63  ;;  %10381 = vst [vmem:[#allocation17_spill] sm:$0xff] %v7577_v13  ;;  %v7584_v34 = vpop.f32.mrb[46].mxu0 }
 0x194   : > { %5693 = vmatmul.mubr.msk.f32.gmra.mrb[14].mxu1 %vm3778_vm0, %v3722_v37  ;;  %v10091_v26 = vrot.slane %v7195_v18, 2  ;;  %10382 = vst [vmem:[#allocation18_spill] sm:$0xff] %v7584_v34  ;;  %v3206_v53 = vadd.f32 %v3142_v30, %v2689_v32  ;;  %v1664_v17 = vmul.f32 %v6207_v63, %v7202_v27  ;;  %v1728_v49 = vrot.slane %v7202_v27, 1  ;;  %v7590_v19 = vpop.f32.mrb[47].mxu0  ;;  %v10385_v34 = vld [vmem:[#allocation68_spill] sm:$0xff] }
 0x195   : > { %v2245_v51 = vrot.slane %v7202_v27, 2  ;;  %10383 = vst [vmem:[#allocation19_spill] sm:$0xff] %v7590_v19  ;;  %v1804_v37 = vsel %vm1767_vm15, %v1729_v24, %v10087_v28 }
 0x196   : > { %v7600_v31 = vsel %vm2284_vm2, %v2246_v4, %v10091_v26  ;;  %v3723_v56 = vadd.f32 %v3659_v15, %v3206_v53  ;;  %v7605_v16 = vmul.f32 %v10384_v38, %v1804_v37  ;;  %v1805_v19 = vsel %vm1767_vm15, %v1728_v49, %v1729_v24  ;;  %v10387_v24 = vld [vmem:[#allocation60_spill] sm:$0xff]  ;;  %v10394_v37 = vld [vmem:[#allocation61_spill] sm:$0xff] }
 0x197   : > { %v1806_v28 = vsel %vm1767_vm15, %v1727_v3, %v1728_v49  ;;  %v2117_v26 = vmul.f32 %v10386_v39, %v1805_v19  ;;  %v7617_v30 = vsel %vm2284_vm2, %v2245_v51, %v2246_v4  ;;  %v7621_v15 = vsel %vm2284_vm2, %v2244_v11, %v2245_v51  ;;  %v10393_v51 = vld [vmem:[#allocation63_spill] sm:$0xff] }
 0x198   : > { %v7612_v13 = vmul.f32 %v10385_v34, %v1806_v28  ;;  %5695 = vmatprep.mubr.msk.f32.mxu1 %vm3778_vm0, %v3723_v56  ;;  %v2626_v38 = vmul.f32 %v10387_v24, %v7287_v47  ;;  %v10388_v3 = vrot.slane %v7020_v12, 3  ;;  %v10389_v28 = vrot.slane %v7042_v5, 3  ;;  %v10392_v47 = vld [vmem:[#allocation62_spill] sm:$0xff] }
 0x199   : > { %v10390_v34 = vrot.slane %v7020_v12, 4  ;;  %v10391_v4 = vrot.slane %v7042_v5, 4  ;;  %v2174_v56 = vadd.f32 %v7273_v60, %v7184_v61  ;;  %v7640_v53 = vadd.f32 %v2117_v26, %v1664_v17 }
 0x19a   : > { %v2847_v39 = vsel %vm2801_vm3, %v10389_v28, %v10388_v3  ;;  %v2627_v24 = vmul.f32 %v10394_v37, %v7266_v46  ;;  %v2690_v3 = vadd.f32 %v2626_v38, %v7310_v21  ;;  %v10395_v28 = vrot.slane %v7036_v0, 3  ;;  %v10400_v38 = vld [vmem:[#allocation65_spill] sm:$0xff] }
 0x19b   : > { %v3364_v11 = vsel %vm3318_vm14, %v10391_v4, %v10390_v34  ;;  %v3143_v49 = vmul.f32 %v10392_v47, %v2847_v39  ;;  %v10396_v5 = vrot.slane %v7020_v12, 3  ;;  %v10397_v61 = vrot.slane %v7036_v0, 4  ;;  %v10399_v39 = vld [vmem:[#allocation64_spill] sm:$0xff] }
 0x19c   : > { %v3660_v19 = vmul.f32 %v10393_v51, %v3364_v11  ;;  %v10398_v60 = vrot.slane %v7020_v12, 4  ;;  %v2175_v17 = vadd.f32 %v7403_v52, %v7243_v22  ;;  %v2691_v46 = vadd.f32 %v2627_v24, %v2174_v56  ;;  %v10401_v11 = vld [vmem:[#allocation70_spill] sm:$0xff]  ;;  %v10405_v56 = vld [vmem:[#allocation13_spill] sm:$0xff] }
 0x19d   : > { %v2846_v34 = vsel %vm2801_vm3, %v10396_v5, %v10395_v28  ;;  %v2628_v47 = vmul.f32 %v10401_v11, %v7393_v43  ;;  %v3207_v51 = vadd.f32 %v3143_v49, %v2690_v3  ;;  %v10402_v37 = vrot.slane %v7103_v40, 3  ;;  %v10406_v3 = vld [vmem:[#allocation74_spill] sm:$0xff]  ;;  %v7686_v11 = vpop.f32.mrb[48].mxu0 }
 0x19e   : > { %v3363_v26 = vsel %vm3318_vm14, %v10398_v60, %v10397_v61  ;;  %v3144_v21 = vmul.f32 %v10399_v39, %v2846_v34  ;;  %v10403_v5 = vrot.slane %v7103_v40, 4  ;;  %v10404_v22 = vmov %v10397_v61  ;;  %v10407_v61 = vld [vmem:[#allocation75_spill] sm:$0xff]  ;;  %10408 = vst [vmem:[#allocation20_spill] sm:$0xff] %v7686_v11  ;;  %v10427_v11 = vld [vmem:[#allocation86_spill] sm:$0xff] }
 0x19f   : > { %v3661_v4 = vmul.f32 %v10400_v38, %v3363_v26  ;;  %v2845_v12 = vsel %vm2801_vm3, %v10395_v28, %v10402_v37  ;;  %v7679_v24 = vmul.f32 %v10405_v56, %v6207_v63  ;;  %v2692_v49 = vadd.f32 %v2628_v47, %v2175_v17 }
 0x1a0   : > { %v3362_v52 = vsel %vm3318_vm14, %v10404_v22, %v10403_v5  ;;  %v3208_v43 = vadd.f32 %v3144_v21, %v2691_v46  ;;  %v3145_v34 = vmul.f32 %v10406_v3, %v2845_v12  ;;  %v3724_v26 = vadd.f32 %v3660_v19, %v3207_v51  ;;  %v10409_v22 = vld [vmem:[#allocation98_spill] sm:$0xff]  ;;  %v7693_v46 = vpop.f32.mrb[49].mxu0  ;;  %v10421_v51 = vld [vmem:[#allocation99_spill] sm:$0xff] }
 0x1a1   : > { %v3662_v60 = vmul.f32 %v10407_v61, %v3362_v52  ;;  %v1733_v39 = vrot.slane %v10405_v56, 1  ;;  %v2250_v38 = vrot.slane %v10405_v56, 2  ;;  %v7691_v17 = vmul.f32 %v6207_v63, %v10409_v22  ;;  %10410 = vst [vmem:[#allocation21_spill] sm:$0xff] %v7693_v46  ;;  %v10411_v52 = vld [vmem:[#allocation76_spill] sm:$0xff] }
 0x1a2   : > { %v3725_v37 = vadd.f32 %v3661_v4, %v3208_v43  ;;  %v3209_v28 = vadd.f32 %v3145_v34, %v2692_v49  ;;  %5696 = vmatmul.mubr.msk.f32.gmra.mrb[16].mxu1 %vm3778_vm0, %v3724_v26  ;;  %v1731_v19 = vrot.slane %v10409_v22, 1  ;;  %v2248_v21 = vrot.slane %v10409_v22, 2 }
 0x1a3   : > { %v2176_v12 = vadd.f32 %v7447_v41, %v7367_v7  ;;  %v2629_v43 = vmul.f32 %v10411_v52, %v7456_v58  ;;  %v10412_v49 = vrot.slane %v7126_v2, 3  ;;  %v10413_v3 = vrot.slane %v7103_v40, 3  ;;  %v10416_v7 = vld [vmem:[#allocation77_spill] sm:$0xff] }
 0x1a4   : > { %5698 = vmatprep.mubr.msk.f32.mxu1 %vm3778_vm0, %v3725_v37  ;;  %v3726_v4 = vadd.f32 %v3662_v60, %v3209_v28  ;;  %v10414_v61 = vrot.slane %v7195_v18, 1  ;;  %v10415_v60 = vrot.slane %v7195_v18, 2  ;;  %v10417_v37 = vrot.slane %v7126_v2, 4  ;;  %v10425_v40 = vld [vmem:[#allocation85_spill] sm:$0xff] }
 0x1a5   : > { %v2844_v34 = vsel %vm2801_vm3, %v10413_v3, %v10412_v49  ;;  %v10418_v28 = vmov %v10403_v5  ;;  %v10419_v49 = vld [vmem:[#allocation78_spill] sm:$0xff]  ;;  %v2693_v5 = vadd.f32 %v2629_v43, %v2176_v12  ;;  %v7734_v47 = vmul.f32 %v10421_v51, %v6207_v63 }
 0x1a6   : > { %v1803_v26 = vsel %vm1767_vm15, %v10414_v61, %v1731_v19  ;;  %v7719_v41 = vsel %vm2284_vm2, %v10415_v60, %v2248_v21  ;;  %v3146_v58 = vmul.f32 %v10416_v7, %v2844_v34  ;;  %v3361_v52 = vsel %vm3318_vm14, %v10418_v28, %v10417_v37  ;;  %v10420_v61 = vld [vmem:[#allocation79_spill] sm:$0xff]  ;;  %5699 = vmatmul.mubr.msk.f32.gmra.mrb[18].mxu1 %vm3778_vm0, %v3726_v4 }
 0x1a7   : > { %v7729_v3 = vmul.f32 %v10419_v49, %v1803_v26  ;;  %v3663_v0 = vmul.f32 %v10420_v61, %v3361_v52  ;;  %v10092_v34 = vrot.slane %v10421_v51, 1  ;;  %v10094_v60 = vrot.slane %v10421_v51, 2  ;;  %v10422_v26 = vld [vmem:[#allocation103_spill] sm:$0xff]  ;;  %v10423_v49 = vld [vmem:[#allocation93_spill] sm:$0xff]  ;;  %v7758_v61 = vpop.f32.mrb[50].mxu0 }
 0x1a8   : > { %v3210_v37 = vadd.f32 %v3146_v58, %v2693_v5  ;;  %v1668_v12 = vmul.f32 %v6207_v63, %v10422_v26  ;;  %v1732_v43 = vrot.slane %v10422_v26, 1  ;;  %v2249_v28 = vrot.slane %v10422_v26, 2  ;;  %10424 = vst [vmem:[#allocation106_spill] sm:$0xff] %v7758_v61  ;;  %v10428_v58 = vld [vmem:[#allocation87_spill] sm:$0xff] }
 0x1a9   : > { %v1800_v4 = vsel %vm1767_vm15, %v1733_v39, %v10092_v34  ;;  %v7753_v52 = vsel %vm2284_vm2, %v2250_v38, %v10094_v60  ;;  %vm1863_vm1 = vcmp.lt.s32.totalorder %v10423_v49, 7  ;;  %v7767_v60 = vpop.f32.mrb[51].mxu0 }
 0x1aa   : > { %v3727_v7 = vadd.f32 %v3663_v0, %v3210_v37  ;;  %v7761_v32 = vmul.f32 %v10425_v40, %v1800_v4  ;;  %v1801_v34 = vsel %vm1767_vm15, %v1732_v43, %v1733_v39  ;;  %v1802_v46 = vsel %vm1767_vm15, %v1731_v19, %v1732_v43  ;;  %10426 = vst [vmem:[#allocation22_spill] sm:$0xff] %v7767_v60  ;;  %v10429_v39 = vld [vmem:[#allocation80_spill] sm:$0xff]  ;;  %v10469_v60 = vld [vmem:[#allocation55_spill] sm:$0xff] }
 0x1ab   : > { %v7770_v5 = vmul.f32 %v10427_v11, %v1802_v46  ;;  %v2121_v35 = vmul.f32 %v10428_v58, %v1801_v34  ;;  %v7775_v61 = vsel %vm2284_vm2, %v2249_v28, %v2250_v38  ;;  %v7779_v0 = vsel %vm2284_vm2, %v2248_v21, %v2249_v28  ;;  %v10435_v28 = vld [vmem:[#allocation83_spill] sm:$0xff]  ;;  %v10436_v58 = vld [vmem:[#allocation81_spill] sm:$0xff] }
 0x1ac   : > { %5701 = vmatprep.mubr.msk.f32.mxu1 %vm3778_vm0, %v3727_v7  ;;  %v2630_v19 = vmul.f32 %v10429_v39, %v7452_v62  ;;  %v10430_v40 = vrot.slane %v7089_v9, 3  ;;  %v10431_v11 = vrot.slane %v7126_v2, 3  ;;  %v10432_v34 = vrot.slane %v7089_v9, 4  ;;  %v10434_v62 = vld [vmem:[#allocation82_spill] sm:$0xff] }
 0x1ad   : > { %v10433_v38 = vrot.slane %v7126_v2, 4  ;;  %v2178_v7 = vadd.f32 %v7440_v55, %v7351_v8  ;;  %v7798_v37 = vadd.f32 %v2121_v35, %v1668_v12  ;;  %v2631_v39 = vmul.f32 %v10436_v58, %v7433_v10 }
 0x1ae   : > { %v2843_v46 = vsel %vm2801_vm3, %v10431_v11, %v10430_v40  ;;  %v2694_v40 = vadd.f32 %v2630_v19, %v7475_v6  ;;  %v10437_v11 = vrot.slane %v7112_v14, 3  ;;  %v10438_v2 = vrot.slane %v7089_v9, 3  ;;  %v10442_v19 = vld [vmem:[#allocation88_spill] sm:$0xff] }
 0x1af   : > { %v3360_v21 = vsel %vm3318_vm14, %v10433_v38, %v10432_v34  ;;  %v3147_v43 = vmul.f32 %v10434_v62, %v2843_v46  ;;  %v10439_v8 = vrot.slane %v7112_v14, 4  ;;  %v10440_v55 = vrot.slane %v7089_v9, 4  ;;  %v10441_v46 = vld [vmem:[#allocation84_spill] sm:$0xff] }
 0x1b0   : > { %v3664_v4 = vmul.f32 %v10435_v28, %v3360_v21  ;;  %v2842_v34 = vsel %vm2801_vm3, %v10438_v2, %v10437_v11  ;;  %v2179_v12 = vadd.f32 %v7570_v20, %v7408_v25  ;;  %v2695_v10 = vadd.f32 %v2631_v39, %v2178_v7  ;;  %v10443_v21 = vld [vmem:[#allocation89_spill] sm:$0xff]  ;;  %v10447_v39 = vld [vmem:[#allocation90_spill] sm:$0xff] }
 0x1b1   : > { %v3359_v35 = vsel %vm3318_vm14, %v10440_v55, %v10439_v8  ;;  %v3148_v6 = vmul.f32 %v10441_v46, %v2842_v34  ;;  %v2632_v62 = vmul.f32 %v10443_v21, %v7558_v1  ;;  %v3211_v28 = vadd.f32 %v3147_v43, %v2694_v40  ;;  %v10448_v34 = vld [vmem:[#allocation91_spill] sm:$0xff] }
 0x1b2   : > { %v3665_v38 = vmul.f32 %v10442_v19, %v3359_v35  ;;  %v10444_v58 = vrot.slane %v7190_v29, 3  ;;  %v10445_v2 = vrot.slane %v7190_v29, 4  ;;  %v10446_v25 = vmov %v10439_v8 }
 0x1b3   : > { %v7837_v7 = vmul.f32 %v7335_v54, %v6207_v63  ;;  %v3212_v1 = vadd.f32 %v3148_v6, %v2695_v10  ;;  %v2696_v43 = vadd.f32 %v2632_v62, %v2179_v12  ;;  %v3728_v55 = vadd.f32 %v3664_v4, %v3211_v28  ;;  %v10449_v10 = vld [vmem:[#allocation9_spill] sm:$0xff]  ;;  %v7922_v28 = vpop.f32.mrb[52].mxu0 }
 0x1b4   : > { %v2841_v9 = vsel %vm2801_vm3, %v10437_v11, %v10444_v58  ;;  %v3358_v20 = vsel %vm3318_vm14, %v10446_v25, %v10445_v2  ;;  %v1737_v35 = vrot.slane %v7335_v54, 1  ;;  %v2254_v46 = vrot.slane %v7335_v54, 2  ;;  %v10450_v2 = vld [vmem:[#allocation92_spill] sm:$0xff]  ;;  %10464 = vst [vmem:[#allocation32_spill] sm:$0xff] %v7922_v28 }
 0x1b5   : > { %v3149_v40 = vmul.f32 %v10447_v39, %v2841_v9  ;;  %v3666_v8 = vmul.f32 %v10448_v34, %v3358_v20  ;;  %v3729_v19 = vadd.f32 %v3665_v38, %v3212_v1  ;;  %v7847_v11 = vmul.f32 %v6207_v63, %v7353_v33  ;;  %5702 = vmatmul.mubr.msk.f32.gmra.mrb[20].mxu1 %vm3778_vm0, %v3728_v55 }
 0x1b6   : > { %v1735_v12 = vrot.slane %v7353_v33, 1  ;;  %v2059_v4 = vsel %vm1863_vm1, %v10449_v10, 0.0  ;;  %v2252_v6 = vrot.slane %v7353_v33, 2  ;;  %v2180_v9 = vadd.f32 %v7612_v13, %v7532_v48 }
 0x1b7   : > { %v3213_v21 = vadd.f32 %v3149_v40, %v2696_v43  ;;  %5704 = vmatprep.mubr.msk.f32.mxu1 %vm3778_vm0, %v3729_v19  ;;  %v2633_v25 = vmul.f32 %v10450_v2, %v7621_v15  ;;  %v10451_v20 = vrot.slane %v10421_v51, 1  ;;  %v10452_v43 = vrot.slane %v10421_v51, 2 }
 0x1b8   : > { %v10453_v40 = vrot.slane %v7202_v27, 3  ;;  %v10454_v34 = vmov %v10444_v58  ;;  %v10455_v13 = vrot.slane %v7202_v27, 4  ;;  %v10456_v15 = vrot.slane %v7190_v29, 4 }
 0x1b9   : > { %v3730_v38 = vadd.f32 %v3666_v8, %v3213_v21  ;;  %v1799_v1 = vsel %vm1767_vm15, %v10451_v20, %v1735_v12  ;;  %v7870_v39 = vsel %vm2284_vm2, %v10452_v43, %v2252_v6  ;;  %v2697_v19 = vadd.f32 %v2633_v25, %v2180_v9  ;;  %v10457_v21 = vld [vmem:[#allocation94_spill] sm:$0xff]  ;;  %v10458_v20 = vld [vmem:[#allocation95_spill] sm:$0xff] }
 0x1ba   : > { %v2840_v48 = vsel %vm2801_vm3, %v10454_v34, %v10453_v40  ;;  %v3357_v8 = vsel %vm3318_vm14, %v10456_v15, %v10455_v13  ;;  %v7884_v55 = vmul.f32 %v2059_v4, %v1799_v1  ;;  %v836_v58 = vadd.s32 272, %v6174_v44  ;;  %v10459_v40 = vld [vmem:[#allocation14_spill] sm:$0xff] }
 0x1bb   : > { %v3150_v2 = vmul.f32 %v10457_v21, %v2840_v48  ;;  %v3667_v43 = vmul.f32 %v10458_v20, %v3357_v8  ;;  %5705 = vmatmul.mubr.msk.f32.gmra.mrb[22].mxu1 %vm3778_vm0, %v3730_v38  ;;  %v7892_v34 = vmul.f32 %v10459_v40, %v6207_v63  ;;  %v10099_v29 = vrot.slane %v10459_v40, 1  ;;  %v10463_v21 = vld [vmem:[#allocation15_spill] sm:$0xff] }
 0x1bc   : > { %v10098_v14 = vrot.slane %v10459_v40, 2  ;;  %v834_v25 = vadd.s32 256, %v6174_v44  ;;  %v7899_v1 = vand.u32 7, %v836_v58  ;;  %v835_v15 = vadd.s32 264, %v6174_v44 }
 0x1bd   : > { %10460 = vst [vmem:[#allocation23_spill] sm:$0xff] %v7892_v34  ;;  %v3214_v13 = vadd.f32 %v3150_v2, %v2697_v19  ;;  %v1796_v38 = vsel %vm1767_vm15, %v1737_v35, %v10099_v29  ;;  %v1672_v58 = vmul.f32 %v6207_v63, %v10463_v21  ;;  %v1736_v2 = vrot.slane %v10463_v21, 1 }
 0x1be   : > { %10461 = vst [vmem:[#allocation25_spill] sm:$0xff] %v7899_v1  ;;  %v7909_v48 = vsel %vm2284_vm2, %v2254_v46, %v10098_v14  ;;  %v7912_v19 = vand.u32 7, %v834_v25  ;;  %vm1866_vm4 = vcmp.lt.s32.totalorder %v7899_v1, 7  ;;  %v7918_v20 = vand.u32 7, %v835_v15  ;;  %v7931_v15 = vpop.f32.mrb[53].mxu0 }
 0x1bf   : > { %10462 = vst [vmem:[#allocation24_spill] sm:$0xff] %v7909_v48  ;;  %v3731_v8 = vadd.f32 %v3667_v43, %v3214_v13  ;;  %v2253_v9 = vrot.slane %v10463_v21, 2  ;;  %v2062_v43 = vsel %vm1866_vm4, %v10449_v10, 0.0  ;;  %v1797_v13 = vsel %vm1767_vm15, %v1736_v2, %v1737_v35  ;;  %10465 = vst [vmem:[#allocation33_spill] sm:$0xff] %v7931_v15  ;;  %v10474_v48 = vld [vmem:[#allocation54_spill] sm:$0xff] }
 0x1c0   : > { %v1798_v25 = vsel %vm1767_vm15, %v1735_v12, %v1736_v2  ;;  %vm1864_vm5 = vcmp.lt.s32.totalorder %v7912_v19, 7  ;;  %v7933_v62 = vmul.f32 %v2062_v43, %v1796_v38  ;;  %vm1865_vm6 = vcmp.lt.s32.totalorder %v7918_v20, 7  ;;  %v10466_v43 = vld [vmem:[#allocation96_spill] sm:$0xff] }
 0x1c1   : > { %5707 = vmatprep.mubr.msk.f32.mxu1 %vm3778_vm0, %v3731_v8  ;;  %v2060_v4 = vsel %vm1864_vm5, %v10449_v10, 0.0  ;;  %v7939_v8 = vsel %vm2284_vm2, %v2253_v9, %v2254_v46  ;;  %v2061_v14 = vsel %vm1865_vm6, %v10449_v10, 0.0  ;;  %v7946_v12 = vsel %vm2284_vm2, %v2252_v6, %v2253_v9 }
 0x1c2   : > { %v7942_v35 = vmul.f32 %v2060_v4, %v1798_v25  ;;  %v2125_v38 = vmul.f32 %v2061_v14, %v1797_v13  ;;  %v2634_v29 = vmul.f32 %v10466_v43, %v7617_v30  ;;  %v10467_v15 = vrot.slane %v7186_v59, 3  ;;  %v10470_v4 = vld [vmem:[#allocation11_spill] sm:$0xff]  ;;  %v10473_v43 = vld [vmem:[#allocation12_spill] sm:$0xff] }
 0x1c3   : > { %v10468_v28 = vrot.slane %v7202_v27, 3  ;;  %vm2891_vm7 = vcmp.lt.s32.totalorder %v10469_v60, 5  ;;  %v10471_v6 = vrot.slane %v7186_v59, 4  ;;  %v10472_v9 = vrot.slane %v7202_v27, 4 }
 0x1c4   : > { %v3087_v25 = vsel %vm2891_vm7, %v10470_v4, 0.0  ;;  %vm3408_vm8 = vcmp.lt.s32.totalorder %v10469_v60, 4  ;;  %v2182_v30 = vadd.f32 %v7605_v16, %v7518_v57  ;;  %v7968_v13 = vadd.f32 %v2125_v38, %v1672_v58  ;;  %v10477_v16 = vld [vmem:[#allocation10_spill] sm:$0xff] }
 0x1c5   : > { %v2839_v46 = vsel %vm2801_vm3, %v10468_v28, %v10467_v15  ;;  %v3356_v14 = vsel %vm3318_vm14, %v10472_v9, %v10471_v6  ;;  %v2698_v28 = vadd.f32 %v2634_v29, %v7640_v53  ;;  %v3604_v2 = vsel %vm3408_vm8, %v10473_v43, 0.0 }
 0x1c6   : > { %v3151_v15 = vmul.f32 %v3087_v25, %v2839_v46  ;;  %v3668_v34 = vmul.f32 %v3604_v2, %v3356_v14  ;;  %vm2375_vm9 = vcmp.lt.s32.totalorder %v10474_v48, 6  ;;  %v10475_v27 = vrot.slane %v7195_v18, 3  ;;  %v7988_v46 = vpop.f32.mrb[54].mxu0 }
 0x1c7   : > { %v10476_v1 = vrot.slane %v7186_v59, 3  ;;  %vm2892_vm10 = vcmp.lt.s32.totalorder %v10474_v48, 5  ;;  %v2571_v58 = vsel %vm2375_vm9, %v10477_v16, 0.0  ;;  %v10478_v29 = vrot.slane %v7195_v18, 4  ;;  %10480 = vst [vmem:[#allocation34_spill] sm:$0xff] %v7988_v46  ;;  %v7994_v9 = vpop.f32.mrb[55].mxu0 }
 0x1c8   : > { %v3215_v57 = vadd.f32 %v3151_v15, %v2698_v28  ;;  %v3088_v53 = vsel %vm2892_vm10, %v10470_v4, 0.0  ;;  %v10479_v2 = vmov %v10471_v6  ;;  %v2635_v25 = vmul.f32 %v2571_v58, %v7600_v31  ;;  %10481 = vst [vmem:[#allocation26_spill] sm:$0xff] %v7994_v9  ;;  %v10482_v15 = vld [vmem:[#allocation66_spill] sm:$0xff] }
 0x1c9   : > { %v2838_v60 = vsel %vm2801_vm3, %v10476_v1, %v10475_v27  ;;  %v3355_v38 = vsel %vm3318_vm14, %v10479_v2, %v10478_v29  ;;  %vm3409_vm11 = vcmp.lt.s32.totalorder %v10474_v48, 4  ;;  %v2183_v1 = vadd.f32 %v7729_v3, %v7575_v23 }
 0x1ca   : > { %v3152_v6 = vmul.f32 %v3088_v53, %v2838_v60  ;;  %v3732_v14 = vadd.f32 %v3668_v34, %v3215_v57  ;;  %v3605_v28 = vsel %vm3409_vm11, %v10473_v43, 0.0  ;;  %vm2376_vm12 = vcmp.lt.s32.totalorder %v10482_v15, 6 }
 0x1cb   : > { %v10483_v59 = vrot.slane %v10409_v22, 3  ;;  %v2699_v60 = vadd.f32 %v2635_v25, %v2182_v30  ;;  %v3669_v58 = vmul.f32 %v3605_v28, %v3355_v38  ;;  %v2572_v48 = vsel %vm2376_vm12, %v10477_v16, 0.0  ;;  %v10486_v38 = vld [vmem:[#allocation102_spill] sm:$0xff] }
 0x1cc   : > { %vm2893_vm13 = vcmp.lt.s32.totalorder %v10482_v15, 5  ;;  %5708 = vmatmul.mubr.msk.f32.gmra.mrb[24].mxu1 %vm3778_vm0, %v3732_v14  ;;  %v2636_v23 = vmul.f32 %v2572_v48, %v7719_v41  ;;  %v10484_v34 = vrot.slane %v10409_v22, 4  ;;  %v10485_v57 = vmov %v10478_v29 }
 0x1cd   : > { %v2837_v31 = vsel %vm2801_vm3, %v10475_v27, %v10483_v59  ;;  %v3089_v3 = vsel %vm2893_vm13, %v10470_v4, 0.0  ;;  %vm3410_vm1 = vcmp.lt.s32.totalorder %v10482_v15, 4  ;;  %v3216_v30 = vadd.f32 %v3152_v6, %v2699_v60 }
 0x1ce   : > { %v3354_v53 = vsel %vm3318_vm14, %v10485_v57, %v10484_v34  ;;  %v3153_v29 = vmul.f32 %v3089_v3, %v2837_v31  ;;  %v3606_v2 = vsel %vm3410_vm1, %v10473_v43, 0.0  ;;  %v8019_v25 = vmul.f32 %v10486_v38, %v6207_v63  ;;  %v10487_v31 = vld [vmem:[#allocation16_spill] sm:$0xff] }
 0x1cf   : > { %v2700_v41 = vadd.f32 %v2636_v23, %v2183_v1  ;;  %v3670_v14 = vmul.f32 %v3606_v2, %v3354_v53  ;;  %v1741_v28 = vrot.slane %v10486_v38, 1  ;;  %v3733_v18 = vadd.f32 %v3669_v58, %v3216_v30 }
 0x1d0   : > { %v837_v6 = vadd.s32 280, %v6174_v44  ;;  %v8028_v60 = vmul.f32 %v6207_v63, %v10487_v31  ;;  %v1739_v3 = vrot.slane %v10487_v31, 1  ;;  %v2256_v1 = vrot.slane %v10487_v31, 2 }
 0x1d1   : > { %v3217_v15 = vadd.f32 %v3153_v29, %v2700_v41  ;;  %5710 = vmatprep.mubr.msk.f32.mxu1 %vm3778_vm0, %v3733_v18  ;;  %v2184_v57 = vadd.f32 %v7770_v5, %v7691_v17  ;;  %v10488_v30 = vrot.slane %v10459_v40, 1  ;;  %v10489_v2 = vrot.slane %v10459_v40, 2  ;;  %v10490_v18 = vld [vmem:[#allocation72_spill] sm:$0xff] }
 0x1d2   : > { %v8033_v23 = vand.u32 7, %v837_v6  ;;  %vm2377_vm4 = vcmp.lt.s32.totalorder %v10490_v18, 6  ;;  %v10491_v17 = vrot.slane %v10422_v26, 3  ;;  %v10492_v5 = vmov %v10483_v59 }
 0x1d3   : > { %v3734_v53 = vadd.f32 %v3670_v14, %v3217_v15  ;;  %v1795_v29 = vsel %vm1767_vm15, %v10488_v30, %v1739_v3  ;;  %v8047_v41 = vsel %vm2284_vm2, %v10489_v2, %v2256_v1  ;;  %v2573_v6 = vsel %vm2377_vm4, %v10477_v16, 0.0 }
 0x1d4   : > { %vm1867_vm5 = vcmp.lt.s32.totalorder %v8033_v23, 7  ;;  %v2836_v14 = vsel %vm2801_vm3, %v10492_v5, %v10491_v17  ;;  %vm2894_vm6 = vcmp.lt.s32.totalorder %v10490_v18, 5  ;;  %v2637_v30 = vmul.f32 %v2573_v6, %v7779_v0  ;;  %v10495_v0 = vld [vmem:[#allocation107_spill] sm:$0xff] }
 0x1d5   : > { %5711 = vmatmul.mubr.msk.f32.gmra.mrb[26].mxu1 %vm3778_vm0, %v3734_v53  ;;  %v2063_v15 = vsel %vm1867_vm5, %v10449_v10, 0.0  ;;  %v3090_v2 = vsel %vm2894_vm6, %v10470_v4, 0.0  ;;  %v10493_v48 = vrot.slane %v10422_v26, 4  ;;  %v10494_v27 = vmov %v10484_v34 }
 0x1d6   : > { %v8069_v58 = vmul.f32 %v2063_v15, %v1795_v29  ;;  %v3154_v17 = vmul.f32 %v3090_v2, %v2836_v14  ;;  %vm3411_vm7 = vcmp.lt.s32.totalorder %v10490_v18, 4  ;;  %v840_v53 = vadd.s32 304, %v6174_v44 }
 0x1d7   : > { %v3353_v34 = vsel %vm3318_vm14, %v10494_v27, %v10493_v48  ;;  %v2701_v5 = vadd.f32 %v2637_v30, %v2184_v57  ;;  %v3607_v59 = vsel %vm3411_vm7, %v10473_v43, 0.0  ;;  %v8076_v6 = vmul.f32 %v10495_v0, %v6207_v63 }
 0x1d8   : > { %v10107_v9 = vrot.slane %v10495_v0, 1  ;;  %v3671_v22 = vmul.f32 %v3607_v59, %v3353_v34  ;;  %v8079_v46 = vand.u32 7, %v840_v53  ;;  %v10108_v27 = vrot.slane %v10495_v0, 2 }
 0x1d9   : > { %10496 = vst [vmem:[#allocation104_spill] sm:$0xff] %v8076_v6  ;;  %v3218_v29 = vadd.f32 %v3154_v17, %v2701_v5  ;;  %v838_v14 = vadd.s32 288, %v6174_v44  ;;  %v10498_v59 = vrot.slane %v10486_v38, 2  ;;  %v839_v15 = vadd.s32 296, %v6174_v44 }
 0x1da   : > { %10497 = vst [vmem:[#allocation105_spill] sm:$0xff] %v8079_v46  ;;  %v1792_v57 = vsel %vm1767_vm15, %v1741_v28, %v10107_v9  ;;  %vm1870_vm8 = vcmp.lt.s32.totalorder %v8079_v46, 7  ;;  %v1676_v30 = vmul.f32 %v6207_v63, %v7437_v42  ;;  %v1740_v5 = vrot.slane %v7437_v42, 1  ;;  %v10509_v46 = vld [vmem:[#allocation71_spill] sm:$0xff] }
 0x1db   : > { %v8096_v34 = vsel %vm2284_vm2, %v10498_v59, %v10108_v27  ;;  %v3735_v2 = vadd.f32 %v3671_v22, %v3218_v29  ;;  %v2066_v17 = vsel %vm1870_vm8, %v10449_v10, 0.0  ;;  %v8102_v53 = vand.u32 7, %v838_v14  ;;  %v8111_v27 = vpop.f32.mrb[56].mxu0 }
 0x1dc   : > { %10499 = vst [vmem:[#allocation28_spill] sm:$0xff] %v8096_v34  ;;  %v8105_v18 = vmul.f32 %v2066_v17, %v1792_v57  ;;  %v8107_v48 = vand.u32 7, %v839_v15  ;;  %v2257_v9 = vrot.slane %v7437_v42, 2  ;;  %10501 = vst [vmem:[#allocation27_spill] sm:$0xff] %v8111_v27  ;;  %v1793_v22 = vsel %vm1767_vm15, %v1740_v5, %v1741_v28  ;;  %v8120_v14 = vpop.f32.mrb[57].mxu0  ;;  %v10504_v57 = vld [vmem:[#allocation73_spill] sm:$0xff] }
 0x1dd   : > { %5713 = vmatprep.mubr.msk.f32.mxu1 %vm3778_vm0, %v3735_v2  ;;  %v1794_v29 = vsel %vm1767_vm15, %v1739_v3, %v1740_v5  ;;  %vm1868_vm9 = vcmp.lt.s32.totalorder %v8102_v53, 7  ;;  %10502 = vst [vmem:[#allocation30_spill] sm:$0xff] %v8120_v14  ;;  %v10503_v17 = vmov %v10498_v59  ;;  %vm2378_vm11 = vcmp.lt.s32.totalorder %v10504_v57, 6 }
 0x1de   : > { %10500 = vst [vmem:[#allocation29_spill] sm:$0xff] %v8105_v18  ;;  %vm1869_vm10 = vcmp.lt.s32.totalorder %v8107_v48, 7  ;;  %v2064_v15 = vsel %vm1868_vm9, %v10449_v10, 0.0  ;;  %v8128_v2 = vsel %vm2284_vm2, %v2257_v9, %v10503_v17  ;;  %v8132_v28 = vsel %vm2284_vm2, %v2256_v1, %v2257_v9 }
 0x1df   : > { %v2065_v3 = vsel %vm1869_vm10, %v10449_v10, 0.0  ;;  %v8135_v5 = vmul.f32 %v2064_v15, %v1794_v29  ;;  %v10505_v59 = vrot.slane %v10405_v56, 3  ;;  %v10506_v14 = vrot.slane %v10422_v26, 3 }
 0x1e0   : > { %v2129_v6 = vmul.f32 %v2065_v3, %v1793_v22  ;;  %v2574_v17 = vsel %vm2378_vm11, %v10477_v16, 0.0  ;;  %vm2895_vm12 = vcmp.lt.s32.totalorder %v10504_v57, 5  ;;  %v10507_v9 = vrot.slane %v10405_v56, 4 }
 0x1e1   : > { %v2835_v27 = vsel %vm2801_vm3, %v10506_v14, %v10505_v59  ;;  %v10508_v1 = vrot.slane %v10422_v26, 4  ;;  %v2638_v15 = vmul.f32 %v2574_v17, %v7775_v61  ;;  %v3091_v34 = vsel %vm2895_vm12, %v10470_v4, 0.0 }
 0x1e2   : > { %vm3412_vm13 = vcmp.lt.s32.totalorder %v10504_v57, 4  ;;  %v2186_v59 = vadd.f32 %v7761_v32, %v7679_v24  ;;  %v8157_v22 = vadd.f32 %v2129_v6, %v1676_v30  ;;  %v3155_v14 = vmul.f32 %v3091_v34, %v2835_v27  ;;  %v8178_v27 = vpop.f32.mrb[58].mxu0 }
 0x1e3   : > { %v3352_v29 = vsel %vm3318_vm14, %v10508_v1, %v10507_v9  ;;  %v3608_v3 = vsel %vm3412_vm13, %v10473_v43, 0.0  ;;  %vm2379_vm1 = vcmp.lt.s32.totalorder %v10509_v46, 6  ;;  %v2702_v26 = vadd.f32 %v2638_v15, %v7798_v37  ;;  %10514 = vst [vmem:[#allocation31_spill] sm:$0xff] %v8178_v27 }
 0x1e4   : > { %v3672_v18 = vmul.f32 %v3608_v3, %v3352_v29  ;;  %v2575_v9 = vsel %vm2379_vm1, %v10477_v16, 0.0  ;;  %v10510_v61 = vrot.slane %v10421_v51, 3  ;;  %v10511_v17 = vrot.slane %v10405_v56, 3  ;;  %v8184_v29 = vpop.f32.mrb[59].mxu0 }
 0x1e5   : > { %v2639_v32 = vmul.f32 %v2575_v9, %v7753_v52  ;;  %vm2896_vm4 = vcmp.lt.s32.totalorder %v10509_v46, 5  ;;  %v10512_v24 = vrot.slane %v10421_v51, 4  ;;  %v10513_v6 = vrot.slane %v10405_v56, 4  ;;  %10515 = vst [vmem:[#allocation35_spill] sm:$0xff] %v8184_v29 }
 0x1e6   : > { %v2834_v57 = vsel %vm2801_vm3, %v10511_v17, %v10510_v61  ;;  %vm3413_vm5 = vcmp.lt.s32.totalorder %v10509_v46, 4  ;;  %v3219_v34 = vadd.f32 %v3155_v14, %v2702_v26  ;;  %v3092_v30 = vsel %vm2896_vm4, %v10470_v4, 0.0 }
 0x1e7   : > { %v3351_v37 = vsel %vm3318_vm14, %v10513_v6, %v10512_v24  ;;  %v3609_v1 = vsel %vm3413_vm5, %v10473_v43, 0.0  ;;  %v2187_v52 = vadd.f32 %v7884_v55, %v7734_v47  ;;  %v2703_v15 = vadd.f32 %v2639_v32, %v2186_v59 }
 0x1e8   : > { %v3156_v3 = vmul.f32 %v3092_v30, %v2834_v57  ;;  %v3673_v56 = vmul.f32 %v3609_v1, %v3351_v37  ;;  %vm2380_vm6 = vcmp.lt.s32.totalorder %v10423_v49, 6  ;;  %v3736_v9 = vadd.f32 %v3672_v18, %v3219_v34 }
 0x1e9   : > { %v2576_v46 = vsel %vm2380_vm6, %v10477_v16, 0.0  ;;  %v10516_v61 = vrot.slane %v7353_v33, 3  ;;  %v10517_v14 = vrot.slane %v10421_v51, 3  ;;  %vm2897_vm7 = vcmp.lt.s32.totalorder %v10423_v49, 5 }
 0x1ea   : > { %v3220_v47 = vadd.f32 %v3156_v3, %v2703_v15  ;;  %v2640_v55 = vmul.f32 %v2576_v46, %v7870_v39  ;;  %v3093_v59 = vsel %vm2897_vm7, %v10470_v4, 0.0  ;;  %v10518_v17 = vrot.slane %v7353_v33, 4  ;;  %5714 = vmatmul.mubr.msk.f32.gmra.mrb[28].mxu1 %vm3778_vm0, %v3736_v9 }
 0x1eb   : > { %v2833_v26 = vsel %vm2801_vm3, %v10517_v14, %v10516_v61  ;;  %v10519_v18 = vmov %v10512_v24  ;;  %vm3414_vm8 = vcmp.lt.s32.totalorder %v10423_v49, 4  ;;  %v8207_v24 = vmul.f32 %v7496_v36, %v6207_v63 }
 0x1ec   : > { %v3350_v57 = vsel %vm3318_vm14, %v10519_v18, %v10518_v17  ;;  %v3157_v32 = vmul.f32 %v3093_v59, %v2833_v26  ;;  %v1745_v39 = vrot.slane %v7496_v36, 1  ;;  %v3737_v6 = vadd.f32 %v3673_v56, %v3220_v47 }
 0x1ed   : > { %v2704_v37 = vadd.f32 %v2640_v55, %v2187_v52  ;;  %v3610_v34 = vsel %vm3414_vm8, %v10473_v43, 0.0  ;;  %v2262_v51 = vrot.slane %v7496_v36, 2  ;;  %v841_v3 = vadd.s32 312, %v6174_v44 }
 0x1ee   : > { %v3674_v30 = vmul.f32 %v3610_v34, %v3350_v57  ;;  %5716 = vmatprep.mubr.msk.f32.mxu1 %vm3778_vm0, %v3737_v6  ;;  %v8218_v9 = vmul.f32 %v6207_v63, %v7502_v45  ;;  %v1743_v52 = vrot.slane %v7502_v45, 1  ;;  %v2260_v56 = vrot.slane %v7502_v45, 2 }
 0x1ef   : > { %v3221_v49 = vadd.f32 %v3157_v32, %v2704_v37  ;;  %v8222_v46 = vand.u32 7, %v841_v3  ;;  %v2188_v26 = vadd.f32 %v7942_v35, %v7847_v11  ;;  %v10520_v55 = vrot.slane %v10495_v0, 1 }
 0x1f0   : > { %v10521_v17 = vrot.slane %v10495_v0, 2  ;;  %vm2381_vm9 = vcmp.lt.s32.totalorder %v7912_v19, 6  ;;  %v10522_v11 = vrot.slane %v10463_v21, 3  ;;  %v10523_v35 = vmov %v10516_v61  ;;  %v8300_v61 = vpop.f32.mrb[60].mxu0 }
 0x1f1   : > { %v3738_v47 = vadd.f32 %v3674_v30, %v3221_v49  ;;  %v1791_v59 = vsel %vm1767_vm15, %v10520_v55, %v1743_v52  ;;  %vm1871_vm10 = vcmp.lt.s32.totalorder %v8222_v46, 7  ;;  %v2577_v57 = vsel %vm2381_vm9, %v10477_v16, 0.0  ;;  %10527 = vst [vmem:[#allocation36_spill] sm:$0xff] %v8300_v61 }
 0x1f2   : > { %v8236_v18 = vsel %vm2284_vm2, %v10521_v17, %v2260_v56  ;;  %v2832_v32 = vsel %vm2801_vm3, %v10523_v35, %v10522_v11  ;;  %vm2898_vm11 = vcmp.lt.s32.totalorder %v7912_v19, 5  ;;  %v2067_v6 = vsel %vm1871_vm10, %v10449_v10, 0.0 }
 0x1f3   : > { %5717 = vmatmul.mubr.msk.f32.gmra.mrb[30].mxu1 %vm3778_vm0, %v3738_v47  ;;  %v2641_v37 = vmul.f32 %v2577_v57, %v7946_v12  ;;  %v3094_v34 = vsel %vm2898_vm11, %v10470_v4, 0.0  ;;  %v10524_v30 = vrot.slane %v10463_v21, 4  ;;  %v10525_v3 = vrot.slane %v7353_v33, 4 }
 0x1f4   : > { %v8258_v55 = vmul.f32 %v2067_v6, %v1791_v59  ;;  %v3158_v17 = vmul.f32 %v3094_v34, %v2832_v32  ;;  %vm3415_vm12 = vcmp.lt.s32.totalorder %v7912_v19, 4  ;;  %v844_v47 = vadd.s32 336, %v6174_v44 }
 0x1f5   : > { %v3349_v49 = vsel %vm3318_vm14, %v10525_v3, %v10524_v30  ;;  %v2705_v11 = vadd.f32 %v2641_v37, %v2188_v26  ;;  %v3611_v35 = vsel %vm3415_vm12, %v10473_v43, 0.0  ;;  %v8265_v12 = vmul.f32 %v7520_v50, %v6207_v63  ;;  %v10526_v3 = vld [vmem:[#allocation100_spill] sm:$0xff] }
 0x1f6   : > { %v10114_v57 = vrot.slane %v7520_v50, 1  ;;  %v3675_v33 = vmul.f32 %v3611_v35, %v3349_v49  ;;  %v8268_v15 = vand.u32 7, %v844_v47  ;;  %v10113_v59 = vrot.slane %v7520_v50, 2 }
 0x1f7   : > { %v3222_v6 = vadd.f32 %v3158_v17, %v2705_v11  ;;  %v842_v37 = vadd.s32 320, %v6174_v44  ;;  %v843_v30 = vadd.s32 328, %v6174_v44  ;;  %v1680_v49 = vmul.f32 %v6207_v63, %v10526_v3 }
 0x1f8   : > { %v1788_v19 = vsel %vm1767_vm15, %v1745_v39, %v10114_v57  ;;  %vm1874_vm13 = vcmp.lt.s32.totalorder %v8268_v15, 7  ;;  %v8285_v34 = vsel %vm2284_vm2, %v2262_v51, %v10113_v59  ;;  %v1744_v35 = vrot.slane %v10526_v3, 1 }
 0x1f9   : > { %v3739_v17 = vadd.f32 %v3675_v33, %v3222_v6  ;;  %v2070_v47 = vsel %vm1874_vm13, %v10449_v10, 0.0  ;;  %v8291_v11 = vand.u32 7, %v842_v37  ;;  %v8296_v32 = vand.u32 7, %v843_v30  ;;  %v8309_v37 = vpop.f32.mrb[61].mxu0 }
 0x1fa   : > { %v8294_v26 = vmul.f32 %v2070_v47, %v1788_v19  ;;  %v2261_v1 = vrot.slane %v10526_v3, 2  ;;  %v1789_v33 = vsel %vm1767_vm15, %v1744_v35, %v1745_v39  ;;  %v1790_v6 = vsel %vm1767_vm15, %v1743_v52, %v1744_v35  ;;  %10528 = vst [vmem:[#allocation37_spill] sm:$0xff] %v8309_v37  ;;  %v10533_v37 = vld [vmem:[#allocation25_spill] sm:$0xff] }
 0x1fb   : > { %5719 = vmatprep.mubr.msk.f32.mxu1 %vm3778_vm0, %v3739_v17  ;;  %vm1872_vm1 = vcmp.lt.s32.totalorder %v8291_v11, 7  ;;  %vm1873_vm4 = vcmp.lt.s32.totalorder %v8296_v32, 7  ;;  %vm2382_vm5 = vcmp.lt.s32.totalorder %v7918_v20, 6  ;;  %v10529_v35 = vrot.slane %v7335_v54, 3 }
 0x1fc   : > { %v2068_v30 = vsel %vm1872_vm1, %v10449_v10, 0.0  ;;  %v8317_v17 = vsel %vm2284_vm2, %v2261_v1, %v2262_v51  ;;  %v8321_v39 = vsel %vm2284_vm2, %v2260_v56, %v2261_v1  ;;  %v2069_v52 = vsel %vm1873_vm4, %v10449_v10, 0.0 }
 0x1fd   : > { %v8324_v47 = vmul.f32 %v2068_v30, %v1790_v6  ;;  %v10530_v19 = vrot.slane %v10463_v21, 3  ;;  %v2133_v59 = vmul.f32 %v2069_v52, %v1789_v33  ;;  %v2578_v51 = vsel %vm2382_vm5, %v10477_v16, 0.0 }
 0x1fe   : > { %vm2899_vm6 = vcmp.lt.s32.totalorder %v7918_v20, 5  ;;  %v10531_v1 = vrot.slane %v7335_v54, 4  ;;  %v10532_v56 = vrot.slane %v10463_v21, 4  ;;  %v2642_v30 = vmul.f32 %v2578_v51, %v7939_v8 }
 0x1ff   : > { %v2831_v14 = vsel %vm2801_vm3, %v10530_v19, %v10529_v35  ;;  %v3095_v57 = vsel %vm2899_vm6, %v10470_v4, 0.0  ;;  %vm3416_vm7 = vcmp.lt.s32.totalorder %v7918_v20, 4  ;;  %v2190_v33 = vadd.f32 %v7933_v62, %v7837_v7  ;;  %v10536_v7 = vld [vmem:[#allocation24_spill] sm:$0xff] }
 0x200   : > { %v3348_v6 = vsel %vm3318_vm14, %v10532_v56, %v10531_v1  ;;  %v8346_v19 = vadd.f32 %v2133_v59, %v1680_v49  ;;  %v3159_v52 = vmul.f32 %v3095_v57, %v2831_v14  ;;  %v3612_v35 = vsel %vm3416_vm7, %v10473_v43, 0.0  ;;  %v8367_v59 = vpop.f32.mrb[62].mxu0 }
 0x201   : > { %vm2383_vm8 = vcmp.lt.s32.totalorder %v10533_v37, 6  ;;  %v2706_v21 = vadd.f32 %v2642_v30, %v7968_v13  ;;  %v3676_v61 = vmul.f32 %v3612_v35, %v3348_v6  ;;  %v10534_v8 = vrot.slane %v10459_v40, 3  ;;  %10539 = vst [vmem:[#allocation38_spill] sm:$0xff] %v8367_v59  ;;  %v10540_v30 = vld [vmem:[#allocation23_spill] sm:$0xff] }
 0x202   : > { %v2579_v1 = vsel %vm2383_vm8, %v10477_v16, 0.0  ;;  %v10535_v51 = vrot.slane %v7335_v54, 3  ;;  %vm2900_vm9 = vcmp.lt.s32.totalorder %v10533_v37, 5  ;;  %v10537_v14 = vrot.slane %v10459_v40, 4 }
 0x203   : > { %v2643_v62 = vmul.f32 %v2579_v1, %v10536_v7  ;;  %v10538_v57 = vrot.slane %v7335_v54, 4  ;;  %vm3417_vm10 = vcmp.lt.s32.totalorder %v10533_v37, 4  ;;  %v3223_v49 = vadd.f32 %v3159_v52, %v2706_v21  ;;  %v8374_v54 = vpop.f32.mrb[63].mxu0 }
 0x204   : > { %v2830_v20 = vsel %vm2801_vm3, %v10535_v51, %v10534_v8  ;;  %v3096_v56 = vsel %vm2900_vm9, %v10470_v4, 0.0  ;;  %v3613_v6 = vsel %vm3417_vm10, %v10473_v43, 0.0  ;;  %v2191_v35 = vadd.f32 %v8069_v58, %v10540_v30  ;;  %10541 = vst [vmem:[#allocation39_spill] sm:$0xff] %v8374_v54 }
 0x205   : > { %v3347_v13 = vsel %vm3318_vm14, %v10538_v57, %v10537_v14  ;;  %v2707_v1 = vadd.f32 %v2643_v62, %v2190_v33  ;;  %v3160_v8 = vmul.f32 %v3096_v56, %v2830_v20  ;;  %vm2384_vm11 = vcmp.lt.s32.totalorder %v8033_v23, 6 }
 0x206   : > { %v3677_v51 = vmul.f32 %v3613_v6, %v3347_v13  ;;  %v3740_v7 = vadd.f32 %v3676_v61, %v3223_v49  ;;  %v2580_v37 = vsel %vm2384_vm11, %v10477_v16, 0.0  ;;  %v10542_v14 = vrot.slane %v10487_v31, 3  ;;  %v10546_v49 = vld [vmem:[#allocation101_spill] sm:$0xff] }
 0x207   : > { %v10543_v52 = vrot.slane %v10459_v40, 3  ;;  %vm2901_vm12 = vcmp.lt.s32.totalorder %v8033_v23, 5  ;;  %v3224_v58 = vadd.f32 %v3160_v8, %v2707_v1  ;;  %v2644_v33 = vmul.f32 %v2580_v37, %v8047_v41 }
 0x208   : > { %v3097_v20 = vsel %vm2901_vm12, %v10470_v4, 0.0  ;;  %v10544_v62 = vrot.slane %v10487_v31, 4  ;;  %v10545_v61 = vrot.slane %v10459_v40, 4  ;;  %5720 = vmatmul.mubr.msk.f32.gmra.mrb[32].mxu1 %vm3778_vm0, %v3740_v7  ;;  %vm3418_vm13 = vcmp.lt.s32.totalorder %v8033_v23, 4 }
 0x209   : > { %v2829_v21 = vsel %vm2801_vm3, %v10543_v52, %v10542_v14  ;;  %v8396_v56 = vmul.f32 %v10546_v49, %v6207_v63  ;;  %v1749_v41 = vrot.slane %v10546_v49, 1  ;;  %v3741_v6 = vadd.f32 %v3677_v51, %v3224_v58  ;;  %v10547_v52 = vld [vmem:[#allocation17_spill] sm:$0xff] }
 0x20a   : > { %v3346_v57 = vsel %vm3318_vm14, %v10545_v61, %v10544_v62  ;;  %v3161_v13 = vmul.f32 %v3097_v20, %v2829_v21  ;;  %v2708_v30 = vadd.f32 %v2644_v33, %v2191_v35  ;;  %v3614_v1 = vsel %vm3418_vm13, %v10473_v43, 0.0 }
 0x20b   : > { %v3678_v8 = vmul.f32 %v3614_v1, %v3346_v57  ;;  %v845_v14 = vadd.s32 344, %v6174_v44  ;;  %5722 = vmatprep.mubr.msk.f32.mxu1 %vm3778_vm0, %v3741_v6  ;;  %v8407_v21 = vmul.f32 %v6207_v63, %v10547_v52  ;;  %v1747_v35 = vrot.slane %v10547_v52, 1 }
 0x20c   : > { %v3225_v23 = vadd.f32 %v3161_v13, %v2708_v30  ;;  %v2264_v51 = vrot.slane %v10547_v52, 2  ;;  %v2192_v62 = vadd.f32 %v8135_v5, %v8028_v60  ;;  %v10548_v57 = vrot.slane %v7520_v50, 1 }
 0x20d   : > { %v8411_v58 = vand.u32 7, %v845_v14  ;;  %v10549_v6 = vrot.slane %v7520_v50, 2  ;;  %vm2385_vm1 = vcmp.lt.s32.totalorder %v8102_v53, 6  ;;  %v10550_v60 = vrot.slane %v7437_v42, 3 }
 0x20e   : > { %v3742_v61 = vadd.f32 %v3678_v8, %v3225_v23  ;;  %v1787_v13 = vsel %vm1767_vm15, %v10548_v57, %v1747_v35  ;;  %v2581_v1 = vsel %vm2385_vm1, %v10477_v16, 0.0  ;;  %v10551_v5 = vrot.slane %v10487_v31, 3 }
 0x20f   : > { %v8425_v30 = vsel %vm2284_vm2, %v10549_v6, %v2264_v51  ;;  %vm1875_vm4 = vcmp.lt.s32.totalorder %v8411_v58, 7  ;;  %vm2902_vm5 = vcmp.lt.s32.totalorder %v8102_v53, 5  ;;  %v2645_v23 = vmul.f32 %v2581_v1, %v8132_v28  ;;  %v10554_v28 = vld [vmem:[#allocation18_spill] sm:$0xff] }
 0x210   : > { %v2828_v8 = vsel %vm2801_vm3, %v10551_v5, %v10550_v60  ;;  %5723 = vmatmul.mubr.msk.f32.gmra.mrb[34].mxu1 %vm3778_vm0, %v3742_v61  ;;  %v2071_v14 = vsel %vm1875_vm4, %v10449_v10, 0.0  ;;  %v3098_v57 = vsel %vm2902_vm5, %v10470_v4, 0.0  ;;  %v10552_v6 = vrot.slane %v7437_v42, 4 }
 0x211   : > { %v10553_v7 = vrot.slane %v10487_v31, 4  ;;  %v8447_v20 = vmul.f32 %v2071_v14, %v1787_v13  ;;  %v3162_v60 = vmul.f32 %v3098_v57, %v2828_v8  ;;  %vm3419_vm6 = vcmp.lt.s32.totalorder %v8102_v53, 4  ;;  %v10558_v57 = vld [vmem:[#allocation19_spill] sm:$0xff] }
 0x212   : > { %v848_v61 = vadd.s32 368, %v6174_v44  ;;  %v2709_v5 = vadd.f32 %v2645_v23, %v2192_v62  ;;  %v3615_v33 = vsel %vm3419_vm6, %v10473_v43, 0.0  ;;  %v8454_v1 = vmul.f32 %v10554_v28, %v6207_v63 }
 0x213   : > { %v3345_v37 = vsel %vm3318_vm14, %v10553_v7, %v10552_v6  ;;  %v10118_v40 = vrot.slane %v10554_v28, 1  ;;  %v10120_v7 = vrot.slane %v10554_v28, 2  ;;  %v846_v14 = vadd.s32 352, %v6174_v44 }
 0x214   : > { %10555 = vst [vmem:[#allocation43_spill] sm:$0xff] %v8454_v1  ;;  %v3679_v31 = vmul.f32 %v3615_v33, %v3345_v37  ;;  %v8457_v54 = vand.u32 7, %v848_v61  ;;  %v3226_v8 = vadd.f32 %v3162_v60, %v2709_v5  ;;  %v10556_v37 = vrot.slane %v10546_v49, 2  ;;  %v10565_v1 = vld [vmem:[#allocation105_spill] sm:$0xff] }
 0x215   : > { %v1784_v53 = vsel %vm1767_vm15, %v1749_v41, %v10118_v40  ;;  %v847_v23 = vadd.s32 360, %v6174_v44  ;;  %v1684_v6 = vmul.f32 %v6207_v63, %v10558_v57  ;;  %v8480_v5 = vand.u32 7, %v846_v14 }
 0x216   : > { %vm1878_vm7 = vcmp.lt.s32.totalorder %v8457_v54, 7  ;;  %v8474_v33 = vsel %vm2284_vm2, %v10556_v37, %v10120_v7  ;;  %v3743_v60 = vadd.f32 %v3679_v31, %v3226_v8  ;;  %v1748_v62 = vrot.slane %v10558_v57, 1 }
 0x217   : > { %10557 = vst [vmem:[#allocation40_spill] sm:$0xff] %v8474_v33  ;;  %v2074_v61 = vsel %vm1878_vm7, %v10449_v10, 0.0  ;;  %v8485_v40 = vand.u32 7, %v847_v23  ;;  %v2265_v59 = vrot.slane %v10558_v57, 2  ;;  %vm1876_vm8 = vcmp.lt.s32.totalorder %v8480_v5, 7 }
 0x218   : > { %v8483_v13 = vmul.f32 %v2074_v61, %v1784_v53  ;;  %5725 = vmatprep.mubr.msk.f32.mxu1 %vm3778_vm0, %v3743_v60  ;;  %v1785_v7 = vsel %vm1767_vm15, %v1748_v62, %v1749_v41  ;;  %v1786_v31 = vsel %vm1767_vm15, %v1747_v35, %v1748_v62  ;;  %v2072_v53 = vsel %vm1876_vm8, %v10449_v10, 0.0 }
 0x219   : > { %vm1877_vm9 = vcmp.lt.s32.totalorder %v8485_v40, 7  ;;  %v10559_v14 = vmov %v10556_v37  ;;  %v8506_v41 = vsel %vm2284_vm2, %v2264_v51, %v2265_v59  ;;  %v8509_v62 = vmul.f32 %v2072_v53, %v1786_v31 }
 0x21a   : > { %v8502_v23 = vsel %vm2284_vm2, %v2265_v59, %v10559_v14  ;;  %v2073_v35 = vsel %vm1877_vm9, %v10449_v10, 0.0  ;;  %vm2386_vm10 = vcmp.lt.s32.totalorder %v8107_v48, 6  ;;  %v10560_v60 = vrot.slane %v10486_v38, 3 }
 0x21b   : > { %v10561_v61 = vrot.slane %v7437_v42, 3  ;;  %v2137_v37 = vmul.f32 %v2073_v35, %v1785_v7  ;;  %v2582_v14 = vsel %vm2386_vm10, %v10477_v16, 0.0  ;;  %vm2903_vm11 = vcmp.lt.s32.totalorder %v8107_v48, 5 }
 0x21c   : > { %v10562_v59 = vrot.slane %v10486_v38, 4  ;;  %v10563_v51 = vrot.slane %v7437_v42, 4  ;;  %v2646_v53 = vmul.f32 %v2582_v14, %v8128_v2  ;;  %v3099_v29 = vsel %vm2903_vm11, %v10470_v4, 0.0 }
 0x21d   : > { %v2827_v8 = vsel %vm2801_vm3, %v10561_v61, %v10560_v60  ;;  %vm3420_vm12 = vcmp.lt.s32.totalorder %v8107_v48, 4  ;;  %v10564_v60 = vld [vmem:[#allocation29_spill] sm:$0xff]  ;;  %v8531_v35 = vadd.f32 %v2137_v37, %v1684_v6  ;;  %vm2387_vm13 = vcmp.lt.s32.totalorder %v10565_v1, 6 }
 0x21e   : > { %v3344_v31 = vsel %vm3318_vm14, %v10563_v51, %v10562_v59  ;;  %v2194_v7 = vadd.f32 %v10564_v60, %v8019_v25  ;;  %v3163_v61 = vmul.f32 %v3099_v29, %v2827_v8  ;;  %v3616_v27 = vsel %vm3420_vm12, %v10473_v43, 0.0  ;;  %v10568_v25 = vld [vmem:[#allocation28_spill] sm:$0xff] }
 0x21f   : > { %v2710_v42 = vadd.f32 %v2646_v53, %v8157_v22  ;;  %v3680_v33 = vmul.f32 %v3616_v27, %v3344_v31  ;;  %v2583_v59 = vsel %vm2387_vm13, %v10477_v16, 0.0  ;;  %v10566_v2 = vrot.slane %v10495_v0, 3  ;;  %v10571_v31 = vld [vmem:[#allocation104_spill] sm:$0xff] }
 0x220   : > { %v10567_v14 = vrot.slane %v10486_v38, 3  ;;  %v2647_v6 = vmul.f32 %v2583_v59, %v10568_v25  ;;  %vm2904_vm1 = vcmp.lt.s32.totalorder %v10565_v1, 5  ;;  %v10569_v29 = vrot.slane %v10495_v0, 4 }
 0x221   : > { %v10570_v37 = vrot.slane %v10486_v38, 4  ;;  %vm3421_vm4 = vcmp.lt.s32.totalorder %v10565_v1, 4  ;;  %v3227_v27 = vadd.f32 %v3163_v61, %v2710_v42  ;;  %v3100_v8 = vsel %vm2904_vm1, %v10470_v4, 0.0 }
 0x222   : > { %v2826_v48 = vsel %vm2801_vm3, %v10567_v14, %v10566_v2  ;;  %v3617_v51 = vsel %vm3421_vm4, %v10473_v43, 0.0  ;;  %v2195_v53 = vadd.f32 %v8258_v55, %v10571_v31  ;;  %v2711_v60 = vadd.f32 %v2647_v6, %v2194_v7 }
 0x223   : > { %v3343_v22 = vsel %vm3318_vm14, %v10570_v37, %v10569_v29  ;;  %v3164_v59 = vmul.f32 %v3100_v8, %v2826_v48  ;;  %vm2388_vm5 = vcmp.lt.s32.totalorder %v8222_v46, 6  ;;  %v3744_v14 = vadd.f32 %v3680_v33, %v3227_v27  ;;  %v10576_v37 = vld [vmem:[#allocation20_spill] sm:$0xff] }
 0x224   : > { %v3681_v2 = vmul.f32 %v3617_v51, %v3343_v22  ;;  %v2584_v38 = vsel %vm2388_vm5, %v10477_v16, 0.0  ;;  %v10572_v25 = vrot.slane %v7502_v45, 3  ;;  %v10573_v1 = vrot.slane %v10495_v0, 3 }
 0x225   : > { %vm2905_vm6 = vcmp.lt.s32.totalorder %v8222_v46, 5  ;;  %v3228_v42 = vadd.f32 %v3164_v59, %v2711_v60  ;;  %v2648_v55 = vmul.f32 %v2584_v38, %v8236_v18  ;;  %v10574_v48 = vrot.slane %v7502_v45, 4  ;;  %5726 = vmatmul.mubr.msk.f32.gmra.mrb[36].mxu1 %vm3778_vm0, %v3744_v14  ;;  %v10577_v38 = vld [vmem:[#allocation21_spill] sm:$0xff] }
 0x226   : > { %v2825_v61 = vsel %vm2801_vm3, %v10573_v1, %v10572_v25  ;;  %v3101_v7 = vsel %vm2905_vm6, %v10470_v4, 0.0  ;;  %v10575_v33 = vmov %v10569_v29  ;;  %vm3422_vm7 = vcmp.lt.s32.totalorder %v8222_v46, 4 }
 0x227   : > { %v3342_v6 = vsel %vm3318_vm14, %v10575_v33, %v10574_v48  ;;  %v3165_v29 = vmul.f32 %v3101_v7, %v2825_v61  ;;  %v8577_v22 = vmul.f32 %v10576_v37, %v6207_v63  ;;  %v1753_v18 = vrot.slane %v10576_v37, 1 }
 0x228   : > { %v3745_v27 = vadd.f32 %v3681_v2, %v3228_v42  ;;  %v2712_v8 = vadd.f32 %v2648_v55, %v2195_v53  ;;  %v3618_v51 = vsel %vm3422_vm7, %v10473_v43, 0.0  ;;  %v10125_v0 = vrot.slane %v10576_v37, 2 }
 0x229   : > { %v3682_v31 = vmul.f32 %v3618_v51, %v3342_v6  ;;  %v849_v14 = vadd.s32 376, %v6174_v44  ;;  %v8588_v25 = vmul.f32 %v6207_v63, %v10577_v38  ;;  %v1751_v53 = vrot.slane %v10577_v38, 1 }
 0x22a   : > { %5728 = vmatprep.mubr.msk.f32.mxu1 %vm3778_vm0, %v3745_v27  ;;  %v3229_v46 = vadd.f32 %v3165_v29, %v2712_v8  ;;  %v2268_v2 = vrot.slane %v10577_v38, 2  ;;  %v2196_v55 = vadd.f32 %v8324_v47, %v8218_v9  ;;  %v10578_v48 = vrot.slane %v10554_v28, 1 }
 0x22b   : > { %v8592_v1 = vand.u32 7, %v849_v14  ;;  %v10579_v6 = vrot.slane %v10554_v28, 2  ;;  %vm2389_vm8 = vcmp.lt.s32.totalorder %v8291_v11, 6  ;;  %v10580_v9 = vrot.slane %v10526_v3, 3 }
 0x22c   : > { %v3746_v7 = vadd.f32 %v3682_v31, %v3229_v46  ;;  %v1783_v33 = vsel %vm1767_vm15, %v10578_v48, %v1751_v53  ;;  %v2585_v27 = vsel %vm2389_vm8, %v10477_v16, 0.0  ;;  %v10581_v47 = vrot.slane %v7502_v45, 3 }
 0x22d   : > { %v8606_v29 = vsel %vm2284_vm2, %v10579_v6, %v2268_v2  ;;  %vm1879_vm9 = vcmp.lt.s32.totalorder %v8592_v1, 7  ;;  %vm2906_vm10 = vcmp.lt.s32.totalorder %v8291_v11, 5  ;;  %v2649_v31 = vmul.f32 %v2585_v27, %v8321_v39  ;;  %v10584_v39 = vld [vmem:[#allocation106_spill] sm:$0xff] }
 0x22e   : > { %v2824_v8 = vsel %vm2801_vm3, %v10581_v47, %v10580_v9  ;;  %5729 = vmatmul.mubr.msk.f32.gmra.mrb[38].mxu1 %vm3778_vm0, %v3746_v7  ;;  %v2075_v51 = vsel %vm1879_vm9, %v10449_v10, 0.0  ;;  %v3102_v14 = vsel %vm2906_vm10, %v10470_v4, 0.0  ;;  %v10582_v46 = vrot.slane %v10526_v3, 4 }
 0x22f   : > { %v10583_v48 = vrot.slane %v7502_v45, 4  ;;  %v8628_v59 = vmul.f32 %v2075_v51, %v1783_v33  ;;  %v3166_v9 = vmul.f32 %v3102_v14, %v2824_v8  ;;  %vm3423_vm11 = vcmp.lt.s32.totalorder %v8291_v11, 4 }
 0x230   : > { %v852_v7 = vadd.s32 400, %v6174_v44  ;;  %v2713_v47 = vadd.f32 %v2649_v31, %v2196_v55  ;;  %v3619_v60 = vsel %vm3423_vm11, %v10473_v43, 0.0  ;;  %v8635_v27 = vmul.f32 %v10584_v39, %v6207_v63 }
 0x231   : > { %v3341_v6 = vsel %vm3318_vm14, %v10583_v48, %v10582_v46  ;;  %v10123_v42 = vrot.slane %v10584_v39, 1  ;;  %v10124_v33 = vrot.slane %v10584_v39, 2  ;;  %v850_v31 = vadd.s32 384, %v6174_v44  ;;  %v10586_v46 = vld [vmem:[#allocation22_spill] sm:$0xff] }
 0x232   : > { %10585 = vst [vmem:[#allocation47_spill] sm:$0xff] %v8635_v27  ;;  %v3683_v45 = vmul.f32 %v3619_v60, %v3341_v6  ;;  %v8638_v61 = vand.u32 7, %v852_v7  ;;  %v3230_v51 = vadd.f32 %v3166_v9, %v2713_v47  ;;  %v851_v14 = vadd.s32 392, %v6174_v44 }
 0x233   : > { %v1780_v11 = vsel %vm1767_vm15, %v1753_v18, %v10123_v42  ;;  %v8655_v60 = vsel %vm2284_vm2, %v10125_v0, %v10124_v33  ;;  %v1688_v48 = vmul.f32 %v6207_v63, %v10586_v46  ;;  %v8661_v7 = vand.u32 7, %v850_v31 }
 0x234   : > { %vm1882_vm12 = vcmp.lt.s32.totalorder %v8638_v61, 7  ;;  %v3747_v6 = vadd.f32 %v3683_v45, %v3230_v51  ;;  %v1752_v47 = vrot.slane %v10586_v46, 1  ;;  %v8666_v8 = vand.u32 7, %v851_v14 }
 0x235   : > { %v2078_v9 = vsel %vm1882_vm12, %v10449_v10, 0.0  ;;  %v2269_v42 = vrot.slane %v10586_v46, 2  ;;  %vm1880_vm13 = vcmp.lt.s32.totalorder %v8661_v7, 7  ;;  %v10587_v31 = vrot.slane %v10576_v37, 2 }
 0x236   : > { %v8664_v55 = vmul.f32 %v2078_v9, %v1780_v11  ;;  %5731 = vmatprep.mubr.msk.f32.mxu1 %vm3778_vm0, %v3747_v6  ;;  %v1781_v0 = vsel %vm1767_vm15, %v1752_v47, %v1753_v18  ;;  %v1782_v45 = vsel %vm1767_vm15, %v1751_v53, %v1752_v47  ;;  %vm1881_vm1 = vcmp.lt.s32.totalorder %v8666_v8, 7 }
 0x237   : > { %v2076_v11 = vsel %vm1880_vm13, %v10449_v10, 0.0  ;;  %v8683_v14 = vsel %vm2284_vm2, %v2269_v42, %v10587_v31  ;;  %v8687_v18 = vsel %vm2284_vm2, %v2268_v2, %v2269_v42  ;;  %v2077_v53 = vsel %vm1881_vm1, %v10449_v10, 0.0 }
 0x238   : > { %v8690_v6 = vmul.f32 %v2076_v11, %v1782_v45  ;;  %vm2390_vm4 = vcmp.lt.s32.totalorder %v8296_v32, 6  ;;  %v10588_v9 = vrot.slane %v7496_v36, 3  ;;  %v10589_v47 = vrot.slane %v10526_v3, 3 }
 0x239   : > { %v2141_v33 = vmul.f32 %v2077_v53, %v1781_v0  ;;  %v2586_v31 = vsel %vm2390_vm4, %v10477_v16, 0.0  ;;  %vm2907_vm5 = vcmp.lt.s32.totalorder %v8296_v32, 5  ;;  %v10590_v2 = vrot.slane %v7496_v36, 4 }
 0x23a   : > { %v2823_v51 = vsel %vm2801_vm3, %v10589_v47, %v10588_v9  ;;  %v10591_v42 = vrot.slane %v10526_v3, 4  ;;  %v2650_v11 = vmul.f32 %v2586_v31, %v8317_v17  ;;  %v3103_v27 = vsel %vm2907_vm5, %v10470_v4, 0.0  ;;  %v8716_v3 = vpop.f32.mrb[0].mxu1 }
 0x23b   : > { %vm3424_vm6 = vcmp.lt.s32.totalorder %v8296_v32, 4  ;;  %v2198_v0 = vadd.f32 %v8294_v26, %v8207_v24  ;;  %v8712_v53 = vadd.f32 %v2141_v33, %v1688_v48  ;;  %v3167_v9 = vmul.f32 %v3103_v27, %v2823_v51  ;;  %10592 = vst [vmem:[#allocation48_spill] sm:$0xff] %v8716_v3 }
 0x23c   : > { %v3340_v45 = vsel %vm3318_vm14, %v10591_v42, %v10590_v2  ;;  %v3620_v47 = vsel %vm3424_vm6, %v10473_v43, 0.0  ;;  %vm2391_vm7 = vcmp.lt.s32.totalorder %v8268_v15, 6  ;;  %v2714_v2 = vadd.f32 %v2650_v11, %v8346_v19 }
 0x23d   : > { %v3684_v42 = vmul.f32 %v3620_v47, %v3340_v45  ;;  %v2587_v17 = vsel %vm2391_vm7, %v10477_v16, 0.0  ;;  %v10593_v31 = vrot.slane %v7520_v50, 3  ;;  %v10594_v32 = vrot.slane %v7496_v36, 3 }
 0x23e   : > { %v2651_v26 = vmul.f32 %v2587_v17, %v8285_v34  ;;  %vm2908_vm8 = vcmp.lt.s32.totalorder %v8268_v15, 5  ;;  %v10595_v27 = vrot.slane %v7520_v50, 4  ;;  %v10596_v33 = vrot.slane %v7496_v36, 4 }
 0x23f   : > { %v2822_v24 = vsel %vm2801_vm3, %v10594_v32, %v10593_v31  ;;  %vm3425_vm9 = vcmp.lt.s32.totalorder %v8268_v15, 4  ;;  %v3231_v48 = vadd.f32 %v3167_v9, %v2714_v2  ;;  %v3104_v51 = vsel %vm2908_vm8, %v10470_v4, 0.0 }
 0x240   : > { %v3339_v19 = vsel %vm3318_vm14, %v10596_v33, %v10595_v27  ;;  %v3621_v45 = vsel %vm3425_vm9, %v10473_v43, 0.0  ;;  %v2199_v11 = vadd.f32 %v8447_v20, %v8265_v12  ;;  %v2715_v34 = vadd.f32 %v2651_v26, %v2198_v0 }
 0x241   : > { %v3168_v47 = vmul.f32 %v3104_v51, %v2822_v24  ;;  %v3685_v17 = vmul.f32 %v3621_v45, %v3339_v19  ;;  %vm2392_vm10 = vcmp.lt.s32.totalorder %v8411_v58, 6  ;;  %v3748_v31 = vadd.f32 %v3684_v42, %v3231_v48 }
 0x242   : > { %v2588_v36 = vsel %vm2392_vm10, %v10477_v16, 0.0  ;;  %v10597_v32 = vrot.slane %v10547_v52, 3  ;;  %v10598_v15 = vrot.slane %v7520_v50, 3  ;;  %vm2909_vm11 = vcmp.lt.s32.totalorder %v8411_v58, 5 }
 0x243   : > { %v3232_v2 = vadd.f32 %v3168_v47, %v2715_v34  ;;  %v2652_v12 = vmul.f32 %v2588_v36, %v8425_v30  ;;  %v3105_v20 = vsel %vm2909_vm11, %v10470_v4, 0.0  ;;  %v10599_v0 = vrot.slane %v10547_v52, 4  ;;  %5732 = vmatmul.mubr.msk.f32.gmra.mrb[40].mxu1 %vm3778_vm0, %v3748_v31  ;;  %v10602_v36 = vld [vmem:[#allocation33_spill] sm:$0xff] }
 0x244   : > { %v2821_v9 = vsel %vm2801_vm3, %v10598_v15, %v10597_v32  ;;  %v10600_v42 = vmov %v10595_v27  ;;  %vm3426_vm12 = vcmp.lt.s32.totalorder %v8411_v58, 4  ;;  %v10601_v27 = vld [vmem:[#allocation32_spill] sm:$0xff]  ;;  %v853_v31 = vadd.s32 408, %v6174_v44 }
 0x245   : > { %v3338_v24 = vsel %vm3318_vm14, %v10600_v42, %v10599_v0  ;;  %v3169_v26 = vmul.f32 %v3105_v20, %v2821_v9  ;;  %v8760_v33 = vmul.f32 %v10601_v27, %v6207_v63  ;;  %v10128_v30 = vrot.slane %v10601_v27, 1 }
 0x246   : > { %v3749_v19 = vadd.f32 %v3685_v17, %v3232_v2  ;;  %v2716_v48 = vadd.f32 %v2652_v12, %v2199_v11  ;;  %v3622_v51 = vsel %vm3426_vm12, %v10473_v43, 0.0  ;;  %v10130_v50 = vrot.slane %v10601_v27, 2 }
 0x247   : > { %v3686_v45 = vmul.f32 %v3622_v51, %v3338_v24  ;;  %v8771_v32 = vmul.f32 %v6207_v63, %v10602_v36  ;;  %v1755_v11 = vrot.slane %v10602_v36, 1  ;;  %v10126_v17 = vrot.slane %v10602_v36, 2 }
 0x248   : > { %5734 = vmatprep.mubr.msk.f32.mxu1 %vm3778_vm0, %v3749_v19  ;;  %v3233_v58 = vadd.f32 %v3169_v26, %v2716_v48  ;;  %v8775_v15 = vand.u32 7, %v853_v31  ;;  %v2200_v12 = vadd.f32 %v8509_v62, %v8407_v21  ;;  %v10603_v0 = vrot.slane %v10584_v39, 1  ;;  %v8794_v19 = vpop.f32.mrb[1].mxu1 }
 0x249   : > { %v10604_v24 = vrot.slane %v10584_v39, 2  ;;  %vm2393_vm13 = vcmp.lt.s32.totalorder %v8480_v5, 6  ;;  %10605 = vst [vmem:[#allocation49_spill] sm:$0xff] %v8794_v19  ;;  %v10606_v62 = vrot.slane %v10558_v57, 3  ;;  %v10607_v48 = vrot.slane %v10547_v52, 3  ;;  %v8815_v34 = vpop.f32.mrb[2].mxu1 }
 0x24a   : > { %v3750_v20 = vadd.f32 %v3686_v45, %v3233_v58  ;;  %v1779_v42 = vsel %vm1767_vm15, %v10603_v0, %v1755_v11  ;;  %vm1883_vm1 = vcmp.lt.s32.totalorder %v8775_v15, 7  ;;  %v2589_v21 = vsel %vm2393_vm13, %v10477_v16, 0.0  ;;  %10610 = vst [vmem:[#allocation41_spill] sm:$0xff] %v8815_v34 }
 0x24b   : > { %v8791_v26 = vsel %vm2284_vm2, %v10604_v24, %v10126_v17  ;;  %v2820_v51 = vsel %vm2801_vm3, %v10607_v48, %v10606_v62  ;;  %vm2910_vm4 = vcmp.lt.s32.totalorder %v8480_v5, 5  ;;  %v2079_v45 = vsel %vm1883_vm1, %v10449_v10, 0.0  ;;  %v4938_v62 = vld [vmem:[%s10038_s2] sm:$0xff] }
 0x24c   : > { %5735 = vmatmul.mubr.msk.f32.gmra.mrb[42].mxu1 %vm3778_vm0, %v3750_v20  ;;  %v2653_v31 = vmul.f32 %v2589_v21, %v8506_v41  ;;  %v3106_v58 = vsel %vm2910_vm4, %v10470_v4, 0.0  ;;  %v10608_v0 = vrot.slane %v10558_v57, 4  ;;  %v10609_v24 = vrot.slane %v10547_v52, 4  ;;  %v8824_v21 = vpop.f32.mrb[3].mxu1  ;;  %5767 = vmatprep.subr.mxu1 %v4938_v62 }
 0x24d   : > { %v8820_v20 = vmul.f32 %v2079_v45, %v1779_v42  ;;  %v3170_v48 = vmul.f32 %v3106_v58, %v2820_v51  ;;  %vm3427_vm5 = vcmp.lt.s32.totalorder %v8480_v5, 4  ;;  %v856_v41 = vadd.s32 432, %v6174_v44  ;;  %10611 = vst [vmem:[#allocation44_spill] sm:$0xff] %v8824_v21  ;;  %5768 = vmatpush3.msra.mxu1 %v4938_v62  ;;  %v10614_v62 = vld [vmem:[#allocation26_spill] sm:$0xff] }
 0x24e   : > { %v3337_v47 = vsel %vm3318_vm14, %v10609_v24, %v10608_v0  ;;  %v2717_v52 = vadd.f32 %v2653_v31, %v2200_v12  ;;  %v3623_v2 = vsel %vm3427_vm5, %v10473_v43, 0.0  ;;  %v10612_v0 = vld [vmem:[#allocation34_spill] sm:$0xff]  ;;  %v854_v17 = vadd.s32 416, %v6174_v44 }
 0x24f   : > { %v8829_v24 = vmul.f32 %v10612_v0, %v6207_v63  ;;  %v10127_v9 = vrot.slane %v10612_v0, 1  ;;  %v3687_v42 = vmul.f32 %v3623_v2, %v3337_v47  ;;  %v8832_v45 = vand.u32 7, %v856_v41 }
 0x250   : > { %v10129_v5 = vrot.slane %v10612_v0, 2  ;;  %v3234_v58 = vadd.f32 %v3170_v48, %v2717_v52  ;;  %v855_v2 = vadd.s32 424, %v6174_v44  ;;  %v1692_v48 = vmul.f32 %v6207_v63, %v10614_v62 }
 0x251   : > { %10613 = vst [vmem:[#allocation45_spill] sm:$0xff] %v8829_v24  ;;  %v1776_v12 = vsel %vm1767_vm15, %v10128_v30, %v10127_v9  ;;  %vm1886_vm6 = vcmp.lt.s32.totalorder %v8832_v45, 7  ;;  %v8857_v31 = vand.u32 7, %v854_v17  ;;  %v1756_v51 = vrot.slane %v10614_v62, 1 }
 0x252   : > { %v8851_v47 = vsel %vm2284_vm2, %v10130_v50, %v10129_v5  ;;  %v3751_v41 = vadd.f32 %v3687_v42, %v3234_v58  ;;  %v2082_v52 = vsel %vm1886_vm6, %v10449_v10, 0.0  ;;  %v8862_v30 = vand.u32 7, %v855_v2  ;;  %v8866_v50 = vpop.f32.mrb[4].mxu1 }
 0x253   : > { %v8860_v9 = vmul.f32 %v2082_v52, %v1776_v12  ;;  %v2273_v21 = vrot.slane %v10614_v62, 2  ;;  %10615 = vst [vmem:[#allocation42_spill] sm:$0xff] %v8866_v50  ;;  %v10616_v42 = vrot.slane %v10601_v27, 1  ;;  %v1778_v58 = vsel %vm1767_vm15, %v1755_v11, %v1756_v51  ;;  %v8877_v2 = vpop.f32.mrb[5].mxu1 }
 0x254   : > { %5737 = vmatprep.mubr.msk.f32.mxu1 %vm3778_vm0, %v3751_v41  ;;  %vm1884_vm7 = vcmp.lt.s32.totalorder %v8857_v31, 7  ;;  %10617 = vst [vmem:[#allocation46_spill] sm:$0xff] %v8877_v2  ;;  %vm1885_vm8 = vcmp.lt.s32.totalorder %v8862_v30, 7  ;;  %v10618_v41 = vrot.slane %v10601_v27, 2  ;;  %vm2394_vm9 = vcmp.lt.s32.totalorder %v8485_v40, 6 }
 0x255   : > { %v1777_v17 = vsel %vm1767_vm15, %v1756_v51, %v10616_v42  ;;  %v2080_v52 = vsel %vm1884_vm7, %v10449_v10, 0.0  ;;  %v10619_v42 = vrot.slane %v10602_v36, 2  ;;  %v2081_v51 = vsel %vm1885_vm8, %v10449_v10, 0.0 }
 0x256   : > { %v8885_v5 = vsel %vm2284_vm2, %v2273_v21, %v10618_v41  ;;  %v8894_v12 = vmul.f32 %v2080_v52, %v1778_v58  ;;  %v10620_v2 = vrot.slane %v10546_v49, 3  ;;  %v10621_v50 = vrot.slane %v10558_v57, 3  ;;  %v8911_v52 = vpop.f32.mrb[6].mxu1 }
 0x257   : > { %v8891_v11 = vsel %vm2284_vm2, %v10619_v42, %v2273_v21  ;;  %v2145_v34 = vmul.f32 %v2081_v51, %v1777_v17  ;;  %v2590_v19 = vsel %vm2394_vm9, %v10477_v16, 0.0  ;;  %vm2911_vm10 = vcmp.lt.s32.totalorder %v8485_v40, 5  ;;  %10624 = vst [vmem:[#allocation50_spill] sm:$0xff] %v8911_v52  ;;  %v8918_v17 = vpop.f32.mrb[7].mxu1 }
 0x258   : > { %v2819_v41 = vsel %vm2801_vm3, %v10621_v50, %v10620_v2  ;;  %v10622_v21 = vrot.slane %v10546_v49, 4  ;;  %v10623_v42 = vrot.slane %v10558_v57, 4  ;;  %v2654_v3 = vmul.f32 %v2590_v19, %v8502_v23  ;;  %10625 = vst [vmem:[#allocation51_spill] sm:$0xff] %v8918_v17 }
 0x259   : > { %v3107_v24 = vsel %vm2911_vm10, %v10470_v4, 0.0  ;;  %vm3428_vm11 = vcmp.lt.s32.totalorder %v8485_v40, 4  ;;  %v2202_v50 = vadd.f32 %v8483_v13, %v8396_v56  ;;  %v8920_v2 = vadd.f32 %v2145_v34, %v1692_v48  ;;  %v10628_v13 = vld [vmem:[#allocation40_spill] sm:$0xff] }
 0x25a   : > { %v3336_v58 = vsel %vm3318_vm14, %v10623_v42, %v10622_v21  ;;  %v3171_v51 = vmul.f32 %v3107_v24, %v2819_v41  ;;  %v3624_v57 = vsel %vm3428_vm11, %v10473_v43, 0.0  ;;  %vm2395_vm12 = vcmp.lt.s32.totalorder %v8457_v54, 6 }
 0x25b   : > { %v2718_v21 = vadd.f32 %v2654_v3, %v8531_v35  ;;  %v3688_v42 = vmul.f32 %v3624_v57, %v3336_v58  ;;  %v2591_v23 = vsel %vm2395_vm12, %v10477_v16, 0.0  ;;  %v10626_v19 = vrot.slane %v10554_v28, 3  ;;  %v10631_v57 = vld [vmem:[#allocation43_spill] sm:$0xff] }
 0x25c   : > { %v10627_v40 = vrot.slane %v10546_v49, 3  ;;  %v2655_v34 = vmul.f32 %v2591_v23, %v10628_v13  ;;  %vm2912_vm13 = vcmp.lt.s32.totalorder %v8457_v54, 5  ;;  %v10629_v24 = vrot.slane %v10554_v28, 4 }
 0x25d   : > { %v10630_v48 = vrot.slane %v10546_v49, 4  ;;  %vm3429_vm1 = vcmp.lt.s32.totalorder %v8457_v54, 4  ;;  %v3235_v3 = vadd.f32 %v3171_v51, %v2718_v21  ;;  %v3108_v41 = vsel %vm2912_vm13, %v10470_v4, 0.0 }
 0x25e   : > { %v2818_v56 = vsel %vm2801_vm3, %v10627_v40, %v10626_v19  ;;  %v3625_v58 = vsel %vm3429_vm1, %v10473_v43, 0.0  ;;  %v2203_v19 = vadd.f32 %v8628_v59, %v10631_v57  ;;  %v2719_v23 = vadd.f32 %v2655_v34, %v2202_v50 }
 0x25f   : > { %v3335_v35 = vsel %vm3318_vm14, %v10630_v48, %v10629_v24  ;;  %v3172_v40 = vmul.f32 %v3108_v41, %v2818_v56  ;;  %vm2396_vm4 = vcmp.lt.s32.totalorder %v8592_v1, 6  ;;  %v3752_v17 = vadd.f32 %v3688_v42, %v3235_v3 }
 0x260   : > { %v3689_v13 = vmul.f32 %v3625_v58, %v3335_v35  ;;  %v2592_v49 = vsel %vm2396_vm4, %v10477_v16, 0.0  ;;  %v10632_v24 = vrot.slane %v10577_v38, 3  ;;  %v10633_v54 = vrot.slane %v10554_v28, 3  ;;  %v10636_v35 = vld [vmem:[#allocation27_spill] sm:$0xff] }
 0x261   : > { %vm2913_vm5 = vcmp.lt.s32.totalorder %v8592_v1, 5  ;;  %v3236_v21 = vadd.f32 %v3172_v40, %v2719_v23  ;;  %v2656_v59 = vmul.f32 %v2592_v49, %v8606_v29  ;;  %v10634_v56 = vrot.slane %v10577_v38, 4  ;;  %5738 = vmatmul.mubr.msk.f32.gmra.mrb[44].mxu1 %vm3778_vm0, %v3752_v17 }
 0x262   : > { %v2817_v51 = vsel %vm2801_vm3, %v10633_v54, %v10632_v24  ;;  %v3109_v50 = vsel %vm2913_vm5, %v10470_v4, 0.0  ;;  %v10635_v42 = vrot.slane %v10554_v28, 4  ;;  %vm3430_vm6 = vcmp.lt.s32.totalorder %v8592_v1, 4  ;;  %v10637_v24 = vld [vmem:[#allocation30_spill] sm:$0xff] }
 0x263   : > { %v3173_v48 = vmul.f32 %v3109_v50, %v2817_v51  ;;  %v8966_v3 = vmul.f32 %v10636_v35, %v6207_v63  ;;  %v3753_v41 = vadd.f32 %v3689_v13, %v3236_v21  ;;  %v2720_v58 = vadd.f32 %v2656_v59, %v2203_v19 }
 0x264   : > { %v3334_v34 = vsel %vm3318_vm14, %v10635_v42, %v10634_v56  ;;  %v3626_v57 = vsel %vm3430_vm6, %v10473_v43, 0.0  ;;  %v857_v49 = vadd.s32 440, %v6174_v44  ;;  %v8977_v54 = vmul.f32 %v6207_v63, %v10637_v24  ;;  %v8987_v56 = vpop.f32.mrb[8].mxu1 }
 0x265   : > { %v3690_v23 = vmul.f32 %v3626_v57, %v3334_v34  ;;  %5740 = vmatprep.mubr.msk.f32.mxu1 %vm3778_vm0, %v3753_v41  ;;  %v3237_v1 = vadd.f32 %v3173_v48, %v2720_v58  ;;  %v1759_v19 = vrot.slane %v10637_v24, 1  ;;  %v2276_v13 = vrot.slane %v10637_v24, 2  ;;  %10638 = vst [vmem:[#allocation52_spill] sm:$0xff] %v8987_v56  ;;  %v9000_v57 = vpop.f32.mrb[9].mxu1 }
 0x266   : > { %v8981_v51 = vand.u32 7, %v857_v49  ;;  %v2204_v50 = vadd.f32 %v8690_v6, %v8588_v25  ;;  %v10639_v34 = vrot.slane %v10612_v0, 1  ;;  %v10640_v41 = vrot.slane %v10612_v0, 2  ;;  %10641 = vst [vmem:[#allocation53_spill] sm:$0xff] %v9000_v57 }
 0x267   : > { %v3754_v42 = vadd.f32 %v3690_v23, %v3237_v1  ;;  %vm2397_vm7 = vcmp.lt.s32.totalorder %v8661_v7, 6  ;;  %v10642_v6 = vrot.slane %v10586_v46, 3  ;;  %v10643_v23 = vrot.slane %v10577_v38, 3 }
 0x268   : > { %v1775_v48 = vsel %vm1767_vm15, %v10639_v34, %v1759_v19  ;;  %v8997_v58 = vsel %vm2284_vm2, %v10640_v41, %v2276_v13  ;;  %vm1887_vm8 = vcmp.lt.s32.totalorder %v8981_v51, 7  ;;  %v2593_v25 = vsel %vm2397_vm7, %v10477_v16, 0.0 }
 0x269   : > { %v2816_v49 = vsel %vm2801_vm3, %v10643_v23, %v10642_v6  ;;  %vm2914_vm9 = vcmp.lt.s32.totalorder %v8661_v7, 5  ;;  %5741 = vmatmul.mubr.msk.f32.gmra.mrb[46].mxu1 %vm3778_vm0, %v3754_v42  ;;  %v2083_v1 = vsel %vm1887_vm8, %v10449_v10, 0.0  ;;  %v2657_v34 = vmul.f32 %v2593_v25, %v8687_v18  ;;  %v9025_v23 = vpop.f32.mrb[10].mxu1  ;;  %v10647_v25 = vld [vmem:[#allocation31_spill] sm:$0xff] }
 0x26a   : > { %v3110_v41 = vsel %vm2914_vm9, %v10470_v4, 0.0  ;;  %v10644_v17 = vrot.slane %v10586_v46, 4  ;;  %v10645_v40 = vrot.slane %v10577_v38, 4  ;;  %v9021_v21 = vmul.f32 %v2083_v1, %v1775_v48  ;;  %10646 = vst [vmem:[#allocation56_spill] sm:$0xff] %v9025_v23  ;;  %v9033_v57 = vpop.f32.mrb[11].mxu1 }
 0x26b   : > { %v3174_v6 = vmul.f32 %v3110_v41, %v2816_v49  ;;  %vm3431_vm10 = vcmp.lt.s32.totalorder %v8661_v7, 4  ;;  %v860_v42 = vadd.s32 464, %v6174_v44  ;;  %v2721_v28 = vadd.f32 %v2657_v34, %v2204_v50  ;;  %10649 = vst [vmem:[#allocation59_spill] sm:$0xff] %v9033_v57 }
 0x26c   : > { %v3333_v59 = vsel %vm3318_vm14, %v10645_v40, %v10644_v17  ;;  %v3627_v18 = vsel %vm3431_vm10, %v10473_v43, 0.0  ;;  %v9030_v29 = vmul.f32 %v10647_v25, %v6207_v63  ;;  %v10131_v38 = vrot.slane %v10647_v25, 1 }
 0x26d   : > { %v3691_v40 = vmul.f32 %v3627_v18, %v3333_v59  ;;  %v9035_v17 = vand.u32 7, %v860_v42  ;;  %v10132_v7 = vrot.slane %v10647_v25, 2  ;;  %v3238_v49 = vadd.f32 %v3174_v6, %v2721_v28  ;;  %v10653_v42 = vld [vmem:[#allocation35_spill] sm:$0xff] }
 0x26e   : > { %10648 = vst [vmem:[#allocation57_spill] sm:$0xff] %v9030_v29  ;;  %v10650_v50 = vrot.slane %v10636_v35, 1  ;;  %v858_v41 = vadd.s32 448, %v6174_v44  ;;  %v10651_v59 = vrot.slane %v10636_v35, 2  ;;  %v859_v6 = vadd.s32 456, %v6174_v44 }
 0x26f   : > { %vm1890_vm11 = vcmp.lt.s32.totalorder %v9035_v17, 7  ;;  %v1696_v18 = vmul.f32 %v6207_v63, %v10653_v42  ;;  %v2277_v56 = vrot.slane %v10653_v42, 2  ;;  %vm2398_vm1 = vcmp.lt.s32.totalorder %v8666_v8, 6 }
 0x270   : > { %v1772_v1 = vsel %vm1767_vm15, %v10650_v50, %v10131_v38  ;;  %v9054_v28 = vsel %vm2284_vm2, %v10651_v59, %v10132_v7  ;;  %v3755_v50 = vadd.f32 %v3691_v40, %v3238_v49  ;;  %v2086_v34 = vsel %vm1890_vm11, %v10449_v10, 0.0 }
 0x271   : > { %10652 = vst [vmem:[#allocation58_spill] sm:$0xff] %v9054_v28  ;;  %v9060_v48 = vand.u32 7, %v858_v41  ;;  %v1760_v38 = vrot.slane %v10653_v42, 1  ;;  %v9063_v57 = vmul.f32 %v2086_v34, %v1772_v1  ;;  %v9065_v23 = vand.u32 7, %v859_v6 }
 0x272   : > { %5743 = vmatprep.mubr.msk.f32.mxu1 %vm3778_vm0, %v3755_v50  ;;  %v10654_v7 = vrot.slane %v10636_v35, 1  ;;  %v10655_v41 = vmov %v10651_v59  ;;  %v10656_v50 = vrot.slane %v10576_v37, 3  ;;  %v10657_v1 = vrot.slane %v10586_v46, 3 }
 0x273   : > { %v1774_v49 = vsel %vm1767_vm15, %v1759_v19, %v1760_v38  ;;  %vm1888_vm12 = vcmp.lt.s32.totalorder %v9060_v48, 7  ;;  %vm1889_vm13 = vcmp.lt.s32.totalorder %v9065_v23, 7  ;;  %v9084_v6 = vsel %vm2284_vm2, %v2277_v56, %v10655_v41 }
 0x274   : > { %v1773_v40 = vsel %vm1767_vm15, %v1760_v38, %v10654_v7  ;;  %v2084_v34 = vsel %vm1888_vm12, %v10449_v10, 0.0  ;;  %v9088_v7 = vsel %vm2284_vm2, %v2276_v13, %v2277_v56  ;;  %v2085_v19 = vsel %vm1889_vm13, %v10449_v10, 0.0 }
 0x275   : > { %v9091_v38 = vmul.f32 %v2084_v34, %v1774_v49  ;;  %v2815_v59 = vsel %vm2801_vm3, %v10657_v1, %v10656_v50  ;;  %v2149_v52 = vmul.f32 %v2085_v19, %v1773_v40  ;;  %v2594_v41 = vsel %vm2398_vm1, %v10477_v16, 0.0 }
 0x276   : > { %vm2915_vm4 = vcmp.lt.s32.totalorder %v8666_v8, 5  ;;  %v10658_v13 = vrot.slane %v10576_v37, 4  ;;  %v10659_v56 = vrot.slane %v10586_v46, 4  ;;  %v2658_v34 = vmul.f32 %v2594_v41, %v8683_v14 }
 0x277   : > { %v3111_v29 = vsel %vm2915_vm4, %v10470_v4, 0.0  ;;  %vm3432_vm5 = vcmp.lt.s32.totalorder %v8666_v8, 4  ;;  %v2206_v40 = vadd.f32 %v8664_v55, %v8577_v22  ;;  %v9113_v1 = vadd.f32 %v2149_v52, %v1696_v18  ;;  %v9125_v22 = vpop.f32.mrb[12].mxu1 }
 0x278   : > { %v3332_v49 = vsel %vm3318_vm14, %v10659_v56, %v10658_v13  ;;  %v3175_v19 = vmul.f32 %v3111_v29, %v2815_v59  ;;  %v3628_v50 = vsel %vm3432_vm5, %v10473_v43, 0.0  ;;  %vm2399_vm6 = vcmp.lt.s32.totalorder %v8638_v61, 6  ;;  %10662 = vst [vmem:[#allocation67_spill] sm:$0xff] %v9125_v22  ;;  %v9136_v18 = vpop.f32.mrb[13].mxu1 }
 0x279   : > { %v2722_v46 = vadd.f32 %v2658_v34, %v8712_v53  ;;  %v3692_v28 = vmul.f32 %v3628_v50, %v3332_v49  ;;  %v2595_v13 = vsel %vm2399_vm6, %v10477_v16, 0.0  ;;  %v10660_v14 = vrot.slane %v10584_v39, 3  ;;  %10665 = vst [vmem:[#allocation68_spill] sm:$0xff] %v9136_v18  ;;  %v10666_v34 = vld [vmem:[#allocation47_spill] sm:$0xff] }
 0x27a   : > { %v10661_v41 = vrot.slane %v10576_v37, 3  ;;  %v2659_v55 = vmul.f32 %v2595_v13, %v8655_v60  ;;  %vm2916_vm7 = vcmp.lt.s32.totalorder %v8638_v61, 5  ;;  %v10663_v52 = vrot.slane %v10584_v39, 4 }
 0x27b   : > { %v10664_v53 = vrot.slane %v10576_v37, 4  ;;  %vm3433_vm8 = vcmp.lt.s32.totalorder %v8638_v61, 4  ;;  %v3239_v59 = vadd.f32 %v3175_v19, %v2722_v46  ;;  %v3112_v56 = vsel %vm2916_vm7, %v10470_v4, 0.0  ;;  %v9151_v46 = vpop.f32.mrb[14].mxu1 }
 0x27c   : > { %v2814_v8 = vsel %vm2801_vm3, %v10661_v41, %v10660_v14  ;;  %v3629_v49 = vsel %vm3433_vm8, %v10473_v43, 0.0  ;;  %v2207_v60 = vadd.f32 %v8820_v20, %v10666_v34  ;;  %v2723_v50 = vadd.f32 %v2659_v55, %v2206_v40  ;;  %10669 = vst [vmem:[#allocation69_spill] sm:$0xff] %v9151_v46 }
 0x27d   : > { %v3331_v29 = vsel %vm3318_vm14, %v10664_v53, %v10663_v52  ;;  %v3176_v13 = vmul.f32 %v3112_v56, %v2814_v8  ;;  %vm2400_vm9 = vcmp.lt.s32.totalorder %v8775_v15, 6  ;;  %v3756_v37 = vadd.f32 %v3692_v28, %v3239_v59  ;;  %v10673_v56 = vld [vmem:[#allocation36_spill] sm:$0xff] }
 0x27e   : > { %v3693_v14 = vmul.f32 %v3629_v49, %v3331_v29  ;;  %v2596_v41 = vsel %vm2400_vm9, %v10477_v16, 0.0  ;;  %v10667_v61 = vrot.slane %v10602_v36, 3  ;;  %v10668_v52 = vrot.slane %v10584_v39, 3  ;;  %v9161_v29 = vpop.f32.mrb[15].mxu1 }
 0x27f   : > { %vm2917_vm10 = vcmp.lt.s32.totalorder %v8775_v15, 5  ;;  %v3240_v20 = vadd.f32 %v3176_v13, %v2723_v50  ;;  %v2660_v40 = vmul.f32 %v2596_v41, %v8791_v26  ;;  %v10670_v28 = vrot.slane %v10602_v36, 4  ;;  %10672 = vst [vmem:[#allocation60_spill] sm:$0xff] %v9161_v29  ;;  %5744 = vmatmul.mubr.msk.f32.gmra.mrb[48].mxu1 %vm3778_vm0, %v3756_v37 }
 0x280   : > { %v2813_v19 = vsel %vm2801_vm3, %v10668_v52, %v10667_v61  ;;  %v3113_v8 = vsel %vm2917_vm10, %v10470_v4, 0.0  ;;  %v10671_v55 = vrot.slane %v10584_v39, 4  ;;  %vm3434_vm11 = vcmp.lt.s32.totalorder %v8775_v15, 4 }
 0x281   : > { %v3177_v59 = vmul.f32 %v3113_v8, %v2813_v19  ;;  %v9167_v49 = vmul.f32 %v10673_v56, %v6207_v63  ;;  %v10135_v26 = vrot.slane %v10673_v56, 1  ;;  %v3757_v34 = vadd.f32 %v3693_v14, %v3240_v20  ;;  %v10674_v19 = vld [vmem:[#allocation37_spill] sm:$0xff] }
 0x282   : > { %v3330_v53 = vsel %vm3318_vm14, %v10671_v55, %v10670_v28  ;;  %v2724_v50 = vadd.f32 %v2660_v40, %v2207_v60  ;;  %v3630_v39 = vsel %vm3434_vm11, %v10473_v43, 0.0  ;;  %v861_v52 = vadd.s32 472, %v6174_v44 }
 0x283   : > { %v3694_v41 = vmul.f32 %v3630_v39, %v3330_v53  ;;  %5746 = vmatprep.mubr.msk.f32.mxu1 %vm3778_vm0, %v3757_v34  ;;  %v9178_v8 = vmul.f32 %v6207_v63, %v10674_v19  ;;  %v10134_v60 = vrot.slane %v10674_v19, 1  ;;  %v10133_v14 = vrot.slane %v10674_v19, 2 }
 0x284   : > { %v3241_v15 = vadd.f32 %v3177_v59, %v2724_v50  ;;  %v9182_v20 = vand.u32 7, %v861_v52  ;;  %v2208_v55 = vadd.f32 %v8894_v12, %v8771_v32  ;;  %v10675_v59 = vrot.slane %v10647_v25, 1 }
 0x285   : > { %v10676_v50 = vrot.slane %v10647_v25, 2  ;;  %vm2401_vm12 = vcmp.lt.s32.totalorder %v8857_v31, 6  ;;  %v10677_v12 = vrot.slane %v10614_v62, 3  ;;  %vm2918_vm1 = vcmp.lt.s32.totalorder %v8857_v31, 5 }
 0x286   : > { %v3758_v53 = vadd.f32 %v3694_v41, %v3241_v15  ;;  %v1771_v34 = vsel %vm1767_vm15, %v10675_v59, %v10134_v60  ;;  %vm1891_vm13 = vcmp.lt.s32.totalorder %v9182_v20, 7  ;;  %v2597_v32 = vsel %vm2401_vm12, %v10477_v16, 0.0 }
 0x287   : > { %v9200_v39 = vsel %vm2284_vm2, %v10676_v50, %v10133_v14  ;;  %v10678_v41 = vmov %v10667_v61  ;;  %v2087_v15 = vsel %vm1891_vm13, %v10449_v10, 0.0  ;;  %v2661_v59 = vmul.f32 %v2597_v32, %v8891_v11  ;;  %v10681_v32 = vld [vmem:[#allocation38_spill] sm:$0xff] }
 0x288   : > { %v2812_v52 = vsel %vm2801_vm3, %v10678_v41, %v10677_v12  ;;  %5747 = vmatmul.mubr.msk.f32.gmra.mrb[50].mxu1 %vm3778_vm0, %v3758_v53  ;;  %v3114_v50 = vsel %vm2918_vm1, %v10470_v4, 0.0  ;;  %v10679_v28 = vrot.slane %v10614_v62, 4  ;;  %v10680_v37 = vrot.slane %v10602_v36, 4 }
 0x289   : > { %v9222_v61 = vmul.f32 %v2087_v15, %v1771_v34  ;;  %v3178_v12 = vmul.f32 %v3114_v50, %v2812_v52  ;;  %vm3435_vm4 = vcmp.lt.s32.totalorder %v8857_v31, 4  ;;  %v864_v53 = vadd.s32 496, %v6174_v44  ;;  %v9238_v15 = vpop.f32.mrb[16].mxu1 }
 0x28a   : > { %v3329_v40 = vsel %vm3318_vm14, %v10680_v37, %v10679_v28  ;;  %v2725_v41 = vadd.f32 %v2661_v59, %v2208_v55  ;;  %v3631_v14 = vsel %vm3435_vm4, %v10473_v43, 0.0  ;;  %v865_v11 = vadd.s32 504, %v6174_v44  ;;  %10682 = vst [vmem:[#allocation62_spill] sm:$0xff] %v9238_v15 }
 0x28b   : > { %v1702_v60 = vmul.f32 %v10681_v32, %v6207_v63  ;;  %v3695_v13 = vmul.f32 %v3631_v14, %v3329_v40  ;;  %v9230_v36 = vand.u32 7, %v864_v53  ;;  %v1766_v37 = vrot.slane %v10681_v32, 1  ;;  %v10683_v40 = vld [vmem:[#allocation97_spill] sm:$0xff] }
 0x28c   : > { %v2283_v28 = vrot.slane %v10681_v32, 2  ;;  %v3242_v34 = vadd.f32 %v3178_v12, %v2725_v41  ;;  %v9234_v52 = vand.u32 7, %v865_v11  ;;  %v10684_v59 = vrot.slane %v10683_v40, 1  ;;  %v9255_v41 = vpop.f32.mrb[17].mxu1 }
 0x28d   : > { %v1768_v14 = vsel %vm1767_vm15, %v10135_v26, %v1766_v37  ;;  %vm1894_vm5 = vcmp.lt.s32.totalorder %v9230_v36, 7  ;;  %v10685_v12 = vrot.slane %v10673_v56, 2  ;;  %10686 = vst [vmem:[#allocation63_spill] sm:$0xff] %v9255_v41  ;;  %v10687_v31 = vrot.slane %v10683_v40, 2 }
 0x28e   : > { %v1831_v50 = vsel %vm1767_vm15, %v1766_v37, %v10684_v59  ;;  %v3759_v11 = vadd.f32 %v3695_v13, %v3242_v34  ;;  %vm1895_vm6 = vcmp.lt.s32.totalorder %v9234_v52, 7  ;;  %v2090_v55 = vsel %vm1894_vm5, %v10449_v10, 0.0  ;;  %v10689_v34 = vld [vmem:[#allocation39_spill] sm:$0xff] }
 0x28f   : > { %v9253_v53 = vsel %vm2284_vm2, %v10685_v12, %v2283_v28  ;;  %v9263_v37 = vsel %vm2284_vm2, %v2283_v28, %v10687_v31  ;;  %v2091_v59 = vsel %vm1895_vm6, %v10449_v10, 0.0  ;;  %v9266_v26 = vmul.f32 %v2090_v55, %v1768_v14  ;;  %v9275_v28 = vpop.f32.mrb[18].mxu1 }
 0x290   : > { %10688 = vst [vmem:[#allocation61_spill] sm:$0xff] %v9263_v37  ;;  %v862_v12 = vadd.s32 480, %v6174_v44  ;;  %v863_v15 = vadd.s32 488, %v6174_v44  ;;  %5749 = vmatprep.mubr.msk.f32.mxu1 %vm3778_vm0, %v3759_v11  ;;  %v2155_v13 = vmul.f32 %v2091_v59, %v1831_v50  ;;  %v1700_v41 = vmul.f32 %v6207_v63, %v10689_v34  ;;  %10690 = vst [vmem:[#allocation64_spill] sm:$0xff] %v9275_v28  ;;  %v9283_v22 = vpop.f32.mrb[19].mxu1 }
 0x291   : > { %v1764_v29 = vrot.slane %v10689_v34, 1  ;;  %v2281_v46 = vrot.slane %v10689_v34, 2  ;;  %v2798_v14 = vrot.slane %v10689_v34, 3  ;;  %v3315_v18 = vrot.slane %v10689_v34, 4  ;;  %10691 = vst [vmem:[#allocation65_spill] sm:$0xff] %v9283_v22 }
 0x292   : > { %v9277_v31 = vand.u32 7, %v862_v12  ;;  %v9279_v55 = vand.u32 7, %v863_v15  ;;  %v9285_v50 = vadd.f32 %v2155_v13, %v1702_v60  ;;  %v10693_v63 = vrot.slane %v10673_v56, 1 }
 0x293   : > { %v10694_v59 = vrot.slane %v10674_v19, 1  ;;  %v10695_v15 = vrot.slane %v10673_v56, 2  ;;  %v10696_v60 = vrot.slane %v10674_v19, 2  ;;  %v10697_v40 = vrot.slane %v10673_v56, 3 }
 0x294   : > { %10692 = vst [vmem:[#allocation70_spill] sm:$0xff] %v9285_v50  ;;  %v1769_v11 = vsel %vm1767_vm15, %v1764_v29, %v10693_v63  ;;  %vm1892_vm7 = vcmp.lt.s32.totalorder %v9277_v31, 7  ;;  %vm1893_vm8 = vcmp.lt.s32.totalorder %v9279_v55, 7  ;;  %vm2409_vm9 = vcmp.lt.s32.totalorder %v9277_v31, 6 }
 0x295   : > { %v1770_v12 = vsel %vm1767_vm15, %v10694_v59, %v1764_v29  ;;  %v2286_v28 = vsel %vm2284_vm2, %v2281_v46, %v10695_v15  ;;  %v2287_v13 = vsel %vm2284_vm2, %v10696_v60, %v2281_v46  ;;  %v2088_v34 = vsel %vm1892_vm7, %v10449_v10, 0.0 }
 0x296   : > { %v2089_v29 = vsel %vm1893_vm8, %v10449_v10, 0.0  ;;  %vm2410_vm15 = vcmp.lt.s32.totalorder %v9279_v55, 6  ;;  %v2605_v63 = vsel %vm2409_vm9, %v10477_v16, 0.0  ;;  %v2152_v59 = vmul.f32 %v2088_v34, %v1770_v12 }
 0x297   : > { %v2153_v15 = vmul.f32 %v2089_v29, %v1769_v11  ;;  %v2606_v22 = vsel %vm2410_vm15, %v10477_v16, 0.0  ;;  %v9311_v50 = vmul.f32 %v2605_v63, %v2287_v13  ;;  %v2803_v46 = vsel %vm2801_vm3, %v2798_v14, %v10697_v40 }
 0x298   : > { %v2670_v37 = vmul.f32 %v2606_v22, %v2286_v28  ;;  %v10698_v60 = vrot.slane %v10674_v19, 3  ;;  %vm2926_vm2 = vcmp.lt.s32.totalorder %v9277_v31, 5  ;;  %v9323_v12 = vadd.f32 %v2152_v59, %v9178_v8 }
 0x299   : > { %v2217_v11 = vadd.f32 %v2153_v15, %v1700_v41  ;;  %vm2927_vm10 = vcmp.lt.s32.totalorder %v9279_v55, 5  ;;  %v3122_v22 = vsel %vm2926_vm2, %v10470_v4, 0.0  ;;  %v10699_v40 = vrot.slane %v10673_v56, 4 }
 0x29a   : > { %v2804_v10 = vsel %vm2801_vm3, %v10698_v60, %v2798_v14  ;;  %v3123_v28 = vsel %vm2927_vm10, %v10470_v4, 0.0  ;;  %v10700_v14 = vrot.slane %v10674_v19, 4  ;;  %vm2402_vm11 = vcmp.lt.s32.totalorder %v8862_v30, 6 }
 0x29b   : > { %v9328_v13 = vmul.f32 %v3122_v22, %v2804_v10  ;;  %v9334_v34 = vsel %vm3318_vm14, %v3315_v18, %v10699_v40  ;;  %v9342_v41 = vadd.f32 %v2670_v37, %v2217_v11  ;;  %v9344_v29 = vmul.f32 %v3123_v28, %v2803_v46 }
 0x29c   : > { %v9340_v8 = vsel %vm3318_vm14, %v10700_v14, %v3315_v18  ;;  %v10701_v63 = vrot.slane %v10601_v27, 3  ;;  %v10702_v59 = vrot.slane %v10614_v62, 3  ;;  %v2598_v60 = vsel %vm2402_vm11, %v10477_v16, 0.0 }
 0x29d   : > { %vm2919_vm12 = vcmp.lt.s32.totalorder %v8862_v30, 5  ;;  %v10703_v18 = vrot.slane %v10601_v27, 4  ;;  %v10704_v37 = vrot.slane %v10614_v62, 4  ;;  %vm3436_vm13 = vcmp.lt.s32.totalorder %v8862_v30, 4 }
 0x29e   : > { %v2811_v15 = vsel %vm2801_vm3, %v10702_v59, %v10701_v63  ;;  %v2662_v10 = vmul.f32 %v2598_v60, %v8885_v5  ;;  %v3115_v11 = vsel %vm2919_vm12, %v10470_v4, 0.0  ;;  %v3632_v22 = vsel %vm3436_vm13, %v10473_v43, 0.0 }
 0x29f   : > { %v3328_v46 = vsel %vm3318_vm14, %v10704_v37, %v10703_v18  ;;  %v2210_v28 = vadd.f32 %v8860_v9, %v8760_v33  ;;  %v3179_v40 = vmul.f32 %v3115_v11, %v2811_v15  ;;  %vm2403_vm1 = vcmp.lt.s32.totalorder %v8832_v45, 6  ;;  %v9383_v15 = vpop.f32.mrb[20].mxu1 }
 0x2a0   : > { %v3696_v14 = vmul.f32 %v3632_v22, %v3328_v46  ;;  %v10705_v62 = vrot.slane %v10612_v0, 3  ;;  %v2726_v5 = vadd.f32 %v2662_v10, %v8920_v2  ;;  %v2599_v59 = vsel %vm2403_vm1, %v10477_v16, 0.0  ;;  %v10708_v2 = vld [vmem:[#allocation45_spill] sm:$0xff]  ;;  %v9390_v10 = vpop.f32.mrb[21].mxu1 }
 0x2a1   : > { %vm2920_vm4 = vcmp.lt.s32.totalorder %v8832_v45, 5  ;;  %v10706_v60 = vrot.slane %v10612_v0, 4  ;;  %v10707_v33 = vmov %v10703_v18  ;;  %v2663_v18 = vmul.f32 %v2599_v59, %v8851_v47 }
 0x2a2   : > { %v2810_v30 = vsel %vm2801_vm3, %v10701_v63, %v10705_v62  ;;  %v3116_v37 = vsel %vm2920_vm4, %v10470_v4, 0.0  ;;  %vm3437_vm5 = vcmp.lt.s32.totalorder %v8832_v45, 4  ;;  %v2211_v46 = vadd.f32 %v9021_v21, %v10708_v2 }
 0x2a3   : > { %v3327_v9 = vsel %vm3318_vm14, %v10707_v33, %v10706_v60  ;;  %v3243_v11 = vadd.f32 %v3179_v40, %v2726_v5  ;;  %v3180_v22 = vmul.f32 %v3116_v37, %v2810_v30  ;;  %v3633_v27 = vsel %vm3437_vm5, %v10473_v43, 0.0  ;;  %v9409_v5 = vpop.f32.mrb[22].mxu1 }
 0x2a4   : > { %vm2404_vm6 = vcmp.lt.s32.totalorder %v8981_v51, 6  ;;  %v2727_v62 = vadd.f32 %v2663_v18, %v2210_v28  ;;  %v3697_v63 = vmul.f32 %v3633_v27, %v3327_v9  ;;  %v10709_v47 = vrot.slane %v10637_v24, 3 }
 0x2a5   : > { %v2600_v60 = vsel %vm2404_vm6, %v10477_v16, 0.0  ;;  %v10710_v59 = vrot.slane %v10612_v0, 3  ;;  %v3760_v21 = vadd.f32 %v3696_v14, %v3243_v11  ;;  %vm2921_vm7 = vcmp.lt.s32.totalorder %v8981_v51, 5 }
 0x2a6   : > { %v2664_v33 = vmul.f32 %v2600_v60, %v8997_v58  ;;  %v10711_v40 = vrot.slane %v10637_v24, 4  ;;  %v10712_v30 = vrot.slane %v10612_v0, 4  ;;  %v3244_v9 = vadd.f32 %v3180_v22, %v2727_v62  ;;  %v9415_v58 = vpop.f32.mrb[23].mxu1 }
 0x2a7   : > { %v2809_v45 = vsel %vm2801_vm3, %v10710_v59, %v10709_v47  ;;  %v3117_v18 = vsel %vm2921_vm7, %v10470_v4, 0.0  ;;  %vm3438_vm8 = vcmp.lt.s32.totalorder %v8981_v51, 4  ;;  %v2212_v14 = vadd.f32 %v9091_v38, %v8977_v54  ;;  %5750 = vmatmul.mubr.msk.f32.gmra.mrb[52].mxu1 %vm3778_vm0, %v3760_v21 }
 0x2a8   : > { %v3326_v28 = vsel %vm3318_vm14, %v10712_v30, %v10711_v40  ;;  %v2728_v37 = vadd.f32 %v2664_v33, %v2211_v46  ;;  %v3181_v2 = vmul.f32 %v3117_v18, %v2809_v45  ;;  %v3634_v0 = vsel %vm3438_vm8, %v10473_v43, 0.0 }
 0x2a9   : > { %vm2405_vm9 = vcmp.lt.s32.totalorder %v9060_v48, 6  ;;  %v3761_v11 = vadd.f32 %v3697_v63, %v3244_v9  ;;  %v3698_v27 = vmul.f32 %v3634_v0, %v3326_v28  ;;  %v10713_v62 = vrot.slane %v10653_v42, 3 }
 0x2aa   : > { %v2601_v22 = vsel %vm2405_vm9, %v10477_v16, 0.0  ;;  %v10714_v51 = vmov %v10709_v47  ;;  %v3245_v38 = vadd.f32 %v3181_v2, %v2728_v37  ;;  %vm2922_vm15 = vcmp.lt.s32.totalorder %v9060_v48, 5 }
 0x2ab   : > { %v2808_v54 = vsel %vm2801_vm3, %v10714_v51, %v10713_v62  ;;  %v2665_v60 = vmul.f32 %v2601_v22, %v9088_v7  ;;  %v10715_v46 = vrot.slane %v10653_v42, 4  ;;  %v10716_v47 = vmov %v10711_v40  ;;  %5752 = vmatprep.mubr.msk.f32.mxu1 %vm3778_vm0, %v3761_v11 }
 0x2ac   : > { %v3118_v59 = vsel %vm2922_vm15, %v10470_v4, 0.0  ;;  %vm3439_vm2 = vcmp.lt.s32.totalorder %v9060_v48, 4  ;;  %vm2406_vm10 = vcmp.lt.s32.totalorder %v9065_v23, 6  ;;  %v10717_v45 = vrot.slane %v10636_v35, 3 }
 0x2ad   : > { %v3325_v63 = vsel %vm3318_vm14, %v10716_v47, %v10715_v46  ;;  %v10718_v7 = vmov %v10713_v62  ;;  %v3762_v33 = vadd.f32 %v3698_v27, %v3245_v38  ;;  %v2729_v24 = vadd.f32 %v2665_v60, %v2212_v14  ;;  %v10721_v38 = vld [vmem:[#allocation58_spill] sm:$0xff] }
 0x2ae   : > { %v2807_v21 = vsel %vm2801_vm3, %v10718_v7, %v10717_v45  ;;  %v3182_v40 = vmul.f32 %v3118_v59, %v2808_v54  ;;  %v3635_v30 = vsel %vm3439_vm2, %v10473_v43, 0.0  ;;  %v2602_v9 = vsel %vm2406_vm10, %v10477_v16, 0.0  ;;  %v10726_v59 = vld [vmem:[#allocation57_spill] sm:$0xff] }
 0x2af   : > { %v3699_v28 = vmul.f32 %v3635_v30, %v3325_v63  ;;  %vm2923_vm11 = vcmp.lt.s32.totalorder %v9065_v23, 5  ;;  %v10719_v48 = vrot.slane %v10636_v35, 4  ;;  %v10720_v18 = vmov %v10715_v46  ;;  %5753 = vmatmul.mubr.msk.f32.gmra.mrb[54].mxu1 %vm3778_vm0, %v3762_v33 }
 0x2b0   : > { %v3246_v2 = vadd.f32 %v3182_v40, %v2729_v24  ;;  %v2666_v14 = vmul.f32 %v2602_v9, %v9084_v6  ;;  %v3119_v0 = vsel %vm2923_vm11, %v10470_v4, 0.0  ;;  %vm3440_vm12 = vcmp.lt.s32.totalorder %v9065_v23, 4 }
 0x2b1   : > { %v3324_v37 = vsel %vm3318_vm14, %v10720_v18, %v10719_v48  ;;  %v3183_v11 = vmul.f32 %v3119_v0, %v2807_v21  ;;  %v3636_v27 = vsel %vm3440_vm12, %v10473_v43, 0.0  ;;  %v2214_v22 = vadd.f32 %v9063_v57, %v8966_v3 }
 0x2b2   : > { %vm2407_vm13 = vcmp.lt.s32.totalorder %v9035_v17, 6  ;;  %v3763_v42 = vadd.f32 %v3699_v28, %v3246_v2  ;;  %v2730_v62 = vadd.f32 %v2666_v14, %v9113_v1  ;;  %v3700_v51 = vmul.f32 %v3636_v27, %v3324_v37 }
 0x2b3   : > { %v2603_v54 = vsel %vm2407_vm13, %v10477_v16, 0.0  ;;  %v10722_v60 = vrot.slane %v10647_v25, 3  ;;  %v10723_v23 = vmov %v10717_v45  ;;  %vm2924_vm1 = vcmp.lt.s32.totalorder %v9035_v17, 5 }
 0x2b4   : > { %v2667_v6 = vmul.f32 %v2603_v54, %v10721_v38  ;;  %v10724_v3 = vrot.slane %v10647_v25, 4  ;;  %v10725_v57 = vmov %v10719_v48  ;;  %5755 = vmatprep.mubr.msk.f32.mxu1 %vm3778_vm0, %v3763_v42  ;;  %v3247_v47 = vadd.f32 %v3183_v11, %v2730_v62 }
 0x2b5   : > { %v2806_v46 = vsel %vm2801_vm3, %v10723_v23, %v10722_v60  ;;  %v3120_v63 = vsel %vm2924_vm1, %v10470_v4, 0.0  ;;  %vm3441_vm4 = vcmp.lt.s32.totalorder %v9035_v17, 4  ;;  %v2215_v45 = vadd.f32 %v9222_v61, %v10726_v59 }
 0x2b6   : > { %v3323_v1 = vsel %vm3318_vm14, %v10725_v57, %v10724_v3  ;;  %v2731_v7 = vadd.f32 %v2667_v6, %v2214_v22  ;;  %v3184_v21 = vmul.f32 %v3120_v63, %v2806_v46  ;;  %v3637_v33 = vsel %vm3441_vm4, %v10473_v43, 0.0 }
 0x2b7   : > { %vm2408_vm5 = vcmp.lt.s32.totalorder %v9182_v20, 6  ;;  %v3764_v35 = vadd.f32 %v3700_v51, %v3247_v47  ;;  %v3701_v24 = vmul.f32 %v3637_v33, %v3323_v1  ;;  %v10727_v30 = vrot.slane %v10674_v19, 3  ;;  %v10735_v47 = vld [vmem:[#allocation97_spill] sm:$0xff] }
 0x2b8   : > { %v2604_v40 = vsel %vm2408_vm5, %v10477_v16, 0.0  ;;  %v10728_v28 = vmov %v10722_v60  ;;  %v3248_v9 = vadd.f32 %v3184_v21, %v2731_v7  ;;  %vm2925_vm6 = vcmp.lt.s32.totalorder %v9182_v20, 5  ;;  %v10738_v7 = vld [vmem:[#allocation61_spill] sm:$0xff] }
 0x2b9   : > { %v2805_v17 = vsel %vm2801_vm3, %v10728_v28, %v10727_v30  ;;  %v2668_v61 = vmul.f32 %v2604_v40, %v9200_v39  ;;  %v10729_v48 = vrot.slane %v10674_v19, 4  ;;  %v10730_v18 = vmov %v10724_v3  ;;  %5756 = vmatmul.mubr.msk.f32.gmra.mrb[56].mxu1 %vm3778_vm0, %v3764_v35  ;;  %v9506_v39 = vpop.f32.mrb[24].mxu1 }
 0x2ba   : > { %v3121_v2 = vsel %vm2925_vm6, %v10470_v4, 0.0  ;;  %vm3442_vm7 = vcmp.lt.s32.totalorder %v9182_v20, 4  ;;  %v2733_v14 = vadd.f32 %v9311_v50, %v9323_v12  ;;  %vm3443_vm8 = vcmp.lt.s32.totalorder %v9277_v31, 4  ;;  %v9509_v27 = vpop.f32.mrb[25].mxu1 }
 0x2bb   : > { %v3322_v37 = vsel %vm3318_vm14, %v10730_v18, %v10729_v48  ;;  %v3765_v0 = vadd.f32 %v3701_v24, %v3248_v9  ;;  %v2732_v19 = vadd.f32 %v2668_v61, %v2215_v45  ;;  %v3185_v11 = vmul.f32 %v3121_v2, %v2805_v17  ;;  %v9554_v45 = vpop.f32.mrb[26].mxu1  ;;  %v10741_v17 = vld [vmem:[#allocation8_spill] sm:$0xff]  ;;  %v10742_v61 = vld [vmem:[#allocation70_spill] sm:$0xff] }
 0x2bc   : > { %v3638_v25 = vsel %vm3442_vm7, %v10473_v43, 0.0  ;;  %v3250_v42 = vadd.f32 %v9328_v13, %v2733_v14  ;;  %v3639_v62 = vsel %vm3443_vm8, %v10473_v43, 0.0  ;;  %v3251_v20 = vadd.f32 %v9344_v29, %v9342_v41  ;;  %v9565_v24 = vpop.f32.mrb[27].mxu1  ;;  %v10744_v14 = vld [vmem:[#allocation49_spill] sm:$0xff] }
 0x2bd   : > { %v3702_v22 = vmul.f32 %v3638_v25, %v3322_v37  ;;  %5758 = vmatprep.mubr.msk.f32.mxu1 %vm3778_vm0, %v3765_v0  ;;  %v3249_v31 = vadd.f32 %v3185_v11, %v2732_v19  ;;  %v3703_v50 = vmul.f32 %v3639_v62, %v9340_v8  ;;  %vm3444_vm9 = vcmp.lt.s32.totalorder %v9279_v55, 4  ;;  %v10743_v37 = vld [vmem:[#allocation48_spill] sm:$0xff] }
 0x2be   : > { %v2218_v12 = vadd.f32 %v9266_v26, %v9167_v49  ;;  %v3640_v51 = vsel %vm3444_vm9, %v10473_v43, 0.0  ;;  %vm2411_vm15 = vcmp.lt.s32.totalorder %v9230_v36, 6  ;;  %v10731_v13 = vrot.slane %v10681_v32, 3  ;;  %v10746_v11 = vld [vmem:[#allocation44_spill] sm:$0xff] }
 0x2bf   : > { %v10732_v54 = vrot.slane %v10673_v56, 3  ;;  %vm2928_vm2 = vcmp.lt.s32.totalorder %v9230_v36, 5  ;;  %v3766_v29 = vadd.f32 %v3702_v22, %v3249_v31  ;;  %v3767_v8 = vadd.f32 %v3703_v50, %v3250_v42 }
 0x2c0   : > { %v3704_v55 = vmul.f32 %v3640_v51, %v9334_v34  ;;  %v2607_v38 = vsel %vm2411_vm15, %v10477_v16, 0.0  ;;  %v3124_v26 = vsel %vm2928_vm2, %v10470_v4, 0.0  ;;  %v10733_v6 = vrot.slane %v10681_v32, 4 }
 0x2c1   : > { %v2802_v41 = vsel %vm2801_vm3, %v10732_v54, %v10731_v13  ;;  %v2671_v49 = vmul.f32 %v2607_v38, %v9253_v53  ;;  %v10734_v60 = vrot.slane %v10673_v56, 4  ;;  %vm3445_vm10 = vcmp.lt.s32.totalorder %v9230_v36, 4  ;;  %5759 = vmatmul.mubr.msk.f32.gmra.mrb[58].mxu1 %vm3778_vm0, %v3766_v29  ;;  %v3773_v53 = vld [vmem:[%s10038_s2 + $0x9] sm:$0x1] }
 0x2c2   : > { %v3768_v46 = vadd.f32 %v3704_v55, %v3251_v20  ;;  %v3188_v3 = vmul.f32 %v3124_v26, %v2802_v41  ;;  %v3641_v34 = vsel %vm3445_vm10, %v10473_v43, 0.0  ;;  %vm2412_vm11 = vcmp.lt.s32.totalorder %v9234_v52, 6  ;;  %5761 = vmatprep.mubr.msk.f32.mxu1 %vm3778_vm0, %v3767_v8  ;;  %v10747_v20 = vld [vmem:[#allocation42_spill] sm:$0xff] }
 0x2c3   : > { %v3319_v23 = vsel %vm3318_vm14, %v10734_v60, %v10733_v6  ;;  %v2735_v56 = vadd.f32 %v2671_v49, %v2218_v12  ;;  %v2608_v1 = vsel %vm2412_vm11, %v10477_v16, 0.0  ;;  %v10736_v36 = vrot.slane %v10735_v47, 3  ;;  %v10749_v55 = vld [vmem:[#allocation50_spill] sm:$0xff] }
 0x2c4   : > { %v3705_v57 = vmul.f32 %v3641_v34, %v3319_v23  ;;  %v10737_v63 = vmov %v10731_v13  ;;  %v2672_v21 = vmul.f32 %v2608_v1, %v10738_v7  ;;  %vm2929_vm12 = vcmp.lt.s32.totalorder %v9234_v52, 5  ;;  %v10748_v13 = vld [vmem:[#allocation46_spill] sm:$0xff] }
 0x2c5   : > { %v2865_v59 = vsel %vm2801_vm3, %v10737_v63, %v10736_v36  ;;  %v10739_v33 = vrot.slane %v10735_v47, 4  ;;  %v10740_v35 = vmov %v10733_v6  ;;  %vm3446_vm13 = vcmp.lt.s32.totalorder %v9234_v52, 4  ;;  %5762 = vmatmul.mubr.msk.f32.gmra.mrb[60].mxu1 %vm3778_vm0, %v3768_v46 }
 0x2c6   : > { %v3252_v40 = vadd.f32 %v3188_v3, %v2735_v56  ;;  %v3125_v30 = vsel %vm2929_vm12, %v10470_v4, 0.0  ;;  %v3642_v28 = vsel %vm3446_vm13, %v10473_v43, 0.0  ;;  %v9570_v9 = vrot.slane %v3773_v53, %v10741_v17  ;;  %v10745_v43 = vld [vmem:[#allocation41_spill] sm:$0xff] }
 0x2c7   : > { %v3382_v16 = vsel %vm3318_vm14, %v10740_v35, %v10739_v33  ;;  %v2736_v48 = vadd.f32 %v2672_v21, %v10742_v61  ;;  %v3189_v32 = vmul.f32 %v3125_v30, %v2865_v59  ;;  %v4869_v2 = vmax.f32 %v3773_v53, 0.0  ;;  %v10750_v59 = vld [vmem:[#allocation51_spill] sm:$0xff] }
 0x2c8   : > { %v3706_v18 = vmul.f32 %v3642_v28, %v3382_v16  ;;  %v3769_v44 = vadd.f32 %v3705_v57, %v3252_v40  ;;  %v4043_v52 = vadd.f32 %v10743_v37, %v9570_v9  ;;  %v4038_v0 = vadd.f32 %v10744_v14, %v9570_v9 }
 0x2c9   : > { %v3253_v4 = vadd.f32 %v3189_v32, %v2736_v48  ;;  %vm4420_vm3 = vcmask 64512   ;;  %v4053_v19 = vadd.f32 %v10745_v43, %v9570_v9  ;;  %v4048_v25 = vadd.f32 %v10746_v11, %v9570_v9 }
 0x2ca   : > { %5764 = vmatprep.mubr.msk.f32.mxu1 %vm3778_vm0, %v3769_v44  ;;  %v4357_v22 = vmax.f32 %v4043_v52, 0.0  ;;  %v9584_v42 = vrot.slane %v4869_v2, %v10741_v17  ;;  %v4356_v62 = vmax.f32 %v4038_v0, 0.0  ;;  %v4063_v31 = vadd.f32 %v10747_v20, %v9570_v9 }
 0x2cb   : > { %v3770_v50 = vadd.f32 %v3706_v18, %v3253_v4  ;;  %v4359_v12 = vmax.f32 %v4053_v19, 0.0  ;;  %v4358_v51 = vmax.f32 %v4048_v25, 0.0  ;;  %v4058_v54 = vadd.f32 %v10748_v13, %v9570_v9 }
 0x2cc   : > { %v4428_v41 = vsel %vm4420_vm3, %v4357_v22, -inf  ;;  %v4421_v29 = vsel %vm4420_vm3, %v4356_v62, -inf  ;;  %v4361_v8 = vmax.f32 %v4063_v31, 0.0  ;;  %v4073_v38 = vadd.f32 %v10749_v55, %v9570_v9 }
 0x2cd   : > { %5765 = vmatmul.mubr.msk.f32.gmra.mrb[62].mxu1 %vm3778_vm0, %v3770_v50  ;;  %v4429_v49 = vrot.slane %v4428_v41, 4  ;;  %v4422_v26 = vrot.slane %v4421_v29, 4  ;;  %v4442_v6 = vsel %vm4420_vm3, %v4359_v12, -inf  ;;  %v4435_v60 = vsel %vm4420_vm3, %v4358_v51, -inf }
 0x2ce   : > { %v4443_v23 = vrot.slane %v4442_v6, 4  ;;  %v4436_v46 = vrot.slane %v4435_v60, 4  ;;  %v4456_v3 = vsel %vm4420_vm3, %v4361_v8, -inf  ;;  %v4360_v34 = vmax.f32 %v4058_v54, 0.0 }
 0x2cf   : > { %v4430_v53 = vmax.f32 %v4428_v41, %v4429_v49  ;;  %v4423_v56 = vmax.f32 %v4421_v29, %v4422_v26  ;;  %v4457_v57 = vrot.slane %v4456_v3, 4  ;;  %v4363_v1 = vmax.f32 %v4073_v38, 0.0  ;;  %v9603_v41 = vpop.f32.mrb[28].mxu1 }
 0x2d0   : > { %v4444_v47 = vmax.f32 %v4442_v6, %v4443_v23  ;;  %v4437_v36 = vmax.f32 %v4435_v60, %v4436_v46  ;;  %v4449_v63 = vsel %vm4420_vm3, %v4360_v34, -inf  ;;  %v4068_v7 = vadd.f32 %v10750_v59, %v9570_v9  ;;  %v9607_v49 = vpop.f32.mrb[29].mxu1 }
 0x2d1   : > { %v4431_v21 = vrot.slane %v4430_v53, 2  ;;  %v4424_v33 = vrot.slane %v4423_v56, 2  ;;  %v4458_v35 = vmax.f32 %v4456_v3, %v4457_v57  ;;  %v4450_v16 = vrot.slane %v4449_v63, 4 }
 0x2d2   : > { %vm5009_vm14 = vcmask 1041409   ;;  %v4445_v40 = vrot.slane %v4444_v47, 2  ;;  %v4438_v30 = vrot.slane %v4437_v36, 2  ;;  %v4470_v28 = vsel %vm4420_vm3, %v4363_v1, -inf }
 0x2d3   : > { %v4362_v17 = vmax.f32 %v4068_v7, 0.0  ;;  %v4432_v61 = vmax.f32 %v4430_v53, %v4431_v21  ;;  %v4425_v48 = vmax.f32 %v4423_v56, %v4424_v33  ;;  %v4459_v32 = vrot.slane %v4458_v35, 2  ;;  %v10751_v53 = vld [vmem:[#allocation52_spill] sm:$0xff]  ;;  %v10752_v21 = vld [vmem:[#allocation53_spill] sm:$0xff] }
 0x2d4   : > { %v4451_v18 = vmax.f32 %v4449_v63, %v4450_v16  ;;  %v4446_v44 = vmax.f32 %v4444_v47, %v4445_v40  ;;  %v4439_v37 = vmax.f32 %v4437_v36, %v4438_v30  ;;  %v4471_v52 = vrot.slane %v4470_v28, 4 }
 0x2d5   : > { %v4463_v2 = vsel %vm4420_vm3, %v4362_v17, -inf  ;;  %v4433_v14 = vrot.slane %v4432_v61, 1  ;;  %v4426_v0 = vrot.slane %v4425_v48, 1  ;;  %v4460_v4 = vmax.f32 %v4458_v35, %v4459_v32  ;;  %v10753_v35 = vld [vmem:[#allocation56_spill] sm:$0xff]  ;;  %v10754_v17 = vld [vmem:[#allocation59_spill] sm:$0xff] }
 0x2d6   : > { %v4452_v43 = vrot.slane %v4451_v18, 2  ;;  %v4447_v19 = vrot.slane %v4446_v44, 1  ;;  %v4440_v11 = vrot.slane %v4439_v37, 1  ;;  %v4472_v25 = vmax.f32 %v4470_v28, %v4471_v52 }
 0x2d7   : > { %v4464_v22 = vrot.slane %v4463_v2, 4  ;;  %v4434_v62 = vmax.f32 %v4432_v61, %v4433_v14  ;;  %v4427_v20 = vmax.f32 %v4425_v48, %v4426_v0  ;;  %v4461_v31 = vrot.slane %v4460_v4, 1  ;;  %v9631_v48 = vpop.f32.mrb[30].mxu1  ;;  %v10755_v0 = vld [vmem:[#allocation67_spill] sm:$0xff] }
 0x2d8   : > { %v4453_v50 = vmax.f32 %v4451_v18, %v4452_v43  ;;  %v4448_v12 = vmax.f32 %v4446_v44, %v4447_v19  ;;  %v4441_v51 = vmax.f32 %v4439_v37, %v4440_v11  ;;  %v4473_v13 = vrot.slane %v4472_v25, 2  ;;  %v9635_v52 = vpop.f32.mrb[31].mxu1  ;;  %v10756_v43 = vld [vmem:[#allocation68_spill] sm:$0xff] }
 0x2d9   : > { %v4465_v54 = vmax.f32 %v4463_v2, %v4464_v22  ;;  %v4875_v29 = vmax.f32 %v4434_v62, %v9584_v42  ;;  %v4874_v8 = vmax.f32 %v4427_v20, %v9584_v42  ;;  %v4462_v55 = vmax.f32 %v4460_v4, %v4461_v31 }
 0x2da   : > { %v4454_v38 = vrot.slane %v4453_v50, 1  ;;  %v4877_v26 = vmax.f32 %v4448_v12, %v9584_v42  ;;  %v4876_v6 = vmax.f32 %v4441_v51, %v9584_v42  ;;  %v4474_v60 = vmax.f32 %v4472_v25, %v4473_v13 }
 0x2db   : > { %v4466_v23 = vrot.slane %v4465_v54, 2  ;;  %v5008_v46 = vrot.slane %v4875_v29, 7  ;;  %v4879_v3 = vmax.f32 %v4462_v55, %v9584_v42  ;;  %v4083_v56 = vadd.f32 %v10751_v53, %v9570_v9 }
 0x2dc   : > { %v4455_v34 = vmax.f32 %v4453_v50, %v4454_v38  ;;  %v9617_v47 = vrot.slane %v4877_v26, 5  ;;  %v4475_v36 = vrot.slane %v4474_v60, 1  ;;  %v4078_v33 = vadd.f32 %v10752_v21, %v9570_v9  ;;  %v10757_v26 = vld [vmem:[#allocation69_spill] sm:$0xff] }
 0x2dd   : > { %v4467_v57 = vmax.f32 %v4465_v54, %v4466_v23  ;;  %v9615_v1 = vsel %vm5009_vm14, %v5008_v46, %v4874_v8  ;;  %v4365_v63 = vmax.f32 %v4083_v56, 0.0  ;;  %v4093_v16 = vadd.f32 %v10753_v35, %v9570_v9 }
 0x2de   : > { %v4878_v59 = vmax.f32 %v4455_v34, %v9584_v42  ;;  %v9624_v40 = vrot.slane %v4876_v6, 6  ;;  %v9626_v30 = vrot.slane %v4879_v3, 3  ;;  %v4088_v61 = vadd.f32 %v10754_v17, %v9570_v9 }
 0x2df   : > { %v4468_v7 = vrot.slane %v4467_v57, 1  ;;  %v4484_v28 = vsel %vm4420_vm3, %v4365_v63, -inf  ;;  %v4364_v44 = vmax.f32 %v4078_v33, 0.0  ;;  %v4367_v37 = vmax.f32 %v4093_v16, 0.0 }
 0x2e0   : > { %v4485_v18 = vrot.slane %v4484_v28, 4  ;;  %v9637_v2 = vmax.f32 %v4474_v60, %v4475_v36  ;;  %v4366_v14 = vmax.f32 %v4088_v61, 0.0  ;;  %v4103_v4 = vadd.f32 %v10755_v0, %v9570_v9 }
 0x2e1   : > { %v9633_v32 = vmax.f32 %v4467_v57, %v4468_v7  ;;  %v4098_v19 = vadd.f32 %v10756_v43, %v9570_v9  ;;  %v9643_v11 = vrot.slane %v4878_v59, 4  ;;  %v4477_v22 = vsel %vm4420_vm3, %v4364_v44, -inf  ;;  %v10758_v7 = vld [vmem:[#allocation60_spill] sm:$0xff] }
 0x2e2   : > { %v4486_v25 = vmax.f32 %v4484_v28, %v4485_v18  ;;  %v4498_v62 = vsel %vm4420_vm3, %v4367_v37, -inf  ;;  %v4478_v20 = vrot.slane %v4477_v22, 4  ;;  %v4491_v50 = vsel %vm4420_vm3, %v4366_v14, -inf }
 0x2e3   : > { %v4499_v31 = vrot.slane %v4498_v62, 4  ;;  %v4369_v12 = vmax.f32 %v4103_v4, 0.0  ;;  %v4880_v51 = vmax.f32 %v9633_v32, %v9584_v42  ;;  %v4492_v54 = vrot.slane %v4491_v50, 4 }
 0x2e4   : > { %v4487_v13 = vrot.slane %v4486_v25, 2  ;;  %v4368_v29 = vmax.f32 %v4098_v19, 0.0  ;;  %v4479_v8 = vmax.f32 %v4477_v22, %v4478_v20  ;;  %v4113_v6 = vadd.f32 %v10757_v26, %v9570_v9 }
 0x2e5   : > { %v4500_v55 = vmax.f32 %v4498_v62, %v4499_v31  ;;  %v4512_v38 = vsel %vm4420_vm3, %v4369_v12, -inf  ;;  %v4493_v23 = vmax.f32 %v4491_v50, %v4492_v54  ;;  %v4108_v21 = vadd.f32 %v10758_v7, %v9570_v9 }
 0x2e6   : > { %v4488_v60 = vmax.f32 %v4486_v25, %v4487_v13  ;;  %v4513_v46 = vrot.slane %v4512_v38, 4  ;;  %v4505_v3 = vsel %vm4420_vm3, %v4368_v29, -inf  ;;  %v4480_v34 = vrot.slane %v4479_v8, 2 }
 0x2e7   : > { %v4501_v53 = vrot.slane %v4500_v55, 2  ;;  %v4506_v56 = vrot.slane %v4505_v3, 4  ;;  %v4371_v57 = vmax.f32 %v4113_v6, 0.0  ;;  %v4494_v63 = vrot.slane %v4493_v23, 2 }
 0x2e8   : > { %v4489_v36 = vrot.slane %v4488_v60, 1  ;;  %v4514_v59 = vmax.f32 %v4512_v38, %v4513_v46  ;;  %v4481_v33 = vmax.f32 %v4479_v8, %v4480_v34  ;;  %vm5012_vm0 = vcmask 1042434   ;;  %v10759_v46 = vld [vmem:[#allocation62_spill] sm:$0xff] }
 0x2e9   : > { %v4502_v35 = vmax.f32 %v4500_v55, %v4501_v53  ;;  %v4507_v16 = vmax.f32 %v4505_v3, %v4506_v56  ;;  %v4526_v28 = vsel %vm4420_vm3, %v4371_v57, -inf  ;;  %v4495_v61 = vmax.f32 %v4493_v23, %v4494_v63 }
 0x2ea   : > { %v4490_v17 = vmax.f32 %v4488_v60, %v4489_v36  ;;  %v4515_v18 = vrot.slane %v4514_v59, 2  ;;  %v4527_v44 = vrot.slane %v4526_v28, 4  ;;  %v4482_v37 = vrot.slane %v4481_v33, 1 }
 0x2eb   : > { %v4503_v14 = vrot.slane %v4502_v35, 1  ;;  %v4508_v0 = vrot.slane %v4507_v16, 2  ;;  %v4370_v4 = vmax.f32 %v4108_v21, 0.0  ;;  %v4496_v19 = vrot.slane %v4495_v61, 1 }
 0x2ec   : > { %v4883_v43 = vmax.f32 %v4490_v17, %v9584_v42  ;;  %v4516_v25 = vmax.f32 %v4514_v59, %v4515_v18  ;;  %vm5015_vm1 = vcmask 1043459   ;;  %v4528_v22 = vmax.f32 %v4526_v28, %v4527_v44  ;;  %v10761_v28 = vld [vmem:[#allocation64_spill] sm:$0xff] }
 0x2ed   : > { %v4483_v62 = vmax.f32 %v4481_v33, %v4482_v37  ;;  %v4504_v20 = vmax.f32 %v4502_v35, %v4503_v14  ;;  %v4509_v31 = vmax.f32 %v4507_v16, %v4508_v0  ;;  %v4519_v50 = vsel %vm4420_vm3, %v4370_v4, -inf  ;;  %v10760_v35 = vld [vmem:[#allocation63_spill] sm:$0xff] }
 0x2ee   : > { %v5029_v12 = vrot.slane %v4883_v43, 7  ;;  %v4497_v13 = vmax.f32 %v4495_v61, %v4496_v19  ;;  %v4517_v54 = vrot.slane %v4516_v25, 1  ;;  %v4529_v29 = vrot.slane %v4528_v22, 2  ;;  %v9671_v61 = vpop.f32.mrb[32].mxu1 }
 0x2ef   : > { %v4882_v8 = vmax.f32 %v4483_v62, %v9584_v42  ;;  %v4885_v55 = vmax.f32 %v4504_v20, %v9584_v42  ;;  %v4510_v38 = vrot.slane %v4509_v31, 1  ;;  %v4520_v26 = vrot.slane %v4519_v50, 4  ;;  %v9675_v14 = vpop.f32.mrb[33].mxu1  ;;  %v10762_v20 = vld [vmem:[#allocation65_spill] sm:$0xff] }
 0x2f0   : > { %v4884_v6 = vmax.f32 %v4497_v13, %v9584_v42  ;;  %v4518_v60 = vmax.f32 %v4516_v25, %v4517_v54  ;;  %v4530_v23 = vmax.f32 %v4528_v22, %v4529_v29  ;;  %v4123_v3 = vadd.f32 %v10759_v46, %v9570_v9 }
 0x2f1   : > { %v5030_v34 = vsel %vm5009_vm14, %v5029_v12, %v4882_v8  ;;  %v5033_v53 = vrot.slane %v4885_v55, 5  ;;  %v4511_v56 = vmax.f32 %v4509_v31, %v4510_v38  ;;  %v4521_v57 = vmax.f32 %v4519_v50, %v4520_v26 }
 0x2f2   : > { %v5031_v36 = vrot.slane %v4884_v6, 6  ;;  %v4887_v63 = vmax.f32 %v4518_v60, %v9584_v42  ;;  %v4531_v59 = vrot.slane %v4530_v23, 1  ;;  %v4373_v7 = vmax.f32 %v4123_v3, 0.0 }
 0x2f3   : > { %v4886_v21 = vmax.f32 %v4511_v56, %v9584_v42  ;;  %v4522_v33 = vrot.slane %v4521_v57, 2  ;;  %v4118_v16 = vadd.f32 %v10760_v35, %v9570_v9  ;;  %v4133_v17 = vadd.f32 %v10761_v28, %v9570_v9 }
 0x2f4   : > { %v5032_v18 = vsel %vm5012_vm0, %v5031_v36, %v5030_v34  ;;  %vm5018_vm4 = vcmask 1044484   ;;  %v4532_v44 = vmax.f32 %v4530_v23, %v4531_v59  ;;  %v4540_v37 = vsel %vm4420_vm3, %v4373_v7, -inf }
 0x2f5   : > { %v5034_v0 = vsel %vm5015_vm1, %v5033_v53, %v5032_v18  ;;  %v5035_v4 = vrot.slane %v4886_v21, 4  ;;  %v4523_v43 = vmax.f32 %v4521_v57, %v4522_v33  ;;  %v4541_v19 = vrot.slane %v4540_v37, 4  ;;  %v9696_v53 = vpop.f32.mrb[34].mxu1 }
 0x2f6   : > { %v4889_v25 = vmax.f32 %v4532_v44, %v9584_v42  ;;  %v4372_v22 = vmax.f32 %v4118_v16, 0.0  ;;  %v4375_v62 = vmax.f32 %v4133_v17, 0.0  ;;  %v4128_v31 = vadd.f32 %v10762_v20, %v9570_v9 }
 0x2f7   : > { %v9681_v50 = vrot.slane %v4887_v63, 3  ;;  %v9684_v12 = vsel %vm5018_vm4, %v5035_v4, %v5034_v0  ;;  %v4524_v13 = vrot.slane %v4523_v43, 1  ;;  %v4542_v54 = vmax.f32 %v4540_v37, %v4541_v19  ;;  %v9701_v63 = vpop.f32.mrb[35].mxu1 }
 0x2f8   : > { %v4533_v29 = vsel %vm4420_vm3, %v4372_v22, -inf  ;;  %v4554_v8 = vsel %vm4420_vm3, %v4375_v62, -inf  ;;  %v4374_v55 = vmax.f32 %v4128_v31, 0.0  ;;  %v4881_v38 = vmax.f32 %v9637_v2, %v9584_v42 }
 0x2f9   : > { %v4525_v26 = vmax.f32 %v4523_v43, %v4524_v13  ;;  %v4543_v6 = vrot.slane %v4542_v54, 2  ;;  %v4534_v60 = vrot.slane %v4533_v29, 4  ;;  %v4555_v23 = vrot.slane %v4554_v8, 4 }
 0x2fa   : > { %v9690_v46 = vrot.slane %v4889_v25, 1  ;;  %v4547_v3 = vsel %vm4420_vm3, %v4374_v55, -inf  ;;  %v5013_v34 = vsel %vm5012_vm0, %v9624_v40, %v9615_v1  ;;  %vm5021_vm5 = vcmask 1045509  }
 0x2fb   : > { %v4544_v56 = vmax.f32 %v4542_v54, %v4543_v6  ;;  %v4535_v57 = vmax.f32 %v4533_v29, %v4534_v60  ;;  %v4556_v36 = vmax.f32 %v4554_v8, %v4555_v23  ;;  %v5023_v2 = vrot.slane %v4880_v51, 2 }
 0x2fc   : > { %v4888_v59 = vmax.f32 %v4525_v26, %v9584_v42  ;;  %v4548_v7 = vrot.slane %v4547_v3, 4  ;;  %v5016_v21 = vsel %vm5015_vm1, %v9617_v47, %v5013_v34  ;;  %vm5024_vm6 = vcmask 1046534  }
 0x2fd   : > { %v4545_v1 = vrot.slane %v4544_v56, 1  ;;  %v4536_v40 = vrot.slane %v4535_v57, 2  ;;  %v4557_v33 = vrot.slane %v4556_v36, 2  ;;  %v5026_v35 = vrot.slane %v4881_v38, 1 }
 0x2fe   : > { %v4549_v16 = vmax.f32 %v4547_v3, %v4548_v7  ;;  %v5019_v28 = vsel %vm5018_vm4, %v9643_v11, %v5016_v21  ;;  %vm5027_vm7 = vcmask 1047559   ;;  %v4143_v32 = vadd.f32 %v9383_v15, %v9570_v9 }
 0x2ff   : > { %v4546_v51 = vmax.f32 %v4544_v56, %v4545_v1  ;;  %v4537_v17 = vmax.f32 %v4535_v57, %v4536_v40  ;;  %v4558_v18 = vmax.f32 %v4556_v36, %v4557_v33  ;;  %v5022_v44 = vsel %vm5021_vm5, %v9626_v30, %v5019_v28 }
 0x300   : > { %v4550_v47 = vrot.slane %v4549_v16, 2  ;;  %v5025_v37 = vsel %vm5024_vm6, %v5023_v2, %v5022_v44  ;;  %v4377_v0 = vmax.f32 %v4143_v32, 0.0  ;;  %v4138_v4 = vadd.f32 %v9390_v10, %v9570_v9 }
 0x301   : > { %v4891_v43 = vmax.f32 %v4546_v51, %v9584_v42  ;;  %v4538_v11 = vrot.slane %v4537_v17, 1  ;;  %v4559_v19 = vrot.slane %v4558_v18, 1  ;;  %v5028_v25 = vsel %vm5027_vm7, %v5026_v35, %v5025_v37 }
 0x302   : > { %v4551_v15 = vmax.f32 %v4549_v16, %v4550_v47  ;;  %5769 = vmatprep.mubr.msk.f32.mxu1 %vm4420_vm3, %v5028_v25  ;;  %v4568_v22 = vsel %vm4420_vm3, %v4377_v0, -inf  ;;  %v4376_v62 = vmax.f32 %v4138_v4, 0.0  ;;  %v4153_v30 = vadd.f32 %v9409_v5, %v9570_v9 }
 0x303   : > { %v5043_v20 = vrot.slane %v4891_v43, 7  ;;  %v4539_v31 = vmax.f32 %v4537_v17, %v4538_v11  ;;  %v4560_v13 = vmax.f32 %v4558_v18, %v4559_v19  ;;  %v4569_v54 = vrot.slane %v4568_v22, 4 }
 0x304   : > { %v4552_v10 = vrot.slane %v4551_v15, 1  ;;  %v4561_v29 = vsel %vm4420_vm3, %v4376_v62, -inf  ;;  %v4379_v8 = vmax.f32 %v4153_v30, 0.0  ;;  %v4148_v55 = vadd.f32 %v9415_v58, %v9570_v9  ;;  %v9745_v62 = vpop.f32.mrb[36].mxu1 }
 0x305   : > { %v4890_v38 = vmax.f32 %v4539_v31, %v9584_v42  ;;  %v4893_v26 = vmax.f32 %v4560_v13, %v9584_v42  ;;  %v4570_v6 = vmax.f32 %v4568_v22, %v4569_v54  ;;  %v4562_v60 = vrot.slane %v4561_v29, 4  ;;  %v9748_v54 = vpop.f32.mrb[37].mxu1 }
 0x306   : > { %v4553_v23 = vmax.f32 %v4551_v15, %v4552_v10  ;;  %v4582_v5 = vsel %vm4420_vm3, %v4379_v8, -inf  ;;  %v4378_v3 = vmax.f32 %v4148_v55, 0.0  ;;  %v4163_v34 = vadd.f32 %v9506_v39, %v9570_v9 }
 0x307   : > { %v5039_v56 = vrot.slane %v4888_v59, 2  ;;  %v9730_v57 = vsel %vm5009_vm14, %v5043_v20, %v4890_v38  ;;  %v4571_v36 = vrot.slane %v4570_v6, 2  ;;  %v4563_v2 = vmax.f32 %v4561_v29, %v4562_v60 }
 0x308   : > { %v9732_v58 = vrot.slane %v4893_v26, 5  ;;  %v4583_v7 = vrot.slane %v4582_v5, 4  ;;  %v4575_v21 = vsel %vm4420_vm3, %v4378_v3, -inf  ;;  %v4381_v1 = vmax.f32 %v4163_v34, 0.0 }
 0x309   : > { %v4572_v40 = vmax.f32 %v4570_v6, %v4571_v36  ;;  %v4564_v33 = vrot.slane %v4563_v2, 2  ;;  %v4576_v35 = vrot.slane %v4575_v21, 4  ;;  %v4158_v16 = vadd.f32 %v9509_v27, %v9570_v9 }
 0x30a   : > { %v4892_v39 = vmax.f32 %v4553_v23, %v9584_v42  ;;  %v4584_v59 = vmax.f32 %v4582_v5, %v4583_v7  ;;  %v4596_v28 = vsel %vm4420_vm3, %v4381_v1, -inf  ;;  %v4173_v32 = vadd.f32 %v9554_v45, %v9570_v9 }
 0x30b   : > { %v4573_v51 = vrot.slane %v4572_v40, 1  ;;  %v4565_v17 = vmax.f32 %v4563_v2, %v4564_v33  ;;  %v4577_v18 = vmax.f32 %v4575_v21, %v4576_v35  ;;  %v4597_v44 = vrot.slane %v4596_v28, 4 }
 0x30c   : > { %v4585_v47 = vrot.slane %v4584_v59, 2  ;;  %v4380_v37 = vmax.f32 %v4158_v16, 0.0  ;;  %v4383_v0 = vmax.f32 %v4173_v32, 0.0  ;;  %v4168_v4 = vadd.f32 %v9565_v24, %v9570_v9 }
 0x30d   : > { %v4574_v43 = vmax.f32 %v4572_v40, %v4573_v51  ;;  %v4566_v27 = vrot.slane %v4565_v17, 1  ;;  %v4578_v11 = vrot.slane %v4577_v18, 2  ;;  %v4598_v19 = vmax.f32 %v4596_v28, %v4597_v44  ;;  %v9770_v28 = vpop.f32.mrb[38].mxu1 }
 0x30e   : > { %v4586_v25 = vmax.f32 %v4584_v59, %v4585_v47  ;;  %v4589_v15 = vsel %vm4420_vm3, %v4380_v37, -inf  ;;  %v4610_v22 = vsel %vm4420_vm3, %v4383_v0, -inf  ;;  %v4382_v45 = vmax.f32 %v4168_v4, 0.0 }
 0x30f   : > { %v4895_v30 = vmax.f32 %v4574_v43, %v9584_v42  ;;  %v4567_v20 = vmax.f32 %v4565_v17, %v4566_v27  ;;  %v4579_v31 = vmax.f32 %v4577_v18, %v4578_v11  ;;  %v4599_v13 = vrot.slane %v4598_v19, 2 }
 0x310   : > { %v4587_v24 = vrot.slane %v4586_v25, 1  ;;  %v4590_v10 = vrot.slane %v4589_v15, 4  ;;  %v4611_v29 = vrot.slane %v4610_v22, 4  ;;  %v4603_v8 = vsel %vm4420_vm3, %v4382_v45, -inf }
 0x311   : > { %v9751_v55 = vrot.slane %v4892_v39, 6  ;;  %v4894_v38 = vmax.f32 %v4567_v20, %v9584_v42  ;;  %v4580_v26 = vrot.slane %v4579_v31, 1  ;;  %v4600_v6 = vmax.f32 %v4598_v19, %v4599_v13 }
 0x312   : > { %v9754_v60 = vrot.slane %v4895_v30, 3  ;;  %v4591_v23 = vmax.f32 %v4589_v15, %v4590_v10  ;;  %v4612_v5 = vmax.f32 %v4610_v22, %v4611_v29  ;;  %v4604_v3 = vrot.slane %v4603_v8, 4 }
 0x313   : > { %v9756_v34 = vrot.slane %v4894_v38, 4  ;;  %v9758_v36 = vmax.f32 %v4586_v25, %v4587_v24  ;;  %v4601_v2 = vrot.slane %v4600_v6, 1  ;;  %v5038_v7 = vsel %vm5021_vm5, %v9681_v50, %v9684_v12  ;;  %v9775_v12 = vpop.f32.mrb[39].mxu1 }
 0x314   : > { %v4592_v21 = vrot.slane %v4591_v23, 2  ;;  %v4613_v1 = vrot.slane %v4612_v5, 2  ;;  %v4605_v40 = vmax.f32 %v4603_v8, %v4604_v3  ;;  %v5040_v33 = vsel %vm5024_vm6, %v5039_v56, %v5038_v7 }
 0x315   : > { %v9764_v35 = vmax.f32 %v4579_v31, %v4580_v26  ;;  %v4602_v16 = vmax.f32 %v4600_v6, %v4601_v2  ;;  %v5042_v39 = vsel %vm5027_vm7, %v9690_v46, %v5040_v33  ;;  %v4183_v59 = vadd.f32 %v9603_v41, %v9570_v9 }
 0x316   : > { %v4593_v32 = vmax.f32 %v4591_v23, %v4592_v21  ;;  %v4614_v51 = vmax.f32 %v4612_v5, %v4613_v1  ;;  %v4606_v17 = vrot.slane %v4605_v40, 2  ;;  %5770 = vmatmul.mubr.msk.f32.vlgmr.msra.gmra.mrb[64].mxu1 %vm4420_vm3, %v5042_v39  ;;  %v4178_v50 = vadd.f32 %v9607_v49, %v9570_v9 }
 0x317   : > { %v4899_v56 = vmax.f32 %v4602_v16, %v9584_v42  ;;  %v4385_v18 = vmax.f32 %v4183_v59, 0.0  ;;  %v4193_v46 = vadd.f32 %v9631_v48, %v9570_v9  ;;  %v4188_v41 = vadd.f32 %v9635_v52, %v9570_v9 }
 0x318   : > { %v4594_v44 = vrot.slane %v4593_v32, 1  ;;  %v4615_v47 = vrot.slane %v4614_v51, 1  ;;  %v4607_v37 = vmax.f32 %v4605_v40, %v4606_v17  ;;  %v4384_v0 = vmax.f32 %v4178_v50, 0.0 }
 0x319   : > { %v5057_v4 = vrot.slane %v4899_v56, 7  ;;  %v4624_v43 = vsel %vm4420_vm3, %v4385_v18, -inf  ;;  %v4387_v27 = vmax.f32 %v4193_v46, 0.0  ;;  %v4386_v49 = vmax.f32 %v4188_v41, 0.0 }
 0x31a   : > { %v4595_v11 = vmax.f32 %v4593_v32, %v4594_v44  ;;  %v4616_v19 = vmax.f32 %v4614_v51, %v4615_v47  ;;  %v4608_v25 = vrot.slane %v4607_v37, 1  ;;  %v4625_v15 = vrot.slane %v4624_v43, 4 }
 0x31b   : > { %v4617_v22 = vsel %vm4420_vm3, %v4384_v0, -inf  ;;  %v4638_v48 = vsel %vm4420_vm3, %v4387_v27, -inf  ;;  %v4631_v45 = vsel %vm4420_vm3, %v4386_v49, -inf  ;;  %v4203_v52 = vadd.f32 %v9671_v61, %v9570_v9 }
 0x31c   : > { %v4898_v30 = vmax.f32 %v4595_v11, %v9584_v42  ;;  %v4901_v20 = vmax.f32 %v4616_v19, %v9584_v42  ;;  %v4609_v31 = vmax.f32 %v4607_v37, %v4608_v25  ;;  %v4626_v13 = vmax.f32 %v4624_v43, %v4625_v15 }
 0x31d   : > { %v4618_v24 = vrot.slane %v4617_v22, 4  ;;  %v4639_v10 = vrot.slane %v4638_v48, 4  ;;  %v4632_v29 = vrot.slane %v4631_v45, 4  ;;  %v4389_v8 = vmax.f32 %v4203_v52, 0.0 }
 0x31e   : > { %v4896_v38 = vmax.f32 %v9764_v35, %v9584_v42  ;;  %v9793_v26 = vsel %vm5009_vm14, %v5057_v4, %v4898_v30  ;;  %v9795_v6 = vrot.slane %v4901_v20, 5  ;;  %v4627_v23 = vrot.slane %v4626_v13, 2 }
 0x31f   : > { %v4619_v61 = vmax.f32 %v4617_v22, %v4618_v24  ;;  %v4640_v5 = vmax.f32 %v4638_v48, %v4639_v10  ;;  %v4633_v3 = vmax.f32 %v4631_v45, %v4632_v29  ;;  %v4652_v2 = vsel %vm4420_vm3, %v4389_v8, -inf  ;;  %v5733_v24 = vpop.f32.mrb[40].mxu1 }
 0x320   : > { %v4900_v7 = vmax.f32 %v4609_v31, %v9584_v42  ;;  %v4628_v21 = vmax.f32 %v4626_v13, %v4627_v23  ;;  %v4653_v1 = vrot.slane %v4652_v2, 4  ;;  %v4198_v40 = vadd.f32 %v9675_v14, %v9570_v9 }
 0x321   : > { %v4620_v33 = vrot.slane %v4619_v61, 2  ;;  %v4641_v35 = vrot.slane %v4640_v5, 2  ;;  %v4634_v16 = vrot.slane %v4633_v3, 2  ;;  %v4213_v39 = vadd.f32 %v9696_v53, %v9570_v9 }
 0x322   : > { %v4629_v59 = vrot.slane %v4628_v21, 1  ;;  %v4654_v32 = vmax.f32 %v4652_v2, %v4653_v1  ;;  %v4388_v51 = vmax.f32 %v4198_v40, 0.0  ;;  %v4208_v17 = vadd.f32 %v9701_v63, %v9570_v9 }
 0x323   : > { %v4621_v50 = vmax.f32 %v4619_v61, %v4620_v33  ;;  %v4642_v56 = vmax.f32 %v4640_v5, %v4641_v35  ;;  %v4635_v18 = vmax.f32 %v4633_v3, %v4634_v16  ;;  %v4391_v46 = vmax.f32 %v4213_v39, 0.0  ;;  %v4237_v61 = vpop.f32.mrb[41].mxu1 }
 0x324   : > { %v4630_v41 = vmax.f32 %v4628_v21, %v4629_v59  ;;  %v4655_v44 = vrot.slane %v4654_v32, 2  ;;  %v4645_v14 = vsel %vm4420_vm3, %v4388_v51, -inf  ;;  %v4390_v47 = vmax.f32 %v4208_v17, 0.0 }
 0x325   : > { %v4622_v37 = vrot.slane %v4621_v50, 1  ;;  %v4643_v0 = vrot.slane %v4642_v56, 1  ;;  %v4636_v4 = vrot.slane %v4635_v18, 1  ;;  %v4646_v43 = vrot.slane %v4645_v14, 4 }
 0x326   : > { %v4903_v53 = vmax.f32 %v4630_v41, %v9584_v42  ;;  %v4656_v27 = vmax.f32 %v4654_v32, %v4655_v44  ;;  %v4666_v49 = vsel %vm4420_vm3, %v4391_v46, -inf  ;;  %v4659_v63 = vsel %vm4420_vm3, %v4390_v47, -inf }
 0x327   : > { %v9809_v11 = vrot.slane %v4900_v7, 6  ;;  %v4623_v19 = vmax.f32 %v4621_v50, %v4622_v37  ;;  %v9811_v25 = vmax.f32 %v4635_v18, %v4636_v4  ;;  %v4647_v15 = vmax.f32 %v4645_v14, %v4646_v43 }
 0x328   : > { %v9813_v22 = vmax.f32 %v4642_v56, %v4643_v0  ;;  %v4657_v48 = vrot.slane %v4656_v27, 1  ;;  %v4667_v45 = vrot.slane %v4666_v49, 4  ;;  %v4660_v52 = vrot.slane %v4659_v63, 4  ;;  %v5736_v56 = vpop.f32.mrb[42].mxu1 }
 0x329   : > { %v9815_v30 = vrot.slane %v4903_v53, 3  ;;  %v4902_v20 = vmax.f32 %v4623_v19, %v9584_v42  ;;  %v4648_v31 = vrot.slane %v4647_v15, 2  ;;  %v4897_v13 = vmax.f32 %v9758_v36, %v9584_v42  ;;  %v4247_v14 = vpop.f32.mrb[43].mxu1 }
 0x32a   : > { %v4658_v10 = vmax.f32 %v4656_v27, %v4657_v48  ;;  %v4668_v29 = vmax.f32 %v4666_v49, %v4667_v45  ;;  %v4661_v8 = vmax.f32 %v4659_v63, %v4660_v52  ;;  %v5046_v23 = vsel %vm5012_vm0, %v9751_v55, %v9730_v57 }
 0x32b   : > { %v4904_v5 = vmax.f32 %v9811_v25, %v9584_v42  ;;  %v4649_v3 = vmax.f32 %v4647_v15, %v4648_v31  ;;  %v5048_v2 = vsel %vm5015_vm1, %v9732_v58, %v5046_v23  ;;  %v5053_v7 = vrot.slane %v4896_v38, 2 }
 0x32c   : > { %v4907_v21 = vmax.f32 %v4658_v10, %v9584_v42  ;;  %v4669_v36 = vrot.slane %v4668_v29, 2  ;;  %v4662_v1 = vrot.slane %v4661_v8, 2  ;;  %v5050_v40 = vsel %vm5018_vm4, %v9756_v34, %v5048_v2 }
 0x32d   : > { %v4650_v33 = vrot.slane %v4649_v3, 1  ;;  %v5052_v57 = vsel %vm5021_vm5, %v9754_v60, %v5050_v40  ;;  %v5055_v55 = vrot.slane %v4897_v13, 1  ;;  %v4223_v35 = vadd.f32 %v9745_v62, %v9570_v9 }
 0x32e   : > { %v5071_v16 = vrot.slane %v4907_v21, 7  ;;  %v4670_v39 = vmax.f32 %v4668_v29, %v4669_v36  ;;  %v4663_v59 = vmax.f32 %v4661_v8, %v4662_v1  ;;  %v5054_v58 = vsel %vm5024_vm6, %v5053_v7, %v5052_v57 }
 0x32f   : > { %v4651_v38 = vmax.f32 %v4649_v3, %v4650_v33  ;;  %v5056_v32 = vsel %vm5027_vm7, %v5055_v55, %v5054_v58  ;;  %v4393_v51 = vmax.f32 %v4223_v35, 0.0  ;;  %v4218_v34 = vadd.f32 %v9748_v54, %v9570_v9 }
 0x330   : > { %v4671_v17 = vrot.slane %v4670_v39, 1  ;;  %v4664_v50 = vrot.slane %v4663_v59, 1  ;;  %5772 = vmatprep.mubr.msk.f32.mxu1 %vm4420_vm3, %v5056_v32  ;;  %v4233_v60 = vadd.f32 %v9770_v28, %v9570_v9  ;;  %v4228_v62 = vadd.f32 %v9775_v12, %v9570_v9 }
 0x331   : > { %v4906_v18 = vmax.f32 %v4651_v38, %v9584_v42  ;;  %v4680_v46 = vsel %vm4420_vm3, %v4393_v51, -inf  ;;  %v4392_v41 = vmax.f32 %v4218_v34, 0.0  ;;  %v4243_v44 = vadd.f32 %v5733_v24, %v9570_v9 }
 0x332   : > { %v4672_v54 = vmax.f32 %v4670_v39, %v4671_v17  ;;  %v4665_v47 = vmax.f32 %v4663_v59, %v4664_v50  ;;  %v4681_v37 = vrot.slane %v4680_v46, 4  ;;  %v4395_v0 = vmax.f32 %v4233_v60, 0.0 }
 0x333   : > { %v9847_v4 = vsel %vm5009_vm14, %v5071_v16, %v4906_v18  ;;  %v4673_v28 = vsel %vm4420_vm3, %v4392_v41, -inf  ;;  %v4394_v43 = vmax.f32 %v4228_v62, 0.0  ;;  %v4397_v12 = vmax.f32 %v4243_v44, 0.0 }
 0x334   : > { %v9850_v53 = vrot.slane %v4902_v20, 4  ;;  %v4909_v27 = vmax.f32 %v4672_v54, %v9584_v42  ;;  %v4682_v49 = vmax.f32 %v4680_v46, %v4681_v37  ;;  %v4674_v63 = vrot.slane %v4673_v28, 4 }
 0x335   : > { %v4694_v19 = vsel %vm4420_vm3, %v4395_v0, -inf  ;;  %v4687_v15 = vsel %vm4420_vm3, %v4394_v43, -inf  ;;  %v4708_v48 = vsel %vm4420_vm3, %v4397_v12, -inf  ;;  %v4238_v45 = vadd.f32 %v4237_v61, %v9570_v9 }
 0x336   : > { %v9857_v52 = vrot.slane %v4909_v27, 5  ;;  %v4908_v31 = vmax.f32 %v4665_v47, %v9584_v42  ;;  %v4683_v13 = vrot.slane %v4682_v49, 2  ;;  %v4675_v24 = vmax.f32 %v4673_v28, %v4674_v63 }
 0x337   : > { %v4695_v20 = vrot.slane %v4694_v19, 4  ;;  %v4688_v10 = vrot.slane %v4687_v15, 4  ;;  %v4709_v29 = vrot.slane %v4708_v48, 4  ;;  %v4396_v8 = vmax.f32 %v4238_v45, 0.0 }
 0x338   : > { %v4684_v23 = vmax.f32 %v4682_v49, %v4683_v13  ;;  %v4676_v3 = vrot.slane %v4675_v24, 2  ;;  %v4253_v2 = vadd.f32 %v5736_v56, %v9570_v9  ;;  %v4248_v7 = vadd.f32 %v4247_v14, %v9570_v9 }
 0x339   : > { %v4696_v21 = vmax.f32 %v4694_v19, %v4695_v20  ;;  %v4689_v36 = vmax.f32 %v4687_v15, %v4688_v10  ;;  %v4710_v1 = vmax.f32 %v4708_v48, %v4709_v29  ;;  %v4701_v61 = vsel %vm4420_vm3, %v4396_v8, -inf }
 0x33a   : > { %v4685_v40 = vrot.slane %v4684_v23, 1  ;;  %v4677_v33 = vmax.f32 %v4675_v24, %v4676_v3  ;;  %v4702_v57 = vrot.slane %v4701_v61, 4  ;;  %v4399_v55 = vmax.f32 %v4253_v2, 0.0 }
 0x33b   : > { %v4697_v35 = vrot.slane %v4696_v21, 2  ;;  %v4690_v16 = vrot.slane %v4689_v36, 2  ;;  %v4711_v39 = vrot.slane %v4710_v1, 2  ;;  %v4398_v59 = vmax.f32 %v4248_v7, 0.0 }
 0x33c   : > { %v4686_v58 = vmax.f32 %v4684_v23, %v4685_v40  ;;  %v4678_v38 = vrot.slane %v4677_v33, 1  ;;  %v4703_v32 = vmax.f32 %v4701_v61, %v4702_v57  ;;  %v4722_v51 = vsel %vm4420_vm3, %v4399_v55, -inf  ;;  %v5739_v23 = vpop.f32.mrb[44].mxu1 }
 0x33d   : > { %v4698_v34 = vmax.f32 %v4696_v21, %v4697_v35  ;;  %v4691_v17 = vmax.f32 %v4689_v36, %v4690_v16  ;;  %v4712_v50 = vmax.f32 %v4710_v1, %v4711_v39  ;;  %v4723_v60 = vrot.slane %v4722_v51, 4  ;;  %v4257_v21 = vpop.f32.mrb[45].mxu1 }
 0x33e   : > { %v5073_v62 = vrot.slane %v4908_v31, 6  ;;  %v4679_v56 = vmax.f32 %v4677_v33, %v4678_v38  ;;  %v4704_v18 = vrot.slane %v4703_v32, 2  ;;  %v4715_v46 = vsel %vm4420_vm3, %v4398_v59, -inf }
 0x33f   : > { %v4699_v41 = vrot.slane %v4698_v34, 1  ;;  %v4692_v44 = vrot.slane %v4691_v17, 1  ;;  %v4713_v14 = vrot.slane %v4712_v50, 1  ;;  %v4724_v54 = vmax.f32 %v4722_v51, %v4723_v60 }
 0x340   : > { %v4911_v47 = vmax.f32 %v4686_v58, %v9584_v42  ;;  %v4910_v37 = vmax.f32 %v4679_v56, %v9584_v42  ;;  %v4705_v0 = vmax.f32 %v4703_v32, %v4704_v18  ;;  %v4716_v28 = vrot.slane %v4715_v46, 4 }
 0x341   : > { %v4700_v43 = vmax.f32 %v4698_v34, %v4699_v41  ;;  %v4693_v12 = vmax.f32 %v4691_v17, %v4692_v44  ;;  %v4714_v27 = vmax.f32 %v4712_v50, %v4713_v14  ;;  %v4725_v49 = vrot.slane %v4724_v54, 2  ;;  %v5742_v34 = vpop.f32.mrb[46].mxu1 }
 0x342   : > { %v5077_v63 = vrot.slane %v4910_v37, 4  ;;  %v4706_v19 = vrot.slane %v4705_v0, 1  ;;  %v4717_v15 = vmax.f32 %v4715_v46, %v4716_v28  ;;  %v4905_v48 = vmax.f32 %v9813_v22, %v9584_v42 }
 0x343   : > { %v4912_v45 = vmax.f32 %v4693_v12, %v9584_v42  ;;  %v4915_v31 = vmax.f32 %v4714_v27, %v9584_v42  ;;  %v4726_v13 = vmax.f32 %v4724_v54, %v4725_v49  ;;  %v5060_v24 = vsel %vm5012_vm0, %v9809_v11, %v9793_v26 }
 0x344   : > { %v4707_v20 = vmax.f32 %v4705_v0, %v4706_v19  ;;  %v4718_v10 = vrot.slane %v4717_v15, 2  ;;  %v5062_v29 = vsel %vm5015_vm1, %v9795_v6, %v5060_v24  ;;  %v5067_v8 = vrot.slane %v4904_v5, 2 }
 0x345   : > { %v5085_v22 = vrot.slane %v4915_v31, 7  ;;  %v4727_v3 = vrot.slane %v4726_v13, 1  ;;  %v5064_v2 = vsel %vm5018_vm4, %v9850_v53, %v5062_v29  ;;  %v5069_v7 = vrot.slane %v4905_v48, 1 }
 0x346   : > { %v4914_v36 = vmax.f32 %v4707_v20, %v9584_v42  ;;  %v4719_v26 = vmax.f32 %v4717_v15, %v4718_v10  ;;  %v5066_v11 = vsel %vm5021_vm5, %v9815_v30, %v5064_v2  ;;  %v4263_v6 = vadd.f32 %v5739_v23, %v9570_v9 }
 0x347   : > { %v4728_v1 = vmax.f32 %v4726_v13, %v4727_v3  ;;  %v5068_v25 = vsel %vm5024_vm6, %v5067_v8, %v5066_v11  ;;  %v4258_v5 = vadd.f32 %v4257_v21, %v9570_v9  ;;  %v4913_v61 = vmax.f32 %v4700_v43, %v9584_v42 }
 0x348   : > { %v5086_v40 = vsel %vm5009_vm14, %v5085_v22, %v4914_v36  ;;  %v4720_v53 = vrot.slane %v4719_v26, 1  ;;  %v5070_v33 = vsel %vm5027_vm7, %v5069_v7, %v5068_v25  ;;  %v4401_v57 = vmax.f32 %v4263_v6, 0.0 }
 0x349   : > { %v5079_v55 = vrot.slane %v4911_v47, 3  ;;  %5773 = vmatmul.mubr.msk.f32.gmra.mrb[66].mxu1 %vm4420_vm3, %v5070_v33  ;;  %v4400_v35 = vmax.f32 %v4258_v5, 0.0  ;;  %v5074_v30 = vsel %vm5012_vm0, %v5073_v62, %v9847_v4  ;;  %v5081_v16 = vrot.slane %v4912_v45, 2  ;;  %v4267_v62 = vpop.f32.mrb[47].mxu1 }
 0x34a   : > { %v4917_v39 = vmax.f32 %v4728_v1, %v9584_v42  ;;  %v4721_v59 = vmax.f32 %v4719_v26, %v4720_v53  ;;  %v4736_v58 = vsel %vm4420_vm3, %v4401_v57, -inf  ;;  %v5076_v38 = vsel %vm5015_vm1, %v9857_v52, %v5074_v30 }
 0x34b   : > { %v4737_v32 = vrot.slane %v4736_v58, 4  ;;  %v4729_v51 = vsel %vm4420_vm3, %v4400_v35, -inf  ;;  %v5078_v17 = vsel %vm5018_vm4, %v5077_v63, %v5076_v38  ;;  %v5083_v50 = vrot.slane %v4913_v61, 1 }
 0x34c   : > { %v4916_v60 = vmax.f32 %v4721_v59, %v9584_v42  ;;  %v4730_v56 = vrot.slane %v4729_v51, 4  ;;  %v4273_v4 = vadd.f32 %v5742_v34, %v9570_v9  ;;  %v5080_v18 = vsel %vm5021_vm5, %v5079_v55, %v5078_v17 }
 0x34d   : > { %v4738_v46 = vmax.f32 %v4736_v58, %v4737_v32  ;;  %v4268_v41 = vadd.f32 %v4267_v62, %v9570_v9  ;;  %v5082_v52 = vsel %vm5024_vm6, %v5081_v16, %v5080_v18  ;;  %v5089_v37 = vrot.slane %v4917_v39, 5 }
 0x34e   : > { %v5087_v44 = vrot.slane %v4916_v60, 6  ;;  %v4731_v14 = vmax.f32 %v4729_v51, %v4730_v56  ;;  %v4403_v54 = vmax.f32 %v4273_v4, 0.0  ;;  %v5084_v47 = vsel %vm5027_vm7, %v5083_v50, %v5082_v52 }
 0x34f   : > { %v4739_v0 = vrot.slane %v4738_v46, 2  ;;  %v4402_v28 = vmax.f32 %v4268_v41, 0.0  ;;  %5775 = vmatprep.mubr.msk.f32.mxu1 %vm4420_vm3, %v5084_v47 }
 0x350   : > { %v4732_v43 = vrot.slane %v4731_v14, 2  ;;  %v4750_v12 = vsel %vm4420_vm3, %v4403_v54, -inf  ;;  %v5088_v27 = vsel %vm5012_vm0, %v5087_v44, %v5086_v40 }
 0x351   : > { %v4740_v49 = vmax.f32 %v4738_v46, %v4739_v0  ;;  %v4751_v63 = vrot.slane %v4750_v12, 4  ;;  %v4743_v19 = vsel %vm4420_vm3, %v4402_v28, -inf  ;;  %v5090_v15 = vsel %vm5015_vm1, %v5089_v37, %v5088_v27 }
 0x352   : > { %v4733_v48 = vmax.f32 %v4731_v14, %v4732_v43  ;;  %v4744_v45 = vrot.slane %v4743_v19, 4  ;;  %v5745_v53 = vpop.f32.mrb[48].mxu1 }
 0x353   : > { %v4741_v31 = vrot.slane %v4740_v49, 1  ;;  %v4752_v13 = vmax.f32 %v4750_v12, %v4751_v63  ;;  %v4283_v33 = vadd.f32 %v5745_v53, %v9570_v9  ;;  %v4277_v57 = vpop.f32.mrb[49].mxu1 }
 0x354   : > { %v4734_v24 = vrot.slane %v4733_v48, 1  ;;  %v4745_v20 = vmax.f32 %v4743_v19, %v4744_v45  ;;  %v4278_v35 = vadd.f32 %v4277_v57, %v9570_v9 }
 0x355   : > { %v4742_v10 = vmax.f32 %v4740_v49, %v4741_v31  ;;  %v4753_v29 = vrot.slane %v4752_v13, 2  ;;  %v4405_v16 = vmax.f32 %v4283_v33, 0.0 }
 0x356   : > { %v4735_v8 = vmax.f32 %v4733_v48, %v4734_v24  ;;  %v4746_v23 = vrot.slane %v4745_v20, 2  ;;  %v4404_v59 = vmax.f32 %v4278_v35, 0.0 }
 0x357   : > { %v4919_v22 = vmax.f32 %v4742_v10, %v9584_v42  ;;  %v4754_v3 = vmax.f32 %v4752_v13, %v4753_v29  ;;  %v4764_v38 = vsel %vm4420_vm3, %v4405_v16, -inf }
 0x358   : > { %v4918_v2 = vmax.f32 %v4735_v8, %v9584_v42  ;;  %v4747_v7 = vmax.f32 %v4745_v20, %v4746_v23  ;;  %v4765_v32 = vrot.slane %v4764_v38, 4  ;;  %v4757_v51 = vsel %vm4420_vm3, %v4404_v59, -inf }
 0x359   : > { %v4755_v21 = vrot.slane %v4754_v3, 1  ;;  %v5093_v11 = vrot.slane %v4919_v22, 3  ;;  %v4758_v34 = vrot.slane %v4757_v51, 4 }
 0x35a   : > { %v5091_v36 = vrot.slane %v4918_v2, 4  ;;  %v4748_v26 = vrot.slane %v4747_v7, 1  ;;  %v4766_v50 = vmax.f32 %v4764_v38, %v4765_v32 }
 0x35b   : > { %v4756_v6 = vmax.f32 %v4754_v3, %v4755_v21  ;;  %v5748_v17 = vpop.f32.mrb[50].mxu1  ;;  %v4759_v4 = vmax.f32 %v4757_v51, %v4758_v34 }
 0x35c   : > { %v4749_v1 = vmax.f32 %v4747_v7, %v4748_v26  ;;  %v5092_v25 = vsel %vm5018_vm4, %v5091_v36, %v5090_v15  ;;  %v4293_v60 = vadd.f32 %v5748_v17, %v9570_v9  ;;  %v4287_v56 = vpop.f32.mrb[51].mxu1  ;;  %v4767_v18 = vrot.slane %v4766_v50, 2 }
 0x35d   : > { %v4921_v5 = vmax.f32 %v4756_v6, %v9584_v42  ;;  %v5094_v61 = vsel %vm5021_vm5, %v5093_v11, %v5092_v25  ;;  %v4288_v62 = vadd.f32 %v4287_v56, %v9570_v9  ;;  %v4760_v41 = vrot.slane %v4759_v4, 2 }
 0x35e   : > { %v4920_v40 = vmax.f32 %v4749_v1, %v9584_v42  ;;  %v4407_v46 = vmax.f32 %v4293_v60, 0.0  ;;  %v4768_v44 = vmax.f32 %v4766_v50, %v4767_v18 }
 0x35f   : > { %v5097_v30 = vrot.slane %v4921_v5, 1  ;;  %v4406_v52 = vmax.f32 %v4288_v62, 0.0  ;;  %v4761_v54 = vmax.f32 %v4759_v4, %v4760_v41 }
 0x360   : > { %v5095_v55 = vrot.slane %v4920_v40, 2  ;;  %v4778_v14 = vsel %vm4420_vm3, %v4407_v46, -inf  ;;  %v4769_v0 = vrot.slane %v4768_v44, 1 }
 0x361   : > { %v4779_v47 = vrot.slane %v4778_v14, 4  ;;  %v4771_v37 = vsel %vm4420_vm3, %v4406_v52, -inf  ;;  %v4762_v43 = vrot.slane %v4761_v54, 1 }
 0x362   : > { %v5096_v39 = vsel %vm5024_vm6, %v5095_v55, %v5094_v61  ;;  %v4772_v28 = vrot.slane %v4771_v37, 4  ;;  %v4770_v27 = vmax.f32 %v4768_v44, %v4769_v0 }
 0x363   : > { %v5098_v58 = vsel %vm5027_vm7, %v5097_v30, %v5096_v39  ;;  %v4780_v12 = vmax.f32 %v4778_v14, %v4779_v47  ;;  %v4763_v63 = vmax.f32 %v4761_v54, %v4762_v43 }
 0x364   : > { %5776 = vmatmul.mubr.msk.f32.gmra.mrb[68].mxu1 %vm4420_vm3, %v5098_v58  ;;  %v4773_v49 = vmax.f32 %v4771_v37, %v4772_v28  ;;  %v4923_v15 = vmax.f32 %v4770_v27, %v9584_v42 }
 0x365   : > { %v4781_v19 = vrot.slane %v4780_v12, 2  ;;  %v4922_v45 = vmax.f32 %v4763_v63, %v9584_v42 }
 0x366   : > { %v4774_v48 = vrot.slane %v4773_v49, 2  ;;  %v5099_v13 = vrot.slane %v4923_v15, 7 }
 0x367   : > { %v4782_v31 = vmax.f32 %v4780_v12, %v4781_v19 }
 0x368   : > { %v4775_v24 = vmax.f32 %v4773_v49, %v4774_v48  ;;  %v5100_v10 = vsel %vm5009_vm14, %v5099_v13, %v4922_v45 }
 0x369   : > { %v4783_v20 = vrot.slane %v4782_v31, 1 }
 0x36a   : > { %v4776_v29 = vrot.slane %v4775_v24, 1 }
 0x36b   : > { %v4784_v8 = vmax.f32 %v4782_v31, %v4783_v20 }
 0x36c   : > { %v4777_v23 = vmax.f32 %v4775_v24, %v4776_v29 }
 0x36d   : > { %v4925_v22 = vmax.f32 %v4784_v8, %v9584_v42 }
 0x36e   : > { %v4924_v3 = vmax.f32 %v4777_v23, %v9584_v42 }
 0x36f   : > { %v5103_v7 = vrot.slane %v4925_v22, 5 }
 0x370   : > { %v5101_v2 = vrot.slane %v4924_v3, 6 }
 0x372   : > { %v5102_v21 = vsel %vm5012_vm0, %v5101_v2, %v5100_v10 }
 0x373   : > { %v5104_v36 = vsel %vm5015_vm1, %v5103_v7, %v5102_v21 }
 0x37a   : > { %v5751_v26 = vpop.f32.mrb[52].mxu1 }
 0x37b   : > { %v4303_v11 = vadd.f32 %v5751_v26, %v9570_v9  ;;  %v4297_v6 = vpop.f32.mrb[53].mxu1 }
 0x37c   : > { %v4298_v1 = vadd.f32 %v4297_v6, %v9570_v9 }
 0x37d   : > { %v4409_v25 = vmax.f32 %v4303_v11, 0.0 }
 0x37e   : > { %v4408_v5 = vmax.f32 %v4298_v1, 0.0 }
 0x37f   : > { %v4792_v61 = vsel %vm4420_vm3, %v4409_v25, -inf }
 0x380   : > { %v4793_v40 = vrot.slane %v4792_v61, 4  ;;  %v4785_v53 = vsel %vm4420_vm3, %v4408_v5, -inf }
 0x381   : > { %v4786_v57 = vrot.slane %v4785_v53, 4 }
 0x382   : > { %v5754_v33 = vpop.f32.mrb[54].mxu1  ;;  %v4794_v30 = vmax.f32 %v4792_v61, %v4793_v40 }
 0x383   : > { %v4313_v55 = vadd.f32 %v5754_v33, %v9570_v9  ;;  %v4307_v35 = vpop.f32.mrb[55].mxu1  ;;  %v4787_v39 = vmax.f32 %v4785_v53, %v4786_v57 }
 0x384   : > { %v4308_v16 = vadd.f32 %v4307_v35, %v9570_v9  ;;  %v4795_v58 = vrot.slane %v4794_v30, 2 }
 0x385   : > { %v4411_v59 = vmax.f32 %v4313_v55, 0.0  ;;  %v4788_v32 = vrot.slane %v4787_v39, 2 }
 0x386   : > { %v4410_v38 = vmax.f32 %v4308_v16, 0.0  ;;  %v4796_v34 = vmax.f32 %v4794_v30, %v4795_v58 }
 0x387   : > { %v4806_v51 = vsel %vm4420_vm3, %v4411_v59, -inf  ;;  %v4789_v60 = vmax.f32 %v4787_v39, %v4788_v32 }
 0x388   : > { %v4807_v17 = vrot.slane %v4806_v51, 4  ;;  %v4799_v50 = vsel %vm4420_vm3, %v4410_v38, -inf  ;;  %v4797_v4 = vrot.slane %v4796_v34, 1 }
 0x389   : > { %v4800_v56 = vrot.slane %v4799_v50, 4  ;;  %v4790_v46 = vrot.slane %v4789_v60, 1 }
 0x38a   : > { %v4808_v62 = vmax.f32 %v4806_v51, %v4807_v17  ;;  %v4798_v14 = vmax.f32 %v4796_v34, %v4797_v4 }
 0x38b   : > { %v4801_v41 = vmax.f32 %v4799_v50, %v4800_v56  ;;  %v4791_v37 = vmax.f32 %v4789_v60, %v4790_v46 }
 0x38c   : > { %v5757_v18 = vpop.f32.mrb[56].mxu1  ;;  %v4809_v54 = vrot.slane %v4808_v62, 2  ;;  %v4927_v43 = vmax.f32 %v4798_v14, %v9584_v42 }
 0x38d   : > { %v4323_v52 = vadd.f32 %v5757_v18, %v9570_v9  ;;  %v4317_v44 = vpop.f32.mrb[57].mxu1  ;;  %v4802_v0 = vrot.slane %v4801_v41, 2  ;;  %v4926_v49 = vmax.f32 %v4791_v37, %v9584_v42 }
 0x38e   : > { %v4318_v47 = vadd.f32 %v4317_v44, %v9570_v9  ;;  %v4810_v12 = vmax.f32 %v4808_v62, %v4809_v54  ;;  %v5107_v10 = vrot.slane %v4927_v43, 3 }
 0x38f   : > { %v4413_v28 = vmax.f32 %v4323_v52, 0.0  ;;  %v4803_v63 = vmax.f32 %v4801_v41, %v4802_v0  ;;  %v5105_v31 = vrot.slane %v4926_v49, 4 }
 0x390   : > { %v4412_v27 = vmax.f32 %v4318_v47, 0.0  ;;  %v4811_v15 = vrot.slane %v4810_v12, 1 }
 0x391   : > { %v4820_v19 = vsel %vm4420_vm3, %v4413_v28, -inf  ;;  %v4804_v13 = vrot.slane %v4803_v63, 1  ;;  %v5106_v21 = vsel %vm5018_vm4, %v5105_v31, %v5104_v36 }
 0x392   : > { %v4821_v48 = vrot.slane %v4820_v19, 4  ;;  %v4813_v45 = vsel %vm4420_vm3, %v4412_v27, -inf  ;;  %v4812_v29 = vmax.f32 %v4810_v12, %v4811_v15  ;;  %v5108_v6 = vsel %vm5021_vm5, %v5107_v10, %v5106_v21 }
 0x393   : > { %v4814_v24 = vrot.slane %v4813_v45, 4  ;;  %v4805_v3 = vmax.f32 %v4803_v63, %v4804_v13 }
 0x394   : > { %v5760_v20 = vpop.f32.mrb[58].mxu1  ;;  %v4822_v8 = vmax.f32 %v4820_v19, %v4821_v48  ;;  %v4929_v40 = vmax.f32 %v4812_v29, %v9584_v42 }
 0x395   : > { %v4333_v23 = vadd.f32 %v5760_v20, %v9570_v9  ;;  %v4327_v22 = vpop.f32.mrb[59].mxu1  ;;  %v4815_v2 = vmax.f32 %v4813_v45, %v4814_v24  ;;  %v4928_v1 = vmax.f32 %v4805_v3, %v9584_v42 }
 0x396   : > { %v4328_v7 = vadd.f32 %v4327_v22, %v9570_v9  ;;  %v4823_v26 = vrot.slane %v4822_v8, 2  ;;  %v5111_v17 = vrot.slane %v4929_v40, 1 }
 0x397   : > { %v4415_v11 = vmax.f32 %v4333_v23, 0.0  ;;  %v4816_v25 = vrot.slane %v4815_v2, 2  ;;  %v5109_v38 = vrot.slane %v4928_v1, 2 }
 0x398   : > { %v4414_v5 = vmax.f32 %v4328_v7, 0.0  ;;  %v5763_v61 = vpop.f32.mrb[60].mxu1  ;;  %v4824_v53 = vmax.f32 %v4822_v8, %v4823_v26 }
 0x399   : > { %v4834_v33 = vsel %vm4420_vm3, %v4415_v11, -inf  ;;  %v4343_v57 = vadd.f32 %v5763_v61, %v9570_v9  ;;  %v4337_v55 = vpop.f32.mrb[61].mxu1  ;;  %v4817_v35 = vmax.f32 %v4815_v2, %v4816_v25  ;;  %v5110_v4 = vsel %vm5024_vm6, %v5109_v38, %v5108_v6 }
 0x39a   : > { %v4835_v30 = vrot.slane %v4834_v33, 4  ;;  %v4827_v36 = vsel %vm4420_vm3, %v4414_v5, -inf  ;;  %v4338_v16 = vadd.f32 %v4337_v55, %v9570_v9  ;;  %v4825_v39 = vrot.slane %v4824_v53, 1 }
 0x39b   : > { %v4828_v59 = vrot.slane %v4827_v36, 4  ;;  %v4417_v58 = vmax.f32 %v4343_v57, 0.0  ;;  %v4818_v32 = vrot.slane %v4817_v35, 1  ;;  %v5112_v31 = vsel %vm5027_vm7, %v5111_v17, %v5110_v4 }
 0x39c   : > { %v4836_v51 = vmax.f32 %v4834_v33, %v4835_v30  ;;  %v4416_v34 = vmax.f32 %v4338_v16, 0.0  ;;  %v4826_v50 = vmax.f32 %v4824_v53, %v4825_v39  ;;  %5778 = vmatprep.mubr.msk.f32.mxu1 %vm4420_vm3, %v5112_v31 }
 0x39d   : > { %v4829_v60 = vmax.f32 %v4827_v36, %v4828_v59  ;;  %v4848_v56 = vsel %vm4420_vm3, %v4417_v58, -inf  ;;  %v4819_v62 = vmax.f32 %v4817_v35, %v4818_v32 }
 0x39e   : > { %v4837_v18 = vrot.slane %v4836_v51, 2  ;;  %v4849_v46 = vrot.slane %v4848_v56, 4  ;;  %v4841_v41 = vsel %vm4420_vm3, %v4416_v34, -inf  ;;  %v4931_v44 = vmax.f32 %v4826_v50, %v9584_v42 }
 0x39f   : > { %v4830_v14 = vrot.slane %v4829_v60, 2  ;;  %v4842_v54 = vrot.slane %v4841_v41, 4  ;;  %v4930_v0 = vmax.f32 %v4819_v62, %v9584_v42 }
 0x3a0   : > { %v5766_v52 = vpop.f32.mrb[62].mxu1  ;;  %v4838_v28 = vmax.f32 %v4836_v51, %v4837_v18  ;;  %v4850_v43 = vmax.f32 %v4848_v56, %v4849_v46  ;;  %v5113_v27 = vrot.slane %v4931_v44, 7  ;;  %v5456_v46 = vld [vmem:[%s10038_s2 + $0x8] ss:$0 sm:$0xff] }
 0x3a1   : > { %v4353_v47 = vadd.f32 %v5766_v52, %v9570_v9  ;;  %v4347_v37 = vpop.f32.mrb[63].mxu1  ;;  %v4831_v49 = vmax.f32 %v4829_v60, %v4830_v14  ;;  %v4843_v63 = vmax.f32 %v4841_v41, %v4842_v54 }
 0x3a2   : > { %v4348_v12 = vadd.f32 %v4347_v37, %v9570_v9  ;;  %v4839_v15 = vrot.slane %v4838_v28, 1  ;;  %v4851_v48 = vrot.slane %v4850_v43, 2  ;;  %v5114_v13 = vsel %vm5009_vm14, %v5113_v27, %v4930_v0 }
 0x3a3   : > { %v4419_v19 = vmax.f32 %v4353_v47, 0.0  ;;  %v4832_v24 = vrot.slane %v4831_v49, 1  ;;  %v4844_v20 = vrot.slane %v4843_v63, 2 }
 0x3a4   : > { %v4418_v45 = vmax.f32 %v4348_v12, 0.0  ;;  %v4840_v29 = vmax.f32 %v4838_v28, %v4839_v15  ;;  %v4852_v8 = vmax.f32 %v4850_v43, %v4851_v48 }
 0x3a5   : > { %v4862_v10 = vsel %vm4420_vm3, %v4419_v19, -inf  ;;  %v4833_v22 = vmax.f32 %v4831_v49, %v4832_v24  ;;  %v4845_v3 = vmax.f32 %v4843_v63, %v4844_v20 }
 0x3a6   : > { %v4863_v9 = vrot.slane %v4862_v10, 4  ;;  %v4855_v23 = vsel %vm4420_vm3, %v4418_v45, -inf  ;;  %v4933_v7 = vmax.f32 %v4840_v29, %v9584_v42  ;;  %v4853_v21 = vrot.slane %v4852_v8, 1 }
 0x3a7   : > { %v4856_v2 = vrot.slane %v4855_v23, 4  ;;  %v4932_v11 = vmax.f32 %v4833_v22, %v9584_v42  ;;  %v4846_v6 = vrot.slane %v4845_v3, 1 }
 0x3a8   : > { %v4864_v26 = vmax.f32 %v4862_v10, %v4863_v9  ;;  %v4854_v25 = vmax.f32 %v4852_v8, %v4853_v21  ;;  %v5117_v33 = vrot.slane %v4933_v7, 5 }
 0x3a9   : > { %v4857_v1 = vmax.f32 %v4855_v23, %v4856_v2  ;;  %v5115_v61 = vrot.slane %v4932_v11, 6  ;;  %v4847_v40 = vmax.f32 %v4845_v3, %v4846_v6 }
 0x3aa   : > { %v4865_v5 = vrot.slane %v4864_v26, 2  ;;  %v4935_v57 = vmax.f32 %v4854_v25, %v9584_v42 }
 0x3ab   : > { %v4858_v53 = vrot.slane %v4857_v1, 2  ;;  %v4934_v35 = vmax.f32 %v4847_v40, %v9584_v42  ;;  %v5116_v36 = vsel %vm5012_vm0, %v5115_v61, %v5114_v13 }
 0x3ac   : > { %v4866_v55 = vmax.f32 %v4864_v26, %v4865_v5  ;;  %v5118_v39 = vsel %vm5015_vm1, %v5117_v33, %v5116_v36  ;;  %v5121_v38 = vrot.slane %v4935_v57, 3 }
 0x3ad   : > { %v4859_v30 = vmax.f32 %v4857_v1, %v4858_v53  ;;  %v5119_v59 = vrot.slane %v4934_v35, 4 }
 0x3ae   : > { %v4867_v16 = vrot.slane %v4866_v55, 1 }
 0x3af   : > { %v4860_v58 = vrot.slane %v4859_v30, 1  ;;  %v5120_v34 = vsel %vm5018_vm4, %v5119_v59, %v5118_v39 }
 0x3b0   : > { %v4868_v32 = vmax.f32 %v4866_v55, %v4867_v16  ;;  %v5122_v50 = vsel %vm5021_vm5, %v5121_v38, %v5120_v34 }
 0x3b1   : > { %v4861_v51 = vmax.f32 %v4859_v30, %v4860_v58 }
 0x3b2   : > { %v4937_v17 = vmax.f32 %v4868_v32, %v9584_v42 }
 0x3b3   : > { %v4936_v60 = vmax.f32 %v4861_v51, %v9584_v42 }
 0x3b4   : > { %v5125_v4 = vrot.slane %v4937_v17, 1 }
 0x3b5   : > { %v5123_v56 = vrot.slane %v4936_v60, 2 }
 0x3b7   : > { %v5124_v62 = vsel %vm5024_vm6, %v5123_v56, %v5122_v50 }
 0x3b8   : > { %v5126_v18 = vsel %vm5027_vm7, %v5125_v4, %v5124_v62 }
 0x3b9   : > { %5779 = vmatmul.mubr.msk.f32.gmra.mrb[70].mxu1 %vm4420_vm3, %v5126_v18 }
 0x3e9   : > { %v5771_v41 = vpop.f32.mrb[64].mxu1 }
 0x3ea   : > { %v5215_v52 = vadd.f32 %v5771_v41, %v5456_v46  ;;  %v5209_v44 = vpop.f32.mrb[65].mxu1 }
 0x3eb   : > { %v5210_v14 = vadd.f32 %v5456_v46, %v5209_v44 }
 0x3ec   : > { %5249 = vst [vmem:[%s188_s29 + $0x8] sm:$0xff] %v5215_v52 }
 0x3ed   : > { %5248 = vst [vmem:[%s188_s29] sm:$0xff] %v5210_v14 }
 0x41c   : > { %v5774_v42 = vpop.f32.mrb[66].mxu1 }
 0x41d   : > { %v5225_v54 = vadd.f32 %v5774_v42, %v5456_v46  ;;  %v5219_v47 = vpop.f32.mrb[67].mxu1 }
 0x41e   : > { %v5220_v37 = vadd.f32 %v5456_v46, %v5219_v47 }
 0x41f   : > { %5251 = vst [vmem:[%s188_s29 + $0x18] sm:$0xff] %v5225_v54 }
 0x420   : > { %5250 = vst [vmem:[%s188_s29 + $0x10] sm:$0xff] %v5220_v37 }
 0x437   : > { %v5777_v0 = vpop.f32.mrb[68].mxu1 }
 0x438   : > { %v5235_v28 = vadd.f32 %v5777_v0, %v5456_v46  ;;  %v5229_v43 = vpop.f32.mrb[69].mxu1 }
 0x439   : > { %v5230_v12 = vadd.f32 %v5456_v46, %v5229_v43 }
 0x43a   : > { %5253 = vst [vmem:[%s188_s29 + $0x28] sm:$0xff] %v5235_v28 }
 0x43b   : > { %5252 = vst [vmem:[%s188_s29 + $0x20] sm:$0xff] %v5230_v12 }
 0x48c   : > { %v5780_v27 = vpop.f32.mrb[70].mxu1 }
 0x48d   : > { %v5245_v49 = vadd.f32 %v5780_v27, %v5456_v46  ;;  %v5239_v63 = vpop.f32.mrb[71].mxu1 }
 0x48e   : > { %v5240_v19 = vadd.f32 %v5456_v46, %v5239_v63 }
 0x48f   : > { %5255 = vst [vmem:[%s188_s29 + $0x38] sm:$0xff] %v5245_v49 }
 0x490   : > { %5254 = vst [vmem:[%s188_s29 + $0x30] sm:$0xff] %v5240_v19 }
 0x491   : > { %5918 = shalt.err (!%p5915_p1)
}
 0x492   : > { %s5919_s19 = scalar_lea.hbm %s9993_s6, 1024  ;;  %s5923_s22 = scalar_lea.hbm %s10039_s3, 4096 }
 0x493   : > { %p5920_p3 = scmp.ne.s32.totalorder %s9993_s6, %s5919_s19  ;;  %p5924_p0 = scmp.lt.u32.totalorder %s9993_s6, %s10039_s3 }
 0x494   : > { %p5925_p2 = scmp.lt.u32.totalorder %s5923_s22, %s5919_s19  ;;  %p5927_p6 = scmp.lt.u32.totalorder %s5919_s19, %s9993_s6 }
 0x495   : > { %p5921_p4 = pnand %p5920_p3, %p10763_p10 }
 0x496   : > { %p5926_p7 = por %p5925_p2, %p5924_p0 }
 0x497   : > { %p5922_p5 = pneg %p5921_p4 }
 0x498   : > { %p5928_p11 = por %p5927_p6, %p5926_p7 }
 0x49a   : > { %p5929_p12 = pnand %p5928_p11, %p5922_p5 }
 0x49c   : > { %5932 = shalt.err (!%p5929_p12)
}
 0x49d   : > { %s5977_s28 = smov 128   ;;  %s5978_s29 = smov 8  }
 0x49e   : > { %5787 = dma.vmem_to_hbm [thread:$0]  (%p10763_p10), %s9988_s30, 1024, %s9993_s6, %s5257_s7, %s5977_s28, %s5977_s28, %s5978_s29  }
 0x49f PF: > { %p5798_p8 = scmp.ge.s32.totalorder %s5971_s15, 2  ;;  %s5285_s9 = sand.u32 1, %s5959_s12  }
 0x4a0   : > { %p10764_p9 = scmp.ne.s32.totalorder %s10140_s25, 0  ;;  %s5286_s10 = scalar_lea.sflag [#allocation4], %s5285_s9 }
 0x4a2   : > { %p5794_p13 = pnand %p5798_p8, %p10764_p9 }
 0x4a4   : > { %5954 = dma.done.wait (!%p5794_p13), %s5286_s10, 1024  }
 0x4a5   : > { %5956 = vsyncadd (!%p5794_p13), %s5286_s10, 4294966272  ;;  %p16_p1 = scmp.ge.s32.totalorder %s6024_s18, 6   ;;  %s10765_s12 = smov %s5963_s13 }
 0x4a6   : > { %s10766_s13 = smov %s5967_s14  ;;  %s10767_s14 = smov %s6036_s21 }
 0x4a7   : > { %s10768_s15 = smov %s6024_s18  ;;  %18 = sbr.rel (!%p16_p1) target bundleno = 5 (0x5), region = 77 }
 0x4ae   :  { %5291 = vsyncpa [#allocation3], 1 }
 0x4af   :  { %5293 = vsyncpa [#allocation3 + $0x1], 1 }
 0x4b0   :  { %5294 = vsyncpa [#allocation4], 1 }
 0x4b1   :  { %5296 = vsyncpa [#allocation4 + $0x1], 1 }

</bundles_post_ra>
